<compile_context>
chip_gen: v7x
topology: tpu7x:2x2x1
jax: 0.10.0
libtpu: 0.0.40
codegen_flags: <defaults>
</compile_context>

<pallas_src>
import functools

import jax
import jax.numpy as jnp
from jax.experimental import pallas as pl
from jax.experimental.pallas import tpu as pltpu


LANE = 128  # channel padding target (TPU lane width)


def _basic_block_kernel(
    x_ref, w1_ref, w2_ref, b1_ref, b2_ref, out_ref, xpad_ref, *, B, H, W, Cp
):
    """Fused BasicBlock: conv1+BN1+ReLU -> conv2+BN2 (+x) +ReLU, all in VMEM.

    x_ref   : (B, H, W, Cp)       input tile (also the residual), f32
    w*_ref  : (9, Cp, Cp)          per-tap conv weights, BN scale folded, bf16
    b*_ref  : (1, Cp)              folded BatchNorm shift, f32
    out_ref : (B, H, W, Cp)
    xpad_ref: (B, H+2, W+2, Cp)    VMEM scratch: zero-padded activation, f32
    """
    M = B * H * W

    # Clear only the 1-pixel halo border; the interior is overwritten below.
    zr = jnp.zeros((B, 1, W + 2, Cp), jnp.float32)
    xpad_ref[:, pl.ds(0, 1), :, :] = zr
    xpad_ref[:, pl.ds(H + 1, 1), :, :] = zr
    zc = jnp.zeros((B, H + 2, 1, Cp), jnp.float32)
    xpad_ref[:, :, pl.ds(0, 1), :] = zc
    xpad_ref[:, :, pl.ds(W + 1, 1), :] = zc

    # Place the input in the interior of the padded scratch.
    xpad_ref[:, pl.ds(1, H), pl.ds(1, W), :] = x_ref[...].astype(jnp.float32)

    def conv3x3_bn(w_ref, shift_ref):
        # 9 accumulated MXU matmuls (bf16 operands, f32 accumulator); the BN
        # shift seeds the accumulator, the BN scale is pre-folded into w.
        def tap(dh, dw):
            t = xpad_ref[:, pl.ds(dh, H), pl.ds(dw, W), :]
            return t.reshape(M, Cp).astype(jnp.bfloat16)

        acc = shift_ref[...].astype(jnp.float32) + jnp.dot(
            tap(0, 0), w_ref[0], preferred_element_type=jnp.float32)
        for idx in range(1, 9):
            dh, dw = divmod(idx, 3)
            acc = acc + jnp.dot(tap(dh, dw), w_ref[idx],
                                preferred_element_type=jnp.float32)
        return acc

    # conv1 + BN1 + ReLU (intermediate lives only in VMEM scratch).
    y1 = jnp.maximum(conv3x3_bn(w1_ref, b1_ref), 0.0)
    xpad_ref[:, pl.ds(1, H), pl.ds(1, W), :] = y1.reshape(B, H, W, Cp)

    # conv2 + BN2 + residual + ReLU (residual re-read from the resident tile).
    y2 = conv3x3_bn(w2_ref, b2_ref).reshape(B, H, W, Cp)
    y2 = y2 + x_ref[...].astype(jnp.float32)
    out_ref[...] = jnp.maximum(y2, 0.0).astype(out_ref.dtype)


def _pick_images_per_step(N, H, W, target_rows=512):
    """Smallest divisor of N such that the matmul M dim B*H*W >= target_rows."""
    b = 1
    for cand in range(1, N + 1):
        if N % cand == 0:
            b = cand
            if cand * H * W >= target_rows:
                break
    return b


def _make_block_call(N, B, H, W, Cp, dtype):
    kernel = functools.partial(_basic_block_kernel, B=B, H=H, W=W, Cp=Cp)
    act_spec = pl.BlockSpec((B, H, W, Cp), lambda n: (n, 0, 0, 0))
    w_spec = pl.BlockSpec((9, Cp, Cp), lambda n: (0, 0, 0))
    v_spec = pl.BlockSpec((1, Cp), lambda n: (0, 0))
    return pl.pallas_call(
        kernel,
        grid=(N // B,),
        in_specs=[act_spec, w_spec, w_spec, v_spec, v_spec],
        out_specs=act_spec,
        out_shape=jax.ShapeDtypeStruct((N, H, W, Cp), dtype),
        scratch_shapes=[pltpu.VMEM((B, H + 2, W + 2, Cp), jnp.float32)],
        compiler_params=pltpu.CompilerParams(
            dimension_semantics=("parallel",),
            vmem_limit_bytes=16 * 1024 * 1024,
        ),
    )


def prepare_params(w1_oihw, scale1, shift1, w2_oihw, scale2, shift2, Cp=LANE):
    """Fold BN scale into the conv weights, pad channels to Cp lanes, cast bf16.

    Weights become (9, Cp, Cp) bf16 (one (Cin, Cout) tile per 3x3 tap,
    kh-major then kw); shifts become (1, Cp) f32.
    """

    def prep_w(w_oihw, scale):
        cout, cin, _, _ = w_oihw.shape
        w = jnp.transpose(w_oihw, (2, 3, 1, 0))                # OIHW -> HWIO
        w = w * scale[None, None, None, :]                     # fold BN scale
        w = jnp.pad(w, ((0, 0), (0, 0), (0, Cp - cin), (0, Cp - cout)))
        return w.reshape(9, Cp, Cp).astype(jnp.bfloat16)

    def prep_shift(v):
        v = jnp.pad(v.astype(jnp.float32), (0, Cp - v.shape[0]))
        return v.reshape(1, Cp)

    return {
        "w1": prep_w(w1_oihw, scale1),
        "w2": prep_w(w2_oihw, scale2),
        "shift1": prep_shift(shift1),
        "shift2": prep_shift(shift2),
    }


def basic_block_forward(x_nchw, params, Cp=LANE):
    """BasicBlock forward. Input/output are NCHW (PyTorch convention).

    NOTE: for a multi-block network keep the whole model in NHWC with
    channels padded once at entry/exit; the per-block transposes/pad here
    exist only to match the PyTorch test harness.
    """
    N, C, H, W = x_nchw.shape
    x = jnp.transpose(x_nchw, (0, 2, 3, 1))                    # NCHW -> NHWC
    x = jnp.pad(x, ((0, 0), (0, 0), (0, 0), (0, Cp - C)))      # lane-dense C
    B = _pick_images_per_step(N, H, W)
    out = _make_block_call(N, B, H, W, Cp, x.dtype)(
        x, params["w1"], params["w2"], params["shift1"], params["shift2"],
    )
    out = out[..., :C]
    return jnp.transpose(out, (0, 3, 1, 2))                    # NHWC -> NCHW


def _fold_bn(gamma, beta, mean, var, eps=1e-5):
    scale = gamma / jnp.sqrt(var + eps)
    shift = beta - mean * scale
    return scale, shift


def _reference_forward(x, w1, s1, b1, w2, s2, b2, matmul_dtype=jnp.float32):
    """Plain-JAX NCHW reference. matmul_dtype=bf16 mirrors the kernel's MXU
    operand rounding (BN scale folded into the weight before the cast)."""

    def conv_bn(a, w, s, b):
        wf = (w * s[:, None, None, None]).astype(matmul_dtype)
        y = jax.lax.conv_general_dilated(
            a.astype(matmul_dtype), wf, (1, 1), ((1, 1), (1, 1)),
            dimension_numbers=("NCHW", "OIHW", "NCHW"),
            preferred_element_type=jnp.float32)
        return y + b[None, :, None, None]

    o = jnp.maximum(conv_bn(x, w1, s1, b1), 0.0)
    o = conv_bn(o, w2, s2, b2) + x
    return jnp.maximum(o, 0.0)


if __name__ == "__main__":
    N, C, H, W = 2, 4, 16, 16  # inplanes = planes = 4, stride = 1
    key = jax.random.PRNGKey(0)
    (k_x, k_w1, k_w2, k_g1, k_b1, k_g2, k_b2,
     k_m1, k_v1, k_m2, k_v2) = jax.random.split(key, 11)

    x = jax.random.normal(k_x, (N, C, H, W), dtype=jnp.float32)

    # Conv weights in PyTorch OIHW layout.
    w1_oihw = jax.random.normal(k_w1, (C, C, 3, 3), dtype=jnp.float32) * 0.1
    w2_oihw = jax.random.normal(k_w2, (C, C, 3, 3), dtype=jnp.float32) * 0.1

    # BatchNorm (eval mode) parameters / running stats, deterministic.
    gamma1 = 1.0 + 0.1 * jax.random.normal(k_g1, (C,), dtype=jnp.float32)
    beta1 = 0.1 * jax.random.normal(k_b1, (C,), dtype=jnp.float32)
    mean1 = 0.1 * jax.random.normal(k_m1, (C,), dtype=jnp.float32)
    var1 = 1.0 + 0.1 * jnp.abs(jax.random.normal(k_v1, (C,), dtype=jnp.float32))
    gamma2 = 1.0 + 0.1 * jax.random.normal(k_g2, (C,), dtype=jnp.float32)
    beta2 = 0.1 * jax.random.normal(k_b2, (C,), dtype=jnp.float32)
    mean2 = 0.1 * jax.random.normal(k_m2, (C,), dtype=jnp.float32)
    var2 = 1.0 + 0.1 * jnp.abs(jax.random.normal(k_v2, (C,), dtype=jnp.float32))

    scale1, shift1 = _fold_bn(gamma1, beta1, mean1, var1)
    scale2, shift2 = _fold_bn(gamma2, beta2, mean2, var2)

    params = prepare_params(w1_oihw, scale1, shift1, w2_oihw, scale2, shift2)

    out = jax.block_until_ready(basic_block_forward(x, params))
    assert out.shape == (N, C, H, W)

    # Tight check against a reference mirroring the kernel's bf16 MXU operands.
    ref_bf16 = _reference_forward(x, w1_oihw, scale1, shift1,
                                  w2_oihw, scale2, shift2,
                                  matmul_dtype=jnp.bfloat16)
    assert jnp.allclose(out, ref_bf16, atol=5e-3, rtol=5e-3), \
        "mismatch vs bf16-operand reference"

    # Loose check against the exact f32 module semantics (bf16 rounding only).
    ref_f32 = _reference_forward(x, w1_oihw, scale1, shift1,
                                 w2_oihw, scale2, shift2)
    assert jnp.allclose(out, ref_f32, atol=2e-2, rtol=2e-2), \
        "mismatch vs f32 reference"

    print("KERNEL_OK")
</pallas_src>

<mosaic_0001>
module attributes {stable_mosaic.version = 11 : i64} {
  func.func @_basic_block_kernel(%arg0: i32, %arg1: memref<2x16x16x128xf32, #tpu.memory_space<vmem>>, %arg2: memref<9x128x128xbf16, #tpu.memory_space<vmem>>, %arg3: memref<9x128x128xbf16, #tpu.memory_space<vmem>>, %arg4: memref<1x128xf32, #tpu.memory_space<vmem>>, %arg5: memref<1x128xf32, #tpu.memory_space<vmem>>, %arg6: memref<2x16x16x128xf32, #tpu.memory_space<vmem>>, %arg7: memref<2x18x18x128xf32, #tpu.memory_space<vmem>>) attributes {dimension_semantics = [#tpu.dimension_semantics<parallel>], iteration_bounds = array<i64: 1>, scalar_prefetch = 0 : i64, scratch_operands = 1 : i64, tpu.core_type = #tpu.core_type<tc>, window_params = [{transform_indices = @transform_0, window_bounds = array<i64: 2, 16, 16, 128>}, {pipeline_mode = #tpu.pipeline_mode<synchronous>, transform_indices = @transform_1, window_bounds = array<i64: 9, 128, 128>}, {pipeline_mode = #tpu.pipeline_mode<synchronous>, transform_indices = @transform_2, window_bounds = array<i64: 9, 128, 128>}, {pipeline_mode = #tpu.pipeline_mode<synchronous>, transform_indices = @transform_3, window_bounds = array<i64: 1, 128>}, {pipeline_mode = #tpu.pipeline_mode<synchronous>, transform_indices = @transform_4, window_bounds = array<i64: 1, 128>}, {transform_indices = @transform_5, window_bounds = array<i64: 2, 16, 16, 128>}]} {
    %cst = arith.constant 0.000000e+00 : f32
    %0 = vector.broadcast %cst : f32 to vector<2x1x18x128xf32>
    %c0 = arith.constant 0 : index
    %c0_0 = arith.constant 0 : index
    %c0_1 = arith.constant 0 : index
    %c0_2 = arith.constant 0 : index
    %1 = vector.load %arg7[%c0, %c0_0, %c0_1, %c0_2] : memref<2x18x18x128xf32, #tpu.memory_space<vmem>>, vector<2x1x18x128xf32>
    tpu.vector_store %arg7[%c0, %c0_0, %c0_1, %c0_2], %0 {strides = array<i32>} : memref<2x18x18x128xf32, #tpu.memory_space<vmem>>, vector<2x1x18x128xf32>,
    %c0_3 = arith.constant 0 : index
    %c17 = arith.constant 17 : index
    %c0_4 = arith.constant 0 : index
    %c0_5 = arith.constant 0 : index
    %2 = vector.load %arg7[%c0_3, %c17, %c0_4, %c0_5] : memref<2x18x18x128xf32, #tpu.memory_space<vmem>>, vector<2x1x18x128xf32>
    tpu.vector_store %arg7[%c0_3, %c17, %c0_4, %c0_5], %0 {strides = array<i32>} : memref<2x18x18x128xf32, #tpu.memory_space<vmem>>, vector<2x1x18x128xf32>,
    %cst_6 = arith.constant 0.000000e+00 : f32
    %3 = vector.broadcast %cst_6 : f32 to vector<2x18x1x128xf32>
    %c0_7 = arith.constant 0 : index
    %c0_8 = arith.constant 0 : index
    %c0_9 = arith.constant 0 : index
    %c0_10 = arith.constant 0 : index
    %4 = vector.load %arg7[%c0_7, %c0_8, %c0_9, %c0_10] : memref<2x18x18x128xf32, #tpu.memory_space<vmem>>, vector<2x18x1x128xf32>
    tpu.vector_store %arg7[%c0_7, %c0_8, %c0_9, %c0_10], %3 {strides = array<i32>} : memref<2x18x18x128xf32, #tpu.memory_space<vmem>>, vector<2x18x1x128xf32>,
    %c0_11 = arith.constant 0 : index
    %c0_12 = arith.constant 0 : index
    %c17_13 = arith.constant 17 : index
    %c0_14 = arith.constant 0 : index
    %5 = vector.load %arg7[%c0_11, %c0_12, %c17_13, %c0_14] : memref<2x18x18x128xf32, #tpu.memory_space<vmem>>, vector<2x18x1x128xf32>
    tpu.vector_store %arg7[%c0_11, %c0_12, %c17_13, %c0_14], %3 {strides = array<i32>} : memref<2x18x18x128xf32, #tpu.memory_space<vmem>>, vector<2x18x1x128xf32>,
    %c0_15 = arith.constant 0 : index
    %c0_16 = arith.constant 0 : index
    %c0_17 = arith.constant 0 : index
    %c0_18 = arith.constant 0 : index
    %6 = vector.load %arg1[%c0_15, %c0_16, %c0_17, %c0_18] : memref<2x16x16x128xf32, #tpu.memory_space<vmem>>, vector<2x16x16x128xf32>
    %c0_19 = arith.constant 0 : index
    %c1 = arith.constant 1 : index
    %c1_20 = arith.constant 1 : index
    %c0_21 = arith.constant 0 : index
    %7 = vector.load %arg7[%c0_19, %c1, %c1_20, %c0_21] : memref<2x18x18x128xf32, #tpu.memory_space<vmem>>, vector<2x16x16x128xf32>
    tpu.vector_store %arg7[%c0_19, %c1, %c1_20, %c0_21], %6 {strides = array<i32>} : memref<2x18x18x128xf32, #tpu.memory_space<vmem>>, vector<2x16x16x128xf32>,
    %c0_22 = arith.constant 0 : index
    %c0_23 = arith.constant 0 : index
    %8 = vector.load %arg4[%c0_22, %c0_23] : memref<1x128xf32, #tpu.memory_space<vmem>>, vector<1x128xf32>
    %c0_24 = arith.constant 0 : index
    %c0_25 = arith.constant 0 : index
    %c0_26 = arith.constant 0 : index
    %c0_27 = arith.constant 0 : index
    %9 = vector.load %arg7[%c0_24, %c0_25, %c0_26, %c0_27] : memref<2x18x18x128xf32, #tpu.memory_space<vmem>>, vector<2x16x16x128xf32>
    %10 = vector.shape_cast %9 : vector<2x16x16x128xf32> to vector<512x128xf32>
    %11 = arith.truncf %10 : vector<512x128xf32> to vector<512x128xbf16>
    %c0_28 = arith.constant 0 : index
    %c0_29 = arith.constant 0 : index
    %c0_30 = arith.constant 0 : index
    %12 = vector.load %arg2[%c0_28, %c0_29, %c0_30] : memref<9x128x128xbf16, #tpu.memory_space<vmem>>, vector<1x128x128xbf16>
    %13 = vector.shape_cast %12 : vector<1x128x128xbf16> to vector<128x128xbf16>
    %cst_31 = arith.constant dense<0.000000e+00> : vector<512x128xf32>
    %14 = tpu.matmul %11, %13, %cst_31 {dimension_numbers = #tpu.dot_dimension_numbers<[1], [0], [0], [1], [0, 0, 1, 1], [], []>} : vector<512x128xbf16>, vector<128x128xbf16>, vector<512x128xf32> -> vector<512x128xf32>
    %15 = vector.broadcast %8 : vector<1x128xf32> to vector<512x128xf32>
    %16 = arith.addf %15, %14 : vector<512x128xf32>
    %c0_32 = arith.constant 0 : index
    %c0_33 = arith.constant 0 : index
    %c1_34 = arith.constant 1 : index
    %c0_35 = arith.constant 0 : index
    %17 = vector.load %arg7[%c0_32, %c0_33, %c1_34, %c0_35] : memref<2x18x18x128xf32, #tpu.memory_space<vmem>>, vector<2x16x16x128xf32>
    %18 = vector.shape_cast %17 : vector<2x16x16x128xf32> to vector<512x128xf32>
    %19 = arith.truncf %18 : vector<512x128xf32> to vector<512x128xbf16>
    %c1_36 = arith.constant 1 : index
    %c0_37 = arith.constant 0 : index
    %c0_38 = arith.constant 0 : index
    %20 = vector.load %arg2[%c1_36, %c0_37, %c0_38] : memref<9x128x128xbf16, #tpu.memory_space<vmem>>, vector<1x128x128xbf16>
    %21 = vector.shape_cast %20 : vector<1x128x128xbf16> to vector<128x128xbf16>
    %cst_39 = arith.constant dense<0.000000e+00> : vector<512x128xf32>
    %22 = tpu.matmul %19, %21, %cst_39 {dimension_numbers = #tpu.dot_dimension_numbers<[1], [0], [0], [1], [0, 0, 1, 1], [], []>} : vector<512x128xbf16>, vector<128x128xbf16>, vector<512x128xf32> -> vector<512x128xf32>
    %23 = arith.addf %16, %22 : vector<512x128xf32>
    %c0_40 = arith.constant 0 : index
    %c0_41 = arith.constant 0 : index
    %c2 = arith.constant 2 : index
    %c0_42 = arith.constant 0 : index
    %24 = vector.load %arg7[%c0_40, %c0_41, %c2, %c0_42] : memref<2x18x18x128xf32, #tpu.memory_space<vmem>>, vector<2x16x16x128xf32>
    %25 = vector.shape_cast %24 : vector<2x16x16x128xf32> to vector<512x128xf32>
    %26 = arith.truncf %25 : vector<512x128xf32> to vector<512x128xbf16>
    %c2_43 = arith.constant 2 : index
    %c0_44 = arith.constant 0 : index
    %c0_45 = arith.constant 0 : index
    %27 = vector.load %arg2[%c2_43, %c0_44, %c0_45] : memref<9x128x128xbf16, #tpu.memory_space<vmem>>, vector<1x128x128xbf16>
    %28 = vector.shape_cast %27 : vector<1x128x128xbf16> to vector<128x128xbf16>
    %cst_46 = arith.constant dense<0.000000e+00> : vector<512x128xf32>
    %29 = tpu.matmul %26, %28, %cst_46 {dimension_numbers = #tpu.dot_dimension_numbers<[1], [0], [0], [1], [0, 0, 1, 1], [], []>} : vector<512x128xbf16>, vector<128x128xbf16>, vector<512x128xf32> -> vector<512x128xf32>
    %30 = arith.addf %23, %29 : vector<512x128xf32>
    %c0_47 = arith.constant 0 : index
    %c1_48 = arith.constant 1 : index
    %c0_49 = arith.constant 0 : index
    %c0_50 = arith.constant 0 : index
    %31 = vector.load %arg7[%c0_47, %c1_48, %c0_49, %c0_50] : memref<2x18x18x128xf32, #tpu.memory_space<vmem>>, vector<2x16x16x128xf32>
    %32 = vector.shape_cast %31 : vector<2x16x16x128xf32> to vector<512x128xf32>
    %33 = arith.truncf %32 : vector<512x128xf32> to vector<512x128xbf16>
    %c3 = arith.constant 3 : index
    %c0_51 = arith.constant 0 : index
    %c0_52 = arith.constant 0 : index
    %34 = vector.load %arg2[%c3, %c0_51, %c0_52] : memref<9x128x128xbf16, #tpu.memory_space<vmem>>, vector<1x128x128xbf16>
    %35 = vector.shape_cast %34 : vector<1x128x128xbf16> to vector<128x128xbf16>
    %cst_53 = arith.constant dense<0.000000e+00> : vector<512x128xf32>
    %36 = tpu.matmul %33, %35, %cst_53 {dimension_numbers = #tpu.dot_dimension_numbers<[1], [0], [0], [1], [0, 0, 1, 1], [], []>} : vector<512x128xbf16>, vector<128x128xbf16>, vector<512x128xf32> -> vector<512x128xf32>
    %37 = arith.addf %30, %36 : vector<512x128xf32>
    %c0_54 = arith.constant 0 : index
    %c1_55 = arith.constant 1 : index
    %c1_56 = arith.constant 1 : index
    %c0_57 = arith.constant 0 : index
    %38 = vector.load %arg7[%c0_54, %c1_55, %c1_56, %c0_57] : memref<2x18x18x128xf32, #tpu.memory_space<vmem>>, vector<2x16x16x128xf32>
    %39 = vector.shape_cast %38 : vector<2x16x16x128xf32> to vector<512x128xf32>
    %40 = arith.truncf %39 : vector<512x128xf32> to vector<512x128xbf16>
    %c4 = arith.constant 4 : index
    %c0_58 = arith.constant 0 : index
    %c0_59 = arith.constant 0 : index
    %41 = vector.load %arg2[%c4, %c0_58, %c0_59] : memref<9x128x128xbf16, #tpu.memory_space<vmem>>, vector<1x128x128xbf16>
    %42 = vector.shape_cast %41 : vector<1x128x128xbf16> to vector<128x128xbf16>
    %cst_60 = arith.constant dense<0.000000e+00> : vector<512x128xf32>
    %43 = tpu.matmul %40, %42, %cst_60 {dimension_numbers = #tpu.dot_dimension_numbers<[1], [0], [0], [1], [0, 0, 1, 1], [], []>} : vector<512x128xbf16>, vector<128x128xbf16>, vector<512x128xf32> -> vector<512x128xf32>
    %44 = arith.addf %37, %43 : vector<512x128xf32>
    %c0_61 = arith.constant 0 : index
    %c1_62 = arith.constant 1 : index
    %c2_63 = arith.constant 2 : index
    %c0_64 = arith.constant 0 : index
    %45 = vector.load %arg7[%c0_61, %c1_62, %c2_63, %c0_64] : memref<2x18x18x128xf32, #tpu.memory_space<vmem>>, vector<2x16x16x128xf32>
    %46 = vector.shape_cast %45 : vector<2x16x16x128xf32> to vector<512x128xf32>
    %47 = arith.truncf %46 : vector<512x128xf32> to vector<512x128xbf16>
    %c5 = arith.constant 5 : index
    %c0_65 = arith.constant 0 : index
    %c0_66 = arith.constant 0 : index
    %48 = vector.load %arg2[%c5, %c0_65, %c0_66] : memref<9x128x128xbf16, #tpu.memory_space<vmem>>, vector<1x128x128xbf16>
    %49 = vector.shape_cast %48 : vector<1x128x128xbf16> to vector<128x128xbf16>
    %cst_67 = arith.constant dense<0.000000e+00> : vector<512x128xf32>
    %50 = tpu.matmul %47, %49, %cst_67 {dimension_numbers = #tpu.dot_dimension_numbers<[1], [0], [0], [1], [0, 0, 1, 1], [], []>} : vector<512x128xbf16>, vector<128x128xbf16>, vector<512x128xf32> -> vector<512x128xf32>
    %51 = arith.addf %44, %50 : vector<512x128xf32>
    %c0_68 = arith.constant 0 : index
    %c2_69 = arith.constant 2 : index
    %c0_70 = arith.constant 0 : index
    %c0_71 = arith.constant 0 : index
    %52 = vector.load %arg7[%c0_68, %c2_69, %c0_70, %c0_71] : memref<2x18x18x128xf32, #tpu.memory_space<vmem>>, vector<2x16x16x128xf32>
    %53 = vector.shape_cast %52 : vector<2x16x16x128xf32> to vector<512x128xf32>
    %54 = arith.truncf %53 : vector<512x128xf32> to vector<512x128xbf16>
    %c6 = arith.constant 6 : index
    %c0_72 = arith.constant 0 : index
    %c0_73 = arith.constant 0 : index
    %55 = vector.load %arg2[%c6, %c0_72, %c0_73] : memref<9x128x128xbf16, #tpu.memory_space<vmem>>, vector<1x128x128xbf16>
    %56 = vector.shape_cast %55 : vector<1x128x128xbf16> to vector<128x128xbf16>
    %cst_74 = arith.constant dense<0.000000e+00> : vector<512x128xf32>
    %57 = tpu.matmul %54, %56, %cst_74 {dimension_numbers = #tpu.dot_dimension_numbers<[1], [0], [0], [1], [0, 0, 1, 1], [], []>} : vector<512x128xbf16>, vector<128x128xbf16>, vector<512x128xf32> -> vector<512x128xf32>
    %58 = arith.addf %51, %57 : vector<512x128xf32>
    %c0_75 = arith.constant 0 : index
    %c2_76 = arith.constant 2 : index
    %c1_77 = arith.constant 1 : index
    %c0_78 = arith.constant 0 : index
    %59 = vector.load %arg7[%c0_75, %c2_76, %c1_77, %c0_78] : memref<2x18x18x128xf32, #tpu.memory_space<vmem>>, vector<2x16x16x128xf32>
    %60 = vector.shape_cast %59 : vector<2x16x16x128xf32> to vector<512x128xf32>
    %61 = arith.truncf %60 : vector<512x128xf32> to vector<512x128xbf16>
    %c7 = arith.constant 7 : index
    %c0_79 = arith.constant 0 : index
    %c0_80 = arith.constant 0 : index
    %62 = vector.load %arg2[%c7, %c0_79, %c0_80] : memref<9x128x128xbf16, #tpu.memory_space<vmem>>, vector<1x128x128xbf16>
    %63 = vector.shape_cast %62 : vector<1x128x128xbf16> to vector<128x128xbf16>
    %cst_81 = arith.constant dense<0.000000e+00> : vector<512x128xf32>
    %64 = tpu.matmul %61, %63, %cst_81 {dimension_numbers = #tpu.dot_dimension_numbers<[1], [0], [0], [1], [0, 0, 1, 1], [], []>} : vector<512x128xbf16>, vector<128x128xbf16>, vector<512x128xf32> -> vector<512x128xf32>
    %65 = arith.addf %58, %64 : vector<512x128xf32>
    %c0_82 = arith.constant 0 : index
    %c2_83 = arith.constant 2 : index
    %c2_84 = arith.constant 2 : index
    %c0_85 = arith.constant 0 : index
    %66 = vector.load %arg7[%c0_82, %c2_83, %c2_84, %c0_85] : memref<2x18x18x128xf32, #tpu.memory_space<vmem>>, vector<2x16x16x128xf32>
    %67 = vector.shape_cast %66 : vector<2x16x16x128xf32> to vector<512x128xf32>
    %68 = arith.truncf %67 : vector<512x128xf32> to vector<512x128xbf16>
    %c8 = arith.constant 8 : index
    %c0_86 = arith.constant 0 : index
    %c0_87 = arith.constant 0 : index
    %69 = vector.load %arg2[%c8, %c0_86, %c0_87] : memref<9x128x128xbf16, #tpu.memory_space<vmem>>, vector<1x128x128xbf16>
    %70 = vector.shape_cast %69 : vector<1x128x128xbf16> to vector<128x128xbf16>
    %cst_88 = arith.constant dense<0.000000e+00> : vector<512x128xf32>
    %71 = tpu.matmul %68, %70, %cst_88 {dimension_numbers = #tpu.dot_dimension_numbers<[1], [0], [0], [1], [0, 0, 1, 1], [], []>} : vector<512x128xbf16>, vector<128x128xbf16>, vector<512x128xf32> -> vector<512x128xf32>
    %72 = arith.addf %65, %71 : vector<512x128xf32>
    %cst_89 = arith.constant 0.000000e+00 : f32
    %73 = vector.broadcast %cst_89 : f32 to vector<512x128xf32>
    %74 = arith.maximumf %72, %73 : vector<512x128xf32>
    %75 = vector.shape_cast %74 : vector<512x128xf32> to vector<2x16x16x128xf32>
    %c0_90 = arith.constant 0 : index
    %c1_91 = arith.constant 1 : index
    %c1_92 = arith.constant 1 : index
    %c0_93 = arith.constant 0 : index
    %76 = vector.load %arg7[%c0_90, %c1_91, %c1_92, %c0_93] : memref<2x18x18x128xf32, #tpu.memory_space<vmem>>, vector<2x16x16x128xf32>
    tpu.vector_store %arg7[%c0_90, %c1_91, %c1_92, %c0_93], %75 {strides = array<i32>} : memref<2x18x18x128xf32, #tpu.memory_space<vmem>>, vector<2x16x16x128xf32>,
    %c0_94 = arith.constant 0 : index
    %c0_95 = arith.constant 0 : index
    %77 = vector.load %arg5[%c0_94, %c0_95] : memref<1x128xf32, #tpu.memory_space<vmem>>, vector<1x128xf32>
    %c0_96 = arith.constant 0 : index
    %c0_97 = arith.constant 0 : index
    %c0_98 = arith.constant 0 : index
    %c0_99 = arith.constant 0 : index
    %78 = vector.load %arg7[%c0_96, %c0_97, %c0_98, %c0_99] : memref<2x18x18x128xf32, #tpu.memory_space<vmem>>, vector<2x16x16x128xf32>
    %79 = vector.shape_cast %78 : vector<2x16x16x128xf32> to vector<512x128xf32>
    %80 = arith.truncf %79 : vector<512x128xf32> to vector<512x128xbf16>
    %c0_100 = arith.constant 0 : index
    %c0_101 = arith.constant 0 : index
    %c0_102 = arith.constant 0 : index
    %81 = vector.load %arg3[%c0_100, %c0_101, %c0_102] : memref<9x128x128xbf16, #tpu.memory_space<vmem>>, vector<1x128x128xbf16>
    %82 = vector.shape_cast %81 : vector<1x128x128xbf16> to vector<128x128xbf16>
    %cst_103 = arith.constant dense<0.000000e+00> : vector<512x128xf32>
    %83 = tpu.matmul %80, %82, %cst_103 {dimension_numbers = #tpu.dot_dimension_numbers<[1], [0], [0], [1], [0, 0, 1, 1], [], []>} : vector<512x128xbf16>, vector<128x128xbf16>, vector<512x128xf32> -> vector<512x128xf32>
    %84 = vector.broadcast %77 : vector<1x128xf32> to vector<512x128xf32>
    %85 = arith.addf %84, %83 : vector<512x128xf32>
    %c0_104 = arith.constant 0 : index
    %c0_105 = arith.constant 0 : index
    %c1_106 = arith.constant 1 : index
    %c0_107 = arith.constant 0 : index
    %86 = vector.load %arg7[%c0_104, %c0_105, %c1_106, %c0_107] : memref<2x18x18x128xf32, #tpu.memory_space<vmem>>, vector<2x16x16x128xf32>
    %87 = vector.shape_cast %86 : vector<2x16x16x128xf32> to vector<512x128xf32>
    %88 = arith.truncf %87 : vector<512x128xf32> to vector<512x128xbf16>
    %c1_108 = arith.constant 1 : index
    %c0_109 = arith.constant 0 : index
    %c0_110 = arith.constant 0 : index
    %89 = vector.load %arg3[%c1_108, %c0_109, %c0_110] : memref<9x128x128xbf16, #tpu.memory_space<vmem>>, vector<1x128x128xbf16>
    %90 = vector.shape_cast %89 : vector<1x128x128xbf16> to vector<128x128xbf16>
    %cst_111 = arith.constant dense<0.000000e+00> : vector<512x128xf32>
    %91 = tpu.matmul %88, %90, %cst_111 {dimension_numbers = #tpu.dot_dimension_numbers<[1], [0], [0], [1], [0, 0, 1, 1], [], []>} : vector<512x128xbf16>, vector<128x128xbf16>, vector<512x128xf32> -> vector<512x128xf32>
    %92 = arith.addf %85, %91 : vector<512x128xf32>
    %c0_112 = arith.constant 0 : index
    %c0_113 = arith.constant 0 : index
    %c2_114 = arith.constant 2 : index
    %c0_115 = arith.constant 0 : index
    %93 = vector.load %arg7[%c0_112, %c0_113, %c2_114, %c0_115] : memref<2x18x18x128xf32, #tpu.memory_space<vmem>>, vector<2x16x16x128xf32>
    %94 = vector.shape_cast %93 : vector<2x16x16x128xf32> to vector<512x128xf32>
    %95 = arith.truncf %94 : vector<512x128xf32> to vector<512x128xbf16>
    %c2_116 = arith.constant 2 : index
    %c0_117 = arith.constant 0 : index
    %c0_118 = arith.constant 0 : index
    %96 = vector.load %arg3[%c2_116, %c0_117, %c0_118] : memref<9x128x128xbf16, #tpu.memory_space<vmem>>, vector<1x128x128xbf16>
    %97 = vector.shape_cast %96 : vector<1x128x128xbf16> to vector<128x128xbf16>
    %cst_119 = arith.constant dense<0.000000e+00> : vector<512x128xf32>
    %98 = tpu.matmul %95, %97, %cst_119 {dimension_numbers = #tpu.dot_dimension_numbers<[1], [0], [0], [1], [0, 0, 1, 1], [], []>} : vector<512x128xbf16>, vector<128x128xbf16>, vector<512x128xf32> -> vector<512x128xf32>
    %99 = arith.addf %92, %98 : vector<512x128xf32>
    %c0_120 = arith.constant 0 : index
    %c1_121 = arith.constant 1 : index
    %c0_122 = arith.constant 0 : index
    %c0_123 = arith.constant 0 : index
    %100 = vector.load %arg7[%c0_120, %c1_121, %c0_122, %c0_123] : memref<2x18x18x128xf32, #tpu.memory_space<vmem>>, vector<2x16x16x128xf32>
    %101 = vector.shape_cast %100 : vector<2x16x16x128xf32> to vector<512x128xf32>
    %102 = arith.truncf %101 : vector<512x128xf32> to vector<512x128xbf16>
    %c3_124 = arith.constant 3 : index
    %c0_125 = arith.constant 0 : index
    %c0_126 = arith.constant 0 : index
    %103 = vector.load %arg3[%c3_124, %c0_125, %c0_126] : memref<9x128x128xbf16, #tpu.memory_space<vmem>>, vector<1x128x128xbf16>
    %104 = vector.shape_cast %103 : vector<1x128x128xbf16> to vector<128x128xbf16>
    %cst_127 = arith.constant dense<0.000000e+00> : vector<512x128xf32>
    %105 = tpu.matmul %102, %104, %cst_127 {dimension_numbers = #tpu.dot_dimension_numbers<[1], [0], [0], [1], [0, 0, 1, 1], [], []>} : vector<512x128xbf16>, vector<128x128xbf16>, vector<512x128xf32> -> vector<512x128xf32>
    %106 = arith.addf %99, %105 : vector<512x128xf32>
    %c0_128 = arith.constant 0 : index
    %c1_129 = arith.constant 1 : index
    %c1_130 = arith.constant 1 : index
    %c0_131 = arith.constant 0 : index
    %107 = vector.load %arg7[%c0_128, %c1_129, %c1_130, %c0_131] : memref<2x18x18x128xf32, #tpu.memory_space<vmem>>, vector<2x16x16x128xf32>
    %108 = vector.shape_cast %107 : vector<2x16x16x128xf32> to vector<512x128xf32>
    %109 = arith.truncf %108 : vector<512x128xf32> to vector<512x128xbf16>
    %c4_132 = arith.constant 4 : index
    %c0_133 = arith.constant 0 : index
    %c0_134 = arith.constant 0 : index
    %110 = vector.load %arg3[%c4_132, %c0_133, %c0_134] : memref<9x128x128xbf16, #tpu.memory_space<vmem>>, vector<1x128x128xbf16>
    %111 = vector.shape_cast %110 : vector<1x128x128xbf16> to vector<128x128xbf16>
    %cst_135 = arith.constant dense<0.000000e+00> : vector<512x128xf32>
    %112 = tpu.matmul %109, %111, %cst_135 {dimension_numbers = #tpu.dot_dimension_numbers<[1], [0], [0], [1], [0, 0, 1, 1], [], []>} : vector<512x128xbf16>, vector<128x128xbf16>, vector<512x128xf32> -> vector<512x128xf32>
    %113 = arith.addf %106, %112 : vector<512x128xf32>
    %c0_136 = arith.constant 0 : index
    %c1_137 = arith.constant 1 : index
    %c2_138 = arith.constant 2 : index
    %c0_139 = arith.constant 0 : index
    %114 = vector.load %arg7[%c0_136, %c1_137, %c2_138, %c0_139] : memref<2x18x18x128xf32, #tpu.memory_space<vmem>>, vector<2x16x16x128xf32>
    %115 = vector.shape_cast %114 : vector<2x16x16x128xf32> to vector<512x128xf32>
    %116 = arith.truncf %115 : vector<512x128xf32> to vector<512x128xbf16>
    %c5_140 = arith.constant 5 : index
    %c0_141 = arith.constant 0 : index
    %c0_142 = arith.constant 0 : index
    %117 = vector.load %arg3[%c5_140, %c0_141, %c0_142] : memref<9x128x128xbf16, #tpu.memory_space<vmem>>, vector<1x128x128xbf16>
    %118 = vector.shape_cast %117 : vector<1x128x128xbf16> to vector<128x128xbf16>
    %cst_143 = arith.constant dense<0.000000e+00> : vector<512x128xf32>
    %119 = tpu.matmul %116, %118, %cst_143 {dimension_numbers = #tpu.dot_dimension_numbers<[1], [0], [0], [1], [0, 0, 1, 1], [], []>} : vector<512x128xbf16>, vector<128x128xbf16>, vector<512x128xf32> -> vector<512x128xf32>
    %120 = arith.addf %113, %119 : vector<512x128xf32>
    %c0_144 = arith.constant 0 : index
    %c2_145 = arith.constant 2 : index
    %c0_146 = arith.constant 0 : index
    %c0_147 = arith.constant 0 : index
    %121 = vector.load %arg7[%c0_144, %c2_145, %c0_146, %c0_147] : memref<2x18x18x128xf32, #tpu.memory_space<vmem>>, vector<2x16x16x128xf32>
    %122 = vector.shape_cast %121 : vector<2x16x16x128xf32> to vector<512x128xf32>
    %123 = arith.truncf %122 : vector<512x128xf32> to vector<512x128xbf16>
    %c6_148 = arith.constant 6 : index
    %c0_149 = arith.constant 0 : index
    %c0_150 = arith.constant 0 : index
    %124 = vector.load %arg3[%c6_148, %c0_149, %c0_150] : memref<9x128x128xbf16, #tpu.memory_space<vmem>>, vector<1x128x128xbf16>
    %125 = vector.shape_cast %124 : vector<1x128x128xbf16> to vector<128x128xbf16>
    %cst_151 = arith.constant dense<0.000000e+00> : vector<512x128xf32>
    %126 = tpu.matmul %123, %125, %cst_151 {dimension_numbers = #tpu.dot_dimension_numbers<[1], [0], [0], [1], [0, 0, 1, 1], [], []>} : vector<512x128xbf16>, vector<128x128xbf16>, vector<512x128xf32> -> vector<512x128xf32>
    %127 = arith.addf %120, %126 : vector<512x128xf32>
    %c0_152 = arith.constant 0 : index
    %c2_153 = arith.constant 2 : index
    %c1_154 = arith.constant 1 : index
    %c0_155 = arith.constant 0 : index
    %128 = vector.load %arg7[%c0_152, %c2_153, %c1_154, %c0_155] : memref<2x18x18x128xf32, #tpu.memory_space<vmem>>, vector<2x16x16x128xf32>
    %129 = vector.shape_cast %128 : vector<2x16x16x128xf32> to vector<512x128xf32>
    %130 = arith.truncf %129 : vector<512x128xf32> to vector<512x128xbf16>
    %c7_156 = arith.constant 7 : index
    %c0_157 = arith.constant 0 : index
    %c0_158 = arith.constant 0 : index
    %131 = vector.load %arg3[%c7_156, %c0_157, %c0_158] : memref<9x128x128xbf16, #tpu.memory_space<vmem>>, vector<1x128x128xbf16>
    %132 = vector.shape_cast %131 : vector<1x128x128xbf16> to vector<128x128xbf16>
    %cst_159 = arith.constant dense<0.000000e+00> : vector<512x128xf32>
    %133 = tpu.matmul %130, %132, %cst_159 {dimension_numbers = #tpu.dot_dimension_numbers<[1], [0], [0], [1], [0, 0, 1, 1], [], []>} : vector<512x128xbf16>, vector<128x128xbf16>, vector<512x128xf32> -> vector<512x128xf32>
    %134 = arith.addf %127, %133 : vector<512x128xf32>
    %c0_160 = arith.constant 0 : index
    %c2_161 = arith.constant 2 : index
    %c2_162 = arith.constant 2 : index
    %c0_163 = arith.constant 0 : index
    %135 = vector.load %arg7[%c0_160, %c2_161, %c2_162, %c0_163] : memref<2x18x18x128xf32, #tpu.memory_space<vmem>>, vector<2x16x16x128xf32>
    %136 = vector.shape_cast %135 : vector<2x16x16x128xf32> to vector<512x128xf32>
    %137 = arith.truncf %136 : vector<512x128xf32> to vector<512x128xbf16>
    %c8_164 = arith.constant 8 : index
    %c0_165 = arith.constant 0 : index
    %c0_166 = arith.constant 0 : index
    %138 = vector.load %arg3[%c8_164, %c0_165, %c0_166] : memref<9x128x128xbf16, #tpu.memory_space<vmem>>, vector<1x128x128xbf16>
    %139 = vector.shape_cast %138 : vector<1x128x128xbf16> to vector<128x128xbf16>
    %cst_167 = arith.constant dense<0.000000e+00> : vector<512x128xf32>
    %140 = tpu.matmul %137, %139, %cst_167 {dimension_numbers = #tpu.dot_dimension_numbers<[1], [0], [0], [1], [0, 0, 1, 1], [], []>} : vector<512x128xbf16>, vector<128x128xbf16>, vector<512x128xf32> -> vector<512x128xf32>
    %141 = arith.addf %134, %140 : vector<512x128xf32>
    %142 = vector.shape_cast %141 : vector<512x128xf32> to vector<2x16x16x128xf32>
    %c0_168 = arith.constant 0 : index
    %c0_169 = arith.constant 0 : index
    %c0_170 = arith.constant 0 : index
    %c0_171 = arith.constant 0 : index
    %143 = vector.load %arg1[%c0_168, %c0_169, %c0_170, %c0_171] : memref<2x16x16x128xf32, #tpu.memory_space<vmem>>, vector<2x16x16x128xf32>
    %144 = arith.addf %142, %143 : vector<2x16x16x128xf32>
    %cst_172 = arith.constant 0.000000e+00 : f32
    %145 = vector.broadcast %cst_172 : f32 to vector<2x16x16x128xf32>
    %146 = arith.maximumf %144, %145 : vector<2x16x16x128xf32>
    %c0_173 = arith.constant 0 : index
    %c0_174 = arith.constant 0 : index
    %c0_175 = arith.constant 0 : index
    %c0_176 = arith.constant 0 : index
    %147 = vector.load %arg6[%c0_173, %c0_174, %c0_175, %c0_176] : memref<2x16x16x128xf32, #tpu.memory_space<vmem>>, vector<2x16x16x128xf32>
    tpu.vector_store %arg6[%c0_173, %c0_174, %c0_175, %c0_176], %146 {strides = array<i32>} : memref<2x16x16x128xf32, #tpu.memory_space<vmem>>, vector<2x16x16x128xf32>,
    return
  }
  func.func @transform_0(%arg0: i32) -> (i32, i32, i32, i32) {
    %c0_i32 = arith.constant 0 : i32
    %c0_i32_0 = arith.constant 0 : i32
    %c0_i32_1 = arith.constant 0 : i32
    %c0_i32_2 = arith.constant 0 : i32
    return %arg0, %c0_i32, %c0_i32_0, %c0_i32_1 : i32, i32, i32, i32
  }
  func.func @transform_1(%arg0: i32) -> (i32, i32, i32) {
    %c0_i32 = arith.constant 0 : i32
    %c0_i32_0 = arith.constant 0 : i32
    %c0_i32_1 = arith.constant 0 : i32
    %c0_i32_2 = arith.constant 0 : i32
    return %c0_i32, %c0_i32_0, %c0_i32_1 : i32, i32, i32
  }
  func.func @transform_2(%arg0: i32) -> (i32, i32, i32) {
    %c0_i32 = arith.constant 0 : i32
    %c0_i32_0 = arith.constant 0 : i32
    %c0_i32_1 = arith.constant 0 : i32
    %c0_i32_2 = arith.constant 0 : i32
    return %c0_i32, %c0_i32_0, %c0_i32_1 : i32, i32, i32
  }
  func.func @transform_3(%arg0: i32) -> (i32, i32) {
    %c0_i32 = arith.constant 0 : i32
    %c0_i32_0 = arith.constant 0 : i32
    %c0_i32_1 = arith.constant 0 : i32
    return %c0_i32, %c0_i32_0 : i32, i32
  }
  func.func @transform_4(%arg0: i32) -> (i32, i32) {
    %c0_i32 = arith.constant 0 : i32
    %c0_i32_0 = arith.constant 0 : i32
    %c0_i32_1 = arith.constant 0 : i32
    return %c0_i32, %c0_i32_0 : i32, i32
  }
  func.func @transform_5(%arg0: i32) -> (i32, i32, i32, i32) {
    %c0_i32 = arith.constant 0 : i32
    %c0_i32_0 = arith.constant 0 : i32
    %c0_i32_1 = arith.constant 0 : i32
    %c0_i32_2 = arith.constant 0 : i32
    return %arg0, %c0_i32, %c0_i32_0, %c0_i32_1 : i32, i32, i32, i32
  }
}

</mosaic_0001>

<bundles_post_ra>
// kernel: tpu_custom_call.1
= control target key start
LH: loop header
LB: loop body
LE: loop exit
PB: predicated region body
PF: predicated region fallthrough
CT: control target
= control target key end

     0   :  { %10 = vsyncpa [#allocation4], 0  ;;  %s15125_s0 = inlined_call_operand.hbm [shape: f32[2,16,16,128], index: 0, kind: input, shape index: {}]   ;;  %s15126_s1 = inlined_call_operand.hbm [shape: bf16[9,128,128], index: 1, kind: input, shape index: {}]   ;;  %s15127_s2 = inlined_call_operand.hbm [shape: bf16[9,128,128], index: 2, kind: input, shape index: {}]   ;;  %s15128_s3 = inlined_call_operand.vmem [shape: f32[1,128], index: 3, kind: input, shape index: {}]   ;;  %s15129_s4 = inlined_call_operand.vmem [shape: f32[1,128], index: 4, kind: input, shape index: {}]   ;;  %s15130_s5 = inlined_call_operand.hbm [shape: f32[2,16,16,128], index: 5, kind: output, shape index: {}]  }
   0x1   :  { %11 = vsyncpa [#allocation7], 0 }
   0x2   :  { %12 = vsyncpa [#allocation5], 0  ;;  %s13654_s18 = smov [#allocation6]   ;;  %s13560_s22 = scalar_lea.hbm %s15126_s1, 9216 }
   0x3   :  { %s30_s19 = sshll.u32 %s13654_s18, 4  ;;  %p13561_p0 = scmp.ne.s32.totalorder %s15126_s1, %s13560_s22  ;;  %s31_s19 = int_to_ptr.vmem [resolvable:$true] %s30_s19 }
   0x4   :  { %p13564_p1 = scmp.lt.u32.totalorder %s13560_s22, %s15126_s1 }
   0x6   :  { %p13566_p2 = pnand %p13564_p1, %p13561_p0 }
   0x8   :  { %13569 = shalt.err (!%p13566_p2)
}
   0x9   :  { %s13570_s27 = scalar_lea.vmem %s31_s19, 9216  ;;  %p13575_p4 = scmp.lt.s32.totalorder %s31_s19, %s31_s19 }
   0xa   :  { %p13571_p3 = scmp.ne.s32.totalorder %s31_s19, %s13570_s27  ;;  %p13576_p5 = scmp.lt.s32.totalorder %s13570_s27, %s13570_s27 }
   0xc   :  { %p13577_p6 = por %p13576_p5, %p13575_p4 }
   0xe   :  { %p13578_p7 = pnand %p13577_p6, %p13571_p3 }
  0x10   :  { %13581 = shalt.err (!%p13578_p7)
}
  0x11   :  { %s13655_s28 = smov 64   ;;  %s13656_s29 = smov 4  }
  0x12   :  { %36 = dma.hbm_to_vmem [thread:$0]  %s15126_s1, 9216, %s31_s19, [#allocation7], %s13655_s28, %s13655_s28, %s13656_s29  }
  0x13   :  { %s13657_s7 = smov [#allocation3]   ;;  %s13582_s11 = scalar_lea.hbm %s15125_s0, 8192 }
  0x14   :  { %s18_s8 = sshll.u32 %s13657_s7, 4  ;;  %p13583_p8 = scmp.ne.s32.totalorder %s15125_s0, %s13582_s11  ;;  %s19_s8 = int_to_ptr.vmem [resolvable:$true] %s18_s8 }
  0x15   :  { %p13586_p9 = scmp.lt.u32.totalorder %s13582_s11, %s15125_s0 }
  0x17   :  { %p13588_p10 = pnand %p13586_p9, %p13583_p8 }
  0x19   :  { %13591 = shalt.err (!%p13588_p10)
}
  0x1a   :  { %s13592_s16 = scalar_lea.vmem %s19_s8, 8192  ;;  %p13597_p12 = scmp.lt.s32.totalorder %s19_s8, %s19_s8 }
  0x1b   :  { %p13593_p11 = scmp.ne.s32.totalorder %s19_s8, %s13592_s16  ;;  %p13598_p13 = scmp.lt.s32.totalorder %s13592_s16, %s13592_s16 }
  0x1d   :  { %p13599_p0 = por %p13598_p13, %p13597_p12 }
  0x1f   :  { %p13600_p1 = pnand %p13599_p0, %p13593_p11 }
  0x21   :  { %13603 = shalt.err (!%p13600_p1)
}
  0x22   :  { %s13658_s1 = smov 128   ;;  %s13659_s17 = smov 8  }
  0x23   :  { %24 = dma.hbm_to_vmem [thread:$0]  %s15125_s0, 8192, %s19_s8, [#allocation4], %s13658_s1, %s13658_s1, %s13659_s17  }
  0x24   :  { %s13660_s20 = smov [#allocation8]   ;;  %s13604_s24 = scalar_lea.hbm %s15127_s2, 9216 }
  0x25   :  { %s42_s21 = sshll.u32 %s13660_s20, 4  ;;  %p13605_p2 = scmp.ne.s32.totalorder %s15127_s2, %s13604_s24  ;;  %s43_s21 = int_to_ptr.vmem [resolvable:$true] %s42_s21 }
  0x26   :  { %p13608_p3 = scmp.lt.u32.totalorder %s13604_s24, %s15127_s2 }
  0x28   :  { %p13610_p4 = pnand %p13608_p3, %p13605_p2 }
  0x2a   :  { %13613 = shalt.err (!%p13610_p4)
}
  0x2b   :  { %s13614_s6 = scalar_lea.vmem %s43_s21, 9216  ;;  %p13619_p6 = scmp.lt.s32.totalorder %s43_s21, %s43_s21 }
  0x2c   :  { %p13615_p5 = scmp.ne.s32.totalorder %s43_s21, %s13614_s6  ;;  %p13620_p7 = scmp.lt.s32.totalorder %s13614_s6, %s13614_s6 }
  0x2e   :  { %p13621_p8 = por %p13620_p7, %p13619_p6 }
  0x30   :  { %p13622_p9 = pnand %p13621_p8, %p13615_p5 }
  0x32   :  { %13625 = shalt.err (!%p13622_p9)
}
  0x33   :  { %48 = dma.hbm_to_vmem [thread:$0]  %s15127_s2, 9216, %s43_s21, [#allocation7], %s13655_s28, %s13655_s28, %s13656_s29  }
  0x34   :  { %13648 = dma.done.wait [#allocation4], 8192  }
  0x35   :  { %13649 = vsyncadd [#allocation4], 4294959104 }
  0x36   :  { %13650 = dma.done.wait [#allocation7], 18432  }
  0x37   :  { %13651 = vsyncadd [#allocation7], 4294948864  ;;  %v15131_v0 = vmov 0.0   ;;  %v13411_v1 = vld [vmem:[#allocation6] sm:$0xff]   ;;  %v13412_v2 = vld [vmem:[#allocation6 + $0x8] sm:$0xff]  }
  0x38   :  { %63 = vst [vmem:[#allocation2] sm:$0xff] %v15131_v0  ;;  %64 = vst [vmem:[#allocation2 + $0x8] sm:$0xff] %v15131_v0  ;;  %10810 = vmatprep.subr.bf16.mxu0 %v13411_v1  ;;  %v13413_v3 = vld [vmem:[#allocation6 + $0x10] sm:$0xff]   ;;  %v13414_v4 = vld [vmem:[#allocation6 + $0x18] sm:$0xff]  }
  0x39   :  { %65 = vst [vmem:[#allocation2 + $0x10] sm:$0x3] %v15131_v0  ;;  %66 = vst [vmem:[#allocation2 + $0x1b0] sm:$0xff] %v15131_v0  ;;  %10811 = vmatpush3.bf16.msra.mxu0 %v13411_v1  ;;  %v13822_v6 = vld [vmem:[#allocation3] sm:$0xff]  ;;  %v13824_v7 = vld [vmem:[#allocation3 + $0x8] sm:$0xff] }
  0x3a   :  { %67 = vst [vmem:[#allocation2 + $0x1b8] sm:$0xff] %v15131_v0  ;;  %68 = vst [vmem:[#allocation2 + $0x1c0] sm:$0x3] %v15131_v0  ;;  %10812 = vmatprep.subr.bf16.mxu0 %v13412_v2  ;;  %v13415_v9 = vld [vmem:[#allocation6 + $0x20] sm:$0xff]   ;;  %v13829_v10 = vld [vmem:[#allocation3 + $0x10] sm:$0xff] }
  0x3b   :  { %70 = vst [vmem:[#allocation2 + $0x198] sm:$0xff] %v15131_v0  ;;  %71 = vst [vmem:[#allocation2 + $0x1a0] sm:$0xff] %v15131_v0  ;;  %v13831_v11 = vld [vmem:[#allocation3 + $0x18] sm:$0xff]  ;;  %v13833_v12 = vld [vmem:[#allocation3 + $0x20] sm:$0xff] }
  0x3c   :  { %72 = vst [vmem:[#allocation2 + $0x1a8] sm:$0x3] %v15131_v0  ;;  %73 = vst [vmem:[#allocation2 + $0x348] sm:$0xff] %v15131_v0  ;;  %v13837_v13 = vld [vmem:[#allocation3 + $0x28] sm:$0xff]  ;;  %v13840_v14 = vld [vmem:[#allocation3 + $0x30] sm:$0xff] }
  0x3d   :  { %74 = vst [vmem:[#allocation2 + $0x350] sm:$0xff] %v15131_v0  ;;  %75 = vst [vmem:[#allocation2 + $0x358] sm:$0x3] %v15131_v0  ;;  %10813 = vmatpush3.bf16.msra.mxu0 %v13412_v2  ;;  %v13842_v15 = vld [vmem:[#allocation3 + $0x38] sm:$0xff]  ;;  %v13847_v16 = vld [vmem:[#allocation3 + $0x40] sm:$0xff] }
  0x3e   :  { %77 = vst [vmem:[#allocation2 + $0x18] sm:$0x1] %v15131_v0  ;;  %78 = vst [vmem:[#allocation2 + $0x30] sm:$0x1] %v15131_v0  ;;  %10814 = vmatprep.subr.bf16.mxu0 %v13413_v3  ;;  %v13849_v17 = vld [vmem:[#allocation3 + $0x48] sm:$0xff]  ;;  %v13853_v18 = vld [vmem:[#allocation3 + $0x50] sm:$0xff] }
  0x3f   :  { %79 = vst [vmem:[#allocation2 + $0x48] sm:$0x1] %v15131_v0  ;;  %80 = vst [vmem:[#allocation2 + $0x60] sm:$0x1] %v15131_v0  ;;  %v13855_v19 = vld [vmem:[#allocation3 + $0x58] sm:$0xff]  ;;  %v13858_v20 = vld [vmem:[#allocation3 + $0x60] sm:$0xff] }
  0x40   :  { %81 = vst [vmem:[#allocation2 + $0x78] sm:$0x1] %v15131_v0  ;;  %82 = vst [vmem:[#allocation2 + $0x90] sm:$0x1] %v15131_v0  ;;  %v13860_v21 = vld [vmem:[#allocation3 + $0x68] sm:$0xff]  ;;  %v13865_v22 = vld [vmem:[#allocation3 + $0x70] sm:$0xff] }
  0x41   :  { %83 = vst [vmem:[#allocation2 + $0xa8] sm:$0x1] %v15131_v0  ;;  %84 = vst [vmem:[#allocation2 + $0xc0] sm:$0x1] %v15131_v0  ;;  %10815 = vmatpush3.bf16.msra.mxu0 %v13413_v3  ;;  %v13867_v23 = vld [vmem:[#allocation3 + $0x78] sm:$0xff]  ;;  %v13869_v24 = vld [vmem:[#allocation3 + $0x80] sm:$0xff] }
  0x42   :  { %85 = vst [vmem:[#allocation2 + $0xd8] sm:$0x1] %v15131_v0  ;;  %86 = vst [vmem:[#allocation2 + $0xf0] sm:$0x1] %v15131_v0  ;;  %10816 = vmatprep.subr.bf16.mxu0 %v13414_v4  ;;  %v13416_v25 = vld [vmem:[#allocation6 + $0x28] sm:$0xff]   ;;  %v13417_v27 = vld [vmem:[#allocation6 + $0x30] sm:$0xff]  }
  0x43   :  { %87 = vst [vmem:[#allocation2 + $0x108] sm:$0x1] %v15131_v0  ;;  %88 = vst [vmem:[#allocation2 + $0x120] sm:$0x1] %v15131_v0  ;;  %v13873_v26 = vld [vmem:[#allocation3 + $0x88] sm:$0xff]  ;;  %v13877_v28 = vld [vmem:[#allocation3 + $0x90] sm:$0xff] }
  0x44   :  { %89 = vst [vmem:[#allocation2 + $0x138] sm:$0x1] %v15131_v0  ;;  %90 = vst [vmem:[#allocation2 + $0x150] sm:$0x1] %v15131_v0  ;;  %v13879_v29 = vld [vmem:[#allocation3 + $0x98] sm:$0xff]  ;;  %v13882_v30 = vld [vmem:[#allocation3 + $0xa0] sm:$0xff] }
  0x45   :  { %91 = vst [vmem:[#allocation2 + $0x168] sm:$0x1] %v15131_v0  ;;  %92 = vst [vmem:[#allocation2 + $0x180] sm:$0x1] %v15131_v0  ;;  %10817 = vmatpush3.bf16.msra.mxu0 %v13414_v4  ;;  %v13418_v31 = vld [vmem:[#allocation6 + $0x38] sm:$0xff]   ;;  %v13886_v32 = vld [vmem:[#allocation3 + $0xa8] sm:$0xff] }
  0x46   :  { %95 = vst [vmem:[#allocation2 + $0x1c8] sm:$0x1] %v15131_v0  ;;  %96 = vst [vmem:[#allocation2 + $0x1e0] sm:$0x1] %v15131_v0  ;;  %10818 = vmatprep.subr.bf16.mxu0 %v13415_v9  ;;  %v13888_v33 = vld [vmem:[#allocation3 + $0xb0] sm:$0xff]  ;;  %v13891_v35 = vld [vmem:[#allocation3 + $0xb8] sm:$0xff] }
  0x47   :  { %97 = vst [vmem:[#allocation2 + $0x1f8] sm:$0x1] %v15131_v0  ;;  %98 = vst [vmem:[#allocation2 + $0x210] sm:$0x1] %v15131_v0  ;;  %v13894_v36 = vld [vmem:[#allocation3 + $0xc0] sm:$0xff]  ;;  %v13896_v37 = vld [vmem:[#allocation3 + $0xc8] sm:$0xff] }
  0x48   :  { %99 = vst [vmem:[#allocation2 + $0x228] sm:$0x1] %v15131_v0  ;;  %100 = vst [vmem:[#allocation2 + $0x240] sm:$0x1] %v15131_v0  ;;  %v13419_v39 = vld [vmem:[#allocation6 + $0x40] sm:$0xff]   ;;  %v13901_v40 = vld [vmem:[#allocation3 + $0xd0] sm:$0xff] }
  0x49   :  { %101 = vst [vmem:[#allocation2 + $0x258] sm:$0x1] %v15131_v0  ;;  %102 = vst [vmem:[#allocation2 + $0x270] sm:$0x1] %v15131_v0  ;;  %10819 = vmatpush3.bf16.msra.mxu0 %v13415_v9  ;;  %v13903_v41 = vld [vmem:[#allocation3 + $0xd8] sm:$0xff]  ;;  %v13905_v42 = vld [vmem:[#allocation3 + $0xe0] sm:$0xff] }
  0x4a   :  { %103 = vst [vmem:[#allocation2 + $0x288] sm:$0x1] %v15131_v0  ;;  %104 = vst [vmem:[#allocation2 + $0x2a0] sm:$0x1] %v15131_v0  ;;  %10820 = vmatprep.subr.bf16.mxu0 %v13416_v25  ;;  %v13911_v46 = vld [vmem:[#allocation3 + $0xe8] sm:$0xff]  ;;  %v13915_v47 = vld [vmem:[#allocation3 + $0x100] sm:$0xff] }
  0x4b   :  { %105 = vst [vmem:[#allocation2 + $0x2b8] sm:$0x1] %v15131_v0  ;;  %106 = vst [vmem:[#allocation2 + $0x2d0] sm:$0x1] %v15131_v0  ;;  %v13917_v49 = vld [vmem:[#allocation3 + $0x108] sm:$0xff]  ;;  %v182_v51 = vld [vmem:[#allocation3 + $0x110] sm:$0xff] }
  0x4c   :  { %107 = vst [vmem:[#allocation2 + $0x2e8] sm:$0x1] %v15131_v0  ;;  %108 = vst [vmem:[#allocation2 + $0x300] sm:$0x1] %v15131_v0  ;;  %v183_v52 = vld [vmem:[#allocation3 + $0x118] sm:$0xff]  ;;  %v13420_v53 = vld [vmem:[#allocation6 + $0x48] sm:$0xff]  }
  0x4d   :  { %109 = vst [vmem:[#allocation2 + $0x318] sm:$0x1] %v15131_v0  ;;  %110 = vst [vmem:[#allocation2 + $0x330] sm:$0x1] %v15131_v0  ;;  %10821 = vmatpush3.bf16.msra.mxu0 %v13416_v25  ;;  %v184_v54 = vld [vmem:[#allocation3 + $0x120] sm:$0xff]  ;;  %v13421_v55 = vld [vmem:[#allocation6 + $0x50] sm:$0xff]  }
  0x4e   :  { %113 = vst [vmem:[#allocation2 + $0x29] sm:$0x1] %v15131_v0  ;;  %114 = vst [vmem:[#allocation2 + $0x41] sm:$0x1] %v15131_v0  ;;  %10822 = vmatprep.subr.bf16.mxu0 %v13417_v27  ;;  %v13921_v56 = vld [vmem:[#allocation3 + $0x128] sm:$0xff]  ;;  %v13923_v57 = vld [vmem:[#allocation3 + $0x130] sm:$0xff] }
  0x4f   :  { %115 = vst [vmem:[#allocation2 + $0x59] sm:$0x1] %v15131_v0  ;;  %116 = vst [vmem:[#allocation2 + $0x71] sm:$0x1] %v15131_v0  ;;  %v13925_v58 = vld [vmem:[#allocation3 + $0x138] sm:$0xff]  ;;  %v13934_v2 = vld [vmem:[#allocation3 + $0x140] sm:$0xff] }
  0x50   :  { %117 = vst [vmem:[#allocation2 + $0x89] sm:$0x1] %v15131_v0  ;;  %118 = vst [vmem:[#allocation2 + $0xa1] sm:$0x1] %v15131_v0  ;;  %v13936_v3 = vld [vmem:[#allocation3 + $0x148] sm:$0xff]  ;;  %v13942_v9 = vld [vmem:[#allocation3 + $0x158] sm:$0xff] }
  0x51   :  { %119 = vst [vmem:[#allocation2 + $0xb9] sm:$0x1] %v15131_v0  ;;  %120 = vst [vmem:[#allocation2 + $0xd1] sm:$0x1] %v15131_v0  ;;  %10823 = vmatpush3.bf16.msra.mxu0 %v13417_v27  ;;  %v13422_v25 = vld [vmem:[#allocation6 + $0x58] sm:$0xff]   ;;  %v13946_v27 = vld [vmem:[#allocation3 + $0x160] sm:$0xff] }
  0x52   :  { %121 = vst [vmem:[#allocation2 + $0xe9] sm:$0x1] %v15131_v0  ;;  %122 = vst [vmem:[#allocation2 + $0x101] sm:$0x1] %v15131_v0  ;;  %10824 = vmatprep.subr.bf16.mxu0 %v13418_v31  ;;  %v13994_v43 = vld [vmem:[#allocation3 + $0x1d0] sm:$0xff] }
  0x53   :  { %123 = vst [vmem:[#allocation2 + $0x119] sm:$0x1] %v15131_v0  ;;  %124 = vst [vmem:[#allocation2 + $0x131] sm:$0x1] %v15131_v0 }
  0x54   :  { %125 = vst [vmem:[#allocation2 + $0x149] sm:$0x1] %v15131_v0  ;;  %126 = vst [vmem:[#allocation2 + $0x161] sm:$0x1] %v15131_v0 }
  0x55   :  { %127 = vst [vmem:[#allocation2 + $0x179] sm:$0x1] %v15131_v0  ;;  %128 = vst [vmem:[#allocation2 + $0x191] sm:$0x1] %v15131_v0  ;;  %10825 = vmatpush3.bf16.msra.mxu0 %v13418_v31  ;;  %v13948_v31 = vld [vmem:[#allocation3 + $0x168] sm:$0xff] }
  0x56   :  { %131 = vst [vmem:[#allocation2 + $0x1d9] sm:$0x1] %v15131_v0  ;;  %132 = vst [vmem:[#allocation2 + $0x1f1] sm:$0x1] %v15131_v0  ;;  %10890 = vmatprep.subr.bf16.mxu0 %v13419_v39 }
  0x57   :  { %133 = vst [vmem:[#allocation2 + $0x209] sm:$0x1] %v15131_v0  ;;  %134 = vst [vmem:[#allocation2 + $0x221] sm:$0x1] %v15131_v0 }
  0x58   :  { %135 = vst [vmem:[#allocation2 + $0x239] sm:$0x1] %v15131_v0  ;;  %136 = vst [vmem:[#allocation2 + $0x251] sm:$0x1] %v15131_v0 }
  0x59   :  { %137 = vst [vmem:[#allocation2 + $0x269] sm:$0x1] %v15131_v0  ;;  %138 = vst [vmem:[#allocation2 + $0x281] sm:$0x1] %v15131_v0 }
  0x5a   :  { %139 = vst [vmem:[#allocation2 + $0x299] sm:$0x1] %v15131_v0  ;;  %140 = vst [vmem:[#allocation2 + $0x2b1] sm:$0x1] %v15131_v0 }
  0x5b   :  { %141 = vst [vmem:[#allocation2 + $0x2c9] sm:$0x1] %v15131_v0  ;;  %142 = vst [vmem:[#allocation2 + $0x2e1] sm:$0x1] %v15131_v0 }
  0x5c   :  { %143 = vst [vmem:[#allocation2 + $0x2f9] sm:$0x1] %v15131_v0  ;;  %144 = vst [vmem:[#allocation2 + $0x311] sm:$0x1] %v15131_v0 }
  0x5d   :  { %145 = vst [vmem:[#allocation2 + $0x329] sm:$0x1] %v15131_v0  ;;  %146 = vst [vmem:[#allocation2 + $0x341] sm:$0x1] %v15131_v0 }
  0x5e   :  { %76 = vst [vmem:[#allocation2] sm:$0x1] %v15131_v0  ;;  %93 = vst [vmem:[#allocation2 + $0x198] sm:$0x1] %v15131_v0 }
  0x5f   :  { %94 = vst [vmem:[#allocation2 + $0x1b0] sm:$0x1] %v15131_v0  ;;  %111 = vst [vmem:[#allocation2 + $0x348] sm:$0x1] %v15131_v0 }
  0x60   :  { %112 = vst [vmem:[#allocation2 + $0x11] sm:$0x1] %v15131_v0  ;;  %129 = vst [vmem:[#allocation2 + $0x1a9] sm:$0x1] %v15131_v0 }
  0x61   :  { %130 = vst [vmem:[#allocation2 + $0x1c1] sm:$0x1] %v15131_v0  ;;  %147 = vst [vmem:[#allocation2 + $0x359] sm:$0x1] %v15131_v0 }
  0x62   :  { %213 = vst [vmem:[#allocation2 + $0x19] sm:$0xff] %v13822_v6  ;;  %214 = vst [vmem:[#allocation2 + $0x21] sm:$0xff] %v13824_v7 }
  0x63   :  { %215 = vst [vmem:[#allocation2 + $0x31] sm:$0xff] %v13829_v10  ;;  %216 = vst [vmem:[#allocation2 + $0x39] sm:$0xff] %v13831_v11 }
  0x64   :  { %217 = vst [vmem:[#allocation2 + $0x49] sm:$0xff] %v13833_v12  ;;  %218 = vst [vmem:[#allocation2 + $0x51] sm:$0xff] %v13837_v13 }
  0x65   :  { %v278_v5 = vld [vmem:[#allocation2] sm:$0xff]  ;;  %219 = vst [vmem:[#allocation2 + $0x61] sm:$0xff] %v13840_v14  ;;  %220 = vst [vmem:[#allocation2 + $0x69] sm:$0xff] %v13842_v15 }
  0x66   :  { %v342_v8 = vpack.c.bf16 %v15131_v0, %v278_v5  ;;  %221 = vst [vmem:[#allocation2 + $0x79] sm:$0xff] %v13847_v16  ;;  %222 = vst [vmem:[#allocation2 + $0x81] sm:$0xff] %v13849_v17  ;;  %v13940_v5 = vld [vmem:[#allocation3 + $0x150] sm:$0xff]  ;;  %v13996_v0 = vld [vmem:[#allocation3 + $0x1d8] sm:$0xff] }
  0x67   :  { %223 = vst [vmem:[#allocation2 + $0x91] sm:$0xff] %v13853_v18  ;;  %224 = vst [vmem:[#allocation2 + $0x99] sm:$0xff] %v13855_v19 }
  0x68   :  { %10826 = vmatprep.mubr.bf16.mxu0 %v342_v8  ;;  %225 = vst [vmem:[#allocation2 + $0xa9] sm:$0xff] %v13858_v20  ;;  %226 = vst [vmem:[#allocation2 + $0xb1] sm:$0xff] %v13860_v21 }
  0x69   :  { %227 = vst [vmem:[#allocation2 + $0xc1] sm:$0xff] %v13865_v22  ;;  %228 = vst [vmem:[#allocation2 + $0xc9] sm:$0xff] %v13867_v23  ;;  %v280_v34 = vld [vmem:[#allocation2 + $0x18] sm:$0xff]  ;;  %v281_v38 = vld [vmem:[#allocation2 + $0x20] sm:$0xff] }
  0x6a   :  { %229 = vst [vmem:[#allocation2 + $0xd9] sm:$0xff] %v13869_v24  ;;  %230 = vst [vmem:[#allocation2 + $0xe1] sm:$0xff] %v13873_v26  ;;  %v282_v44 = vld [vmem:[#allocation2 + $0x30] sm:$0xff]  ;;  %v283_v45 = vld [vmem:[#allocation2 + $0x38] sm:$0xff]  ;;  %v343_v48 = vpack.c.bf16 %v281_v38, %v280_v34 }
  0x6b   :  { %231 = vst [vmem:[#allocation2 + $0xf1] sm:$0xff] %v13877_v28  ;;  %232 = vst [vmem:[#allocation2 + $0xf9] sm:$0xff] %v13879_v29  ;;  %v344_v50 = vpack.c.bf16 %v283_v45, %v282_v44  ;;  %v284_v59 = vld [vmem:[#allocation2 + $0x48] sm:$0xff]  ;;  %v285_v60 = vld [vmem:[#allocation2 + $0x50] sm:$0xff] }
  0x6c   :  { %233 = vst [vmem:[#allocation2 + $0x109] sm:$0xff] %v13882_v30  ;;  %234 = vst [vmem:[#allocation2 + $0x111] sm:$0xff] %v13886_v32  ;;  %10827 = vmatmul.mubr.bf16.vlgmr.msra.gmra.mrb[0].mxu0 %v343_v48  ;;  %v286_v61 = vld [vmem:[#allocation2 + $0x60] sm:$0xff]  ;;  %v287_v1 = vld [vmem:[#allocation2 + $0x68] sm:$0xff]  ;;  %v345_v4 = vpack.c.bf16 %v285_v60, %v284_v59 }
  0x6d   :  { %235 = vst [vmem:[#allocation2 + $0x121] sm:$0xff] %v13888_v33  ;;  %236 = vst [vmem:[#allocation2 + $0x129] sm:$0xff] %v13891_v35  ;;  %10891 = vmatpush3.bf16.msra.mxu0 %v13419_v39  ;;  %10830 = vmatprep.mubr.bf16.mxu0 %v344_v50  ;;  %v346_v8 = vpack.c.bf16 %v287_v1, %v286_v61  ;;  %v13952_v34 = vld [vmem:[#allocation3 + $0x170] sm:$0xff]  ;;  %v13954_v38 = vld [vmem:[#allocation3 + $0x178] sm:$0xff] }
  0x6e   :  { %237 = vst [vmem:[#allocation2 + $0x139] sm:$0xff] %v13894_v36  ;;  %238 = vst [vmem:[#allocation2 + $0x141] sm:$0xff] %v13896_v37  ;;  %10892 = vmatprep.subr.bf16.mxu0 %v13420_v53  ;;  %v13956_v39 = vld [vmem:[#allocation3 + $0x180] sm:$0xff]  ;;  %v288_v44 = vld [vmem:[#allocation2 + $0x78] sm:$0xff] }
  0x6f   :  { %239 = vst [vmem:[#allocation2 + $0x151] sm:$0xff] %v13901_v40  ;;  %240 = vst [vmem:[#allocation2 + $0x159] sm:$0xff] %v13903_v41  ;;  %v289_v45 = vld [vmem:[#allocation2 + $0x80] sm:$0xff]  ;;  %v13963_v50 = vld [vmem:[#allocation3 + $0x188] sm:$0xff] }
  0x70   :  { %241 = vst [vmem:[#allocation2 + $0x169] sm:$0xff] %v13905_v42  ;;  %242 = vst [vmem:[#allocation2 + $0x171] sm:$0xff] %v13911_v46  ;;  %v13968_v59 = vld [vmem:[#allocation3 + $0x190] sm:$0xff]  ;;  %v13970_v60 = vld [vmem:[#allocation3 + $0x198] sm:$0xff]  ;;  %v347_v1 = vpack.c.bf16 %v289_v45, %v288_v44 }
  0x71   :  { %245 = vst [vmem:[#allocation2 + $0x1c9] sm:$0xff] %v13915_v47  ;;  %246 = vst [vmem:[#allocation2 + $0x1d1] sm:$0xff] %v13917_v49  ;;  %10893 = vmatpush3.bf16.msra.mxu0 %v13420_v53  ;;  %v291_v53 = vld [vmem:[#allocation2 + $0x98] sm:$0xff]  ;;  %v13972_v61 = vld [vmem:[#allocation3 + $0x1a0] sm:$0xff] }
  0x72   :  { %247 = vst [vmem:[#allocation2 + $0x1e1] sm:$0xff] %v182_v51  ;;  %248 = vst [vmem:[#allocation2 + $0x1e9] sm:$0xff] %v183_v52  ;;  %10894 = vmatprep.subr.bf16.mxu0 %v13421_v55  ;;  %v290_v52 = vld [vmem:[#allocation2 + $0x90] sm:$0xff]  ;;  %v13982_v51 = vld [vmem:[#allocation3 + $0x1b8] sm:$0xff] }
  0x73   :  { %249 = vst [vmem:[#allocation2 + $0x1f9] sm:$0xff] %v184_v54  ;;  %250 = vst [vmem:[#allocation2 + $0x201] sm:$0xff] %v13921_v56  ;;  %v13423_v54 = vld [vmem:[#allocation6 + $0x60] sm:$0xff]   ;;  %v13424_v44 = vld [vmem:[#allocation6 + $0x68] sm:$0xff]  }
  0x74   :  { %251 = vst [vmem:[#allocation2 + $0x211] sm:$0xff] %v13923_v57  ;;  %252 = vst [vmem:[#allocation2 + $0x219] sm:$0xff] %v13925_v58  ;;  %10831 = vmatmul.mubr.bf16.gmra.mrb[4].mxu0 %v345_v4  ;;  %v13979_v4 = vld [vmem:[#allocation3 + $0x1b0] sm:$0xff]  ;;  %v13985_v48 = vld [vmem:[#allocation3 + $0x1c0] sm:$0xff] }
  0x75   :  { %253 = vst [vmem:[#allocation2 + $0x229] sm:$0xff] %v13934_v2  ;;  %254 = vst [vmem:[#allocation2 + $0x231] sm:$0xff] %v13936_v3  ;;  %10834 = vmatprep.mubr.bf16.mxu0 %v346_v8  ;;  %10895 = vmatpush3.bf16.msra.mxu0 %v13421_v55  ;;  %v13976_v55 = vld [vmem:[#allocation3 + $0x1a8] sm:$0xff]  ;;  %v348_v8 = vpack.c.bf16 %v291_v53, %v290_v52  ;;  %v293_v62 = vld [vmem:[#allocation2 + $0xb0] sm:$0xff] }
  0x76   :  { %255 = vst [vmem:[#allocation2 + $0x241] sm:$0xff] %v13940_v5  ;;  %256 = vst [vmem:[#allocation2 + $0x249] sm:$0xff] %v13942_v9  ;;  %10896 = vmatprep.subr.bf16.mxu0 %v13422_v25  ;;  %v13988_v45 = vld [vmem:[#allocation3 + $0x1c8] sm:$0xff]  ;;  %v13426_v52 = vld [vmem:[#allocation6 + $0x78] sm:$0xff]  }
  0x77   :  { %257 = vst [vmem:[#allocation2 + $0x259] sm:$0xff] %v13946_v27  ;;  %258 = vst [vmem:[#allocation2 + $0x261] sm:$0xff] %v13948_v31  ;;  %v292_v63 = vld [vmem:[#allocation2 + $0xa8] sm:$0xff] }
  0x78   :  { %15206 = vst [vmem:[#allocation13_spill] sm:$0xff] %v13956_v39  ;;  %259 = vst [vmem:[#allocation2 + $0x271] sm:$0xff] %v13952_v34  ;;  %v295_v53 = vld [vmem:[#allocation2 + $0xc8] sm:$0xff] }
  0x79   :  { %260 = vst [vmem:[#allocation2 + $0x279] sm:$0xff] %v13954_v38  ;;  %261 = vst [vmem:[#allocation2 + $0x289] sm:$0xff] %v13956_v39  ;;  %10897 = vmatpush3.bf16.msra.mxu0 %v13422_v25  ;;  %v294_v25 = vld [vmem:[#allocation2 + $0xc0] sm:$0xff] }
  0x7a   :  { %15207 = vst [vmem:[#allocation14_spill] sm:$0xff] %v13963_v50  ;;  %262 = vst [vmem:[#allocation2 + $0x291] sm:$0xff] %v13963_v50  ;;  %10898 = vmatprep.subr.bf16.mxu0 %v13423_v54 }
  0x7b   :  { %15208 = vst [vmem:[#allocation15_spill] sm:$0xff] %v13968_v59  ;;  %15209 = vst [vmem:[#allocation16_spill] sm:$0xff] %v13970_v60 }
  0x7c   :  { %15210 = vst [vmem:[#allocation17_spill] sm:$0xff] %v13972_v61  ;;  %263 = vst [vmem:[#allocation2 + $0x2a1] sm:$0xff] %v13968_v59  ;;  %10835 = vmatmul.mubr.bf16.gmra.mrb[8].mxu0 %v347_v1  ;;  %v14002_v1 = vld [vmem:[#allocation3 + $0x1e0] sm:$0xff]  ;;  %v319_v59 = vld [vmem:[#allocation2 + $0x218] sm:$0xff] }
  0x7d   :  { %264 = vst [vmem:[#allocation2 + $0x2a9] sm:$0xff] %v13970_v60  ;;  %15211 = vst [vmem:[#allocation18_spill] sm:$0xff] %v13976_v55  ;;  %10838 = vmatprep.mubr.bf16.mxu0 %v348_v8  ;;  %10899 = vmatpush3.bf16.msra.mxu0 %v13423_v54  ;;  %v349_v54 = vpack.c.bf16 %v293_v62, %v292_v63  ;;  %v350_v8 = vpack.c.bf16 %v295_v53, %v294_v25  ;;  %v301_v25 = vld [vmem:[#allocation2 + $0x110] sm:$0xff]  ;;  %v302_v53 = vld [vmem:[#allocation2 + $0x120] sm:$0xff] }
  0x7e   :  { %265 = vst [vmem:[#allocation2 + $0x2b9] sm:$0xff] %v13972_v61  ;;  %15212 = vst [vmem:[#allocation19_spill] sm:$0xff] %v13979_v4  ;;  %10900 = vmatprep.subr.bf16.mxu0 %v13424_v44  ;;  %v304_v61 = vld [vmem:[#allocation2 + $0x138] sm:$0xff]  ;;  %v309_v60 = vld [vmem:[#allocation2 + $0x170] sm:$0xff] }
  0x7f   :  { %266 = vst [vmem:[#allocation2 + $0x2c1] sm:$0xff] %v13976_v55  ;;  %15213 = vst [vmem:[#allocation20_spill] sm:$0xff] %v13982_v51  ;;  %v324_v39 = vld [vmem:[#allocation2 + $0x258] sm:$0xff] }
  0x80   :  { %267 = vst [vmem:[#allocation2 + $0x2d1] sm:$0xff] %v13979_v4  ;;  %15214 = vst [vmem:[#allocation21_spill] sm:$0xff] %v13985_v48  ;;  %v298_v4 = vld [vmem:[#allocation2 + $0xf0] sm:$0xff] }
  0x81   :  { %268 = vst [vmem:[#allocation2 + $0x2d9] sm:$0xff] %v13982_v51  ;;  %15215 = vst [vmem:[#allocation22_spill] sm:$0xff] %v13988_v45  ;;  %10901 = vmatpush3.bf16.msra.mxu0 %v13424_v44  ;;  %v296_v51 = vld [vmem:[#allocation2 + $0xd8] sm:$0xff]  ;;  %v300_v44 = vld [vmem:[#allocation2 + $0x108] sm:$0xff] }
  0x82   :  { %269 = vst [vmem:[#allocation2 + $0x2e9] sm:$0xff] %v13985_v48  ;;  %270 = vst [vmem:[#allocation2 + $0x2f1] sm:$0xff] %v13988_v45  ;;  %v13425_v48 = vld [vmem:[#allocation6 + $0x70] sm:$0xff]   ;;  %v14004_v45 = vld [vmem:[#allocation3 + $0x1e8] sm:$0xff]  ;;  %v353_v55 = vpack.c.bf16 %v301_v25, %v300_v44 }
  0x83   :  { %15216 = vst [vmem:[#allocation23_spill] sm:$0xff] %v13994_v43  ;;  %15217 = vst [vmem:[#allocation24_spill] sm:$0xff] %v13996_v0  ;;  %10902 = vmatprep.subr.bf16.mxu0 %v13425_v48  ;;  %v317_v44 = vld [vmem:[#allocation2 + $0x200] sm:$0xff] }
  0x84   :  { %271 = vst [vmem:[#allocation2 + $0x301] sm:$0xff] %v13994_v43  ;;  %272 = vst [vmem:[#allocation2 + $0x309] sm:$0xff] %v13996_v0  ;;  %10839 = vmatmul.mubr.bf16.gmra.mrb[12].mxu0 %v349_v54  ;;  %v297_v0 = vld [vmem:[#allocation2 + $0xe0] sm:$0xff]  ;;  %v303_v54 = vld [vmem:[#allocation2 + $0x128] sm:$0xff] }
  0x85   :  { %15218 = vst [vmem:[#allocation25_spill] sm:$0xff] %v14002_v1  ;;  %15219 = vst [vmem:[#allocation26_spill] sm:$0xff] %v14004_v45  ;;  %10842 = vmatprep.mubr.bf16.mxu0 %v350_v8  ;;  %10903 = vmatpush3.bf16.msra.mxu0 %v13425_v48  ;;  %v351_v62 = vpack.c.bf16 %v297_v0, %v296_v51  ;;  %v354_v43 = vpack.c.bf16 %v303_v54, %v302_v53  ;;  %v305_v0 = vld [vmem:[#allocation2 + $0x140] sm:$0xff]  ;;  %v306_v51 = vld [vmem:[#allocation2 + $0x150] sm:$0xff]  ;;  %v15220_v53 = vmov 0.0  }
  0x86   :  { %273 = vst [vmem:[#allocation2 + $0x319] sm:$0xff] %v14002_v1  ;;  %274 = vst [vmem:[#allocation2 + $0x321] sm:$0xff] %v14004_v45  ;;  %v299_v1 = vld [vmem:[#allocation2 + $0xf8] sm:$0xff]  ;;  %10904 = vmatprep.subr.bf16.mxu0 %v13426_v52  ;;  %v14012_v45 = vld [vmem:[#allocation6 + $0x80] sm:$0xff]  }
  0x87   :  { %v352_v63 = vpack.c.bf16 %v299_v1, %v298_v4  ;;  %v307_v4 = vld [vmem:[#allocation2 + $0x158] sm:$0xff]  ;;  %v310_v8 = vld [vmem:[#allocation2 + $0x1b0] sm:$0xff]  ;;  %v314_v1 = vld [vmem:[#allocation2 + $0x1e0] sm:$0xff] }
  0x88   :  { %v356_v48 = vpack.c.bf16 %v307_v4, %v306_v51  ;;  %v358_v54 = vpack.c.bf16 %v15220_v53, %v310_v8  ;;  %v320_v8 = vld [vmem:[#allocation2 + $0x228] sm:$0xff]  ;;  %v321_v53 = vld [vmem:[#allocation2 + $0x230] sm:$0xff] }
  0x89   :  { %10905 = vmatpush3.bf16.msra.mxu0 %v13426_v52  ;;  %v313_v52 = vld [vmem:[#allocation2 + $0x1d0] sm:$0xff] }
  0x8a   :  { %10970 = vmatprep.subr.bf16.mxu0 %v14012_v45 }
  0x8c   :  { %10843 = vmatmul.mubr.bf16.gmra.mrb[16].mxu0 %v351_v62  ;;  %v355_v62 = vpack.c.bf16 %v305_v0, %v304_v61  ;;  %v315_v61 = vld [vmem:[#allocation2 + $0x1e8] sm:$0xff]  ;;  %v325_v0 = vld [vmem:[#allocation2 + $0x260] sm:$0xff] }
  0x8d   :  { %10846 = vmatprep.mubr.bf16.mxu0 %v352_v63  ;;  %v308_v63 = vld [vmem:[#allocation2 + $0x168] sm:$0xff]  ;;  %v360_v4 = vpack.c.bf16 %v315_v61, %v314_v1  ;;  %v327_v1 = vld [vmem:[#allocation2 + $0x278] sm:$0xff] }
  0x8e   :  { %v357_v25 = vpack.c.bf16 %v309_v60, %v308_v63 }
  0x94   :  { %10847 = vmatmul.mubr.bf16.gmra.mrb[20].mxu0 %v353_v55  ;;  %v323_v55 = vld [vmem:[#allocation2 + $0x248] sm:$0xff] }
  0x95   :  { %10850 = vmatprep.mubr.bf16.mxu0 %v354_v43  ;;  %v312_v43 = vld [vmem:[#allocation2 + $0x1c8] sm:$0xff] }
  0x96   :  { %v359_v51 = vpack.c.bf16 %v313_v52, %v312_v43  ;;  %v326_v52 = vld [vmem:[#allocation2 + $0x270] sm:$0xff]  ;;  %v365_v43 = vpack.c.bf16 %v325_v0, %v324_v39  ;;  %v338_v39 = vld [vmem:[#allocation2 + $0x300] sm:$0xff]  ;;  %v339_v0 = vld [vmem:[#allocation2 + $0x308] sm:$0xff] }
  0x97   :  { %v366_v61 = vpack.c.bf16 %v327_v1, %v326_v52  ;;  %v14032_v1 = vpack.c.bf16 %v339_v0, %v338_v39  ;;  %v1311_v0 = vld [vmem:[#allocation2 + $0x2] sm:$0xff] }
  0x9c   :  { %10851 = vmatmul.mubr.bf16.gmra.mrb[24].mxu0 %v355_v62  ;;  %v316_v62 = vld [vmem:[#allocation2 + $0x1f8] sm:$0xff] }
  0x9d   :  { %10854 = vmatprep.mubr.bf16.mxu0 %v356_v48  ;;  %v318_v48 = vld [vmem:[#allocation2 + $0x210] sm:$0xff]  ;;  %v361_v60 = vpack.c.bf16 %v317_v44, %v316_v62  ;;  %v331_v44 = vld [vmem:[#allocation2 + $0x2a8] sm:$0xff] }
  0x9e   :  { %v362_v63 = vpack.c.bf16 %v319_v59, %v318_v48  ;;  %v330_v59 = vld [vmem:[#allocation2 + $0x2a0] sm:$0xff] }
  0x9f   :  { %v368_v48 = vpack.c.bf16 %v331_v44, %v330_v59 }
  0xa4   :  { %10855 = vmatmul.mubr.bf16.gmra.mrb[28].mxu0 %v357_v25  ;;  %v322_v25 = vld [vmem:[#allocation2 + $0x240] sm:$0xff] }
  0xa5   :  { %10858 = vmatprep.mubr.bf16.mxu0 %v358_v54  ;;  %v363_v54 = vpack.c.bf16 %v321_v53, %v320_v8  ;;  %v364_v50 = vpack.c.bf16 %v323_v55, %v322_v25  ;;  %v334_v55 = vld [vmem:[#allocation2 + $0x2d0] sm:$0xff]  ;;  %v335_v8 = vld [vmem:[#allocation2 + $0x2d8] sm:$0xff] }
  0xa6   :  { %v370_v25 = vpack.c.bf16 %v335_v8, %v334_v55  ;;  %v13430_v55 = vld [vmem:[#allocation6 + $0x98] sm:$0xff]   ;;  %v15223_v8 = vpack.c.bf16 %v13837_v13, %v13833_v12  ;;  %v13433_v12 = vld [vmem:[#allocation6 + $0xb0] sm:$0xff]  }
  0xa7   :  { %v13434_v13 = vld [vmem:[#allocation6 + $0xb8] sm:$0xff]  }
  0xac   :  { %10859 = vmatmul.mubr.bf16.gmra.mrb[32].mxu0 %v359_v51  ;;  %v328_v51 = vld [vmem:[#allocation2 + $0x288] sm:$0xff] }
  0xad   :  { %10862 = vmatprep.mubr.bf16.mxu0 %v360_v4  ;;  %v329_v4 = vld [vmem:[#allocation2 + $0x290] sm:$0xff] }
  0xae   :  { %v367_v62 = vpack.c.bf16 %v329_v4, %v328_v51  ;;  %v797_v51 = vld [vmem:[#allocation2 + $0x1] sm:$0xff]  ;;  %v798_v4 = vld [vmem:[#allocation2 + $0x9] sm:$0xff] }
  0xaf   :  { %v861_v44 = vpack.c.bf16 %v798_v4, %v797_v51  ;;  %v15250_v51 = vld [vmem:[#allocation26_spill] sm:$0xff] }
  0xb4   :  { %10863 = vmatmul.mubr.bf16.gmra.mrb[36].mxu0 %v361_v60  ;;  %v332_v60 = vld [vmem:[#allocation2 + $0x2b8] sm:$0xff] }
  0xb5   :  { %10866 = vmatprep.mubr.bf16.mxu0 %v362_v63  ;;  %v333_v63 = vld [vmem:[#allocation2 + $0x2c0] sm:$0xff] }
  0xb6   :  { %v369_v53 = vpack.c.bf16 %v333_v63, %v332_v60  ;;  %v15222_v60 = vpack.c.bf16 %v13831_v11, %v13829_v10  ;;  %v13429_v63 = vld [vmem:[#allocation6 + $0x90] sm:$0xff]   ;;  %v15225_v10 = vpack.c.bf16 %v13849_v17, %v13847_v16  ;;  %v15226_v11 = vpack.c.bf16 %v13855_v19, %v13853_v18  ;;  %v13435_v16 = vld [vmem:[#allocation6 + $0xc0] sm:$0xff]  }
  0xb7   :  { %v15229_v17 = vpack.c.bf16 %v13873_v26, %v13869_v24  ;;  %v15230_v18 = vpack.c.bf16 %v13879_v29, %v13877_v28  ;;  %v15231_v19 = vpack.c.bf16 %v13886_v32, %v13882_v30  ;;  %v830_v24 = vld [vmem:[#allocation2 + $0x1b9] sm:$0xff]  ;;  %v15235_v28 = vpack.c.bf16 %v13911_v46, %v13905_v42  ;;  %v13555_v29 = vld [vmem:[#allocation2 + $0x1e1] sm:$0xff]  ;;  %v13556_v30 = vld [vmem:[#allocation2 + $0x1e9] sm:$0xff] }
  0xb8   :  { %v879_v32 = vpack.c.bf16 %v13556_v30, %v13555_v29  ;;  %v884_v42 = vpack.c.bf16 %v13948_v31, %v13946_v27  ;;  %v885_v46 = vpack.c.bf16 %v13954_v38, %v13952_v34  ;;  %v15245_v27 = vld [vmem:[#allocation21_spill] sm:$0xff]  ;;  %v15246_v31 = vld [vmem:[#allocation22_spill] sm:$0xff]  ;;  %v15247_v38 = vld [vmem:[#allocation23_spill] sm:$0xff] }
  0xb9   :  { %v890_v34 = vpack.c.bf16 %v15246_v31, %v15245_v27  ;;  %v1328_v29 = vld [vmem:[#allocation2 + $0xca] sm:$0xff] }
  0xba   :  { %v13441_v30 = vld [vmem:[#allocation6 + $0xf0] sm:$0xff]  }
  0xbb   :  { %v14156_v31 = vld [vmem:[#allocation3 + $0xf0] sm:$0xff] }
  0xbc   :  { %10867 = vmatmul.mubr.bf16.gmra.mrb[40].mxu0 %v363_v54  ;;  %v336_v54 = vld [vmem:[#allocation2 + $0x2e8] sm:$0xff]  ;;  %243 = vst [vmem:[#allocation2 + $0x181] sm:$0xff] %v14156_v31 }
  0xbd   :  { %10870 = vmatprep.mubr.bf16.mxu0 %v364_v50  ;;  %v337_v50 = vld [vmem:[#allocation2 + $0x2f0] sm:$0xff] }
  0xbe   :  { %v14030_v52 = vpack.c.bf16 %v337_v50, %v336_v54  ;;  %v15248_v50 = vld [vmem:[#allocation24_spill] sm:$0xff] }
  0xbf   :  { %v891_v39 = vpack.c.bf16 %v15248_v50, %v15247_v38  ;;  %v1341_v38 = vld [vmem:[#allocation2 + $0x16a] sm:$0xff]  ;;  %v1342_v50 = vld [vmem:[#allocation2 + $0x172] sm:$0xff] }
  0xc4   :  { %10871 = vmatmul.mubr.bf16.gmra.mrb[44].mxu0 %v365_v43  ;;  %v340_v43 = vld [vmem:[#allocation2 + $0x318] sm:$0xff] }
  0xc5   :  { %10874 = vmatprep.mubr.bf16.mxu0 %v366_v61  ;;  %v341_v61 = vld [vmem:[#allocation2 + $0x320] sm:$0xff] }
  0xc6   :  { %v14036_v59 = vpack.c.bf16 %v341_v61, %v340_v43  ;;  %v1312_v43 = vld [vmem:[#allocation2 + $0xa] sm:$0xff]  ;;  %v15249_v61 = vld [vmem:[#allocation25_spill] sm:$0xff] }
  0xc7   :  { %v892_v4 = vpack.c.bf16 %v15250_v51, %v15249_v61  ;;  %v1345_v51 = vld [vmem:[#allocation2 + $0x1ca] sm:$0xff] }
  0xcc   :  { %10875 = vmatmul.mubr.bf16.gmra.mrb[48].mxu0 %v367_v62  ;;  %v13428_v62 = vld [vmem:[#allocation6 + $0x88] sm:$0xff]  }
  0xcd   :  { %10878 = vmatprep.mubr.bf16.mxu0 %v368_v48  ;;  %v15221_v48 = vpack.c.bf16 %v13824_v7, %v13822_v6  ;;  %v13431_v6 = vld [vmem:[#allocation6 + $0xa0] sm:$0xff]   ;;  %v13432_v7 = vld [vmem:[#allocation6 + $0xa8] sm:$0xff]  }
  0xd4   :  { %10879 = vmatmul.mubr.bf16.gmra.mrb[52].mxu0 %v369_v53  ;;  %v15224_v53 = vpack.c.bf16 %v13842_v15, %v13840_v14  ;;  %v15227_v14 = vpack.c.bf16 %v13860_v21, %v13858_v20  ;;  %v15228_v15 = vpack.c.bf16 %v13867_v23, %v13865_v22  ;;  %v15232_v20 = vpack.c.bf16 %v13891_v35, %v13888_v33  ;;  %v829_v23 = vld [vmem:[#allocation2 + $0x1b1] sm:$0xff]  ;;  %v13557_v35 = vld [vmem:[#allocation2 + $0x1f9] sm:$0xff] }
  0xd5   :  { %10882 = vmatprep.mubr.bf16.mxu0 %v370_v25  ;;  %v15233_v21 = vpack.c.bf16 %v13896_v37, %v13894_v36  ;;  %v15234_v22 = vpack.c.bf16 %v13903_v41, %v13901_v40  ;;  %v877_v26 = vpack.c.bf16 %v830_v24, %v829_v23  ;;  %v15236_v33 = vpack.c.bf16 %v13917_v49, %v13915_v47  ;;  %v15237_v47 = vld [vmem:[#allocation13_spill] sm:$0xff]  ;;  %v15238_v49 = vld [vmem:[#allocation14_spill] sm:$0xff]  ;;  %v15244_v25 = vld [vmem:[#allocation20_spill] sm:$0xff] }
  0xd6   :  { %v880_v36 = vpack.c.bf16 %v13921_v56, %v13557_v35  ;;  %v881_v37 = vpack.c.bf16 %v13925_v58, %v13923_v57  ;;  %v882_v40 = vpack.c.bf16 %v13936_v3, %v13934_v2  ;;  %v883_v41 = vpack.c.bf16 %v13942_v9, %v13940_v5  ;;  %v15239_v57 = vld [vmem:[#allocation15_spill] sm:$0xff]  ;;  %v15240_v58 = vld [vmem:[#allocation16_spill] sm:$0xff]  ;;  %v15241_v2 = vld [vmem:[#allocation17_spill] sm:$0xff] }
  0xd7   :  { %v886_v56 = vpack.c.bf16 %v15238_v49, %v15237_v47  ;;  %v15242_v3 = vld [vmem:[#allocation18_spill] sm:$0xff]  ;;  %v15243_v9 = vld [vmem:[#allocation19_spill] sm:$0xff]  ;;  %v13442_v35 = vld [vmem:[#allocation6 + $0xf8] sm:$0xff]  }
  0xd8   :  { %v888_v5 = vpack.c.bf16 %v15242_v3, %v15241_v2  ;;  %v889_v54 = vpack.c.bf16 %v15244_v25, %v15243_v9  ;;  %v13440_v23 = vld [vmem:[#allocation6 + $0xe8] sm:$0xff]   ;;  %v1337_v3 = vld [vmem:[#allocation2 + $0x13a] sm:$0xff]  ;;  %v1339_v9 = vld [vmem:[#allocation2 + $0x152] sm:$0xff] }
  0xd9   :  { %v1325_v24 = vld [vmem:[#allocation2 + $0xaa] sm:$0xff]  ;;  %v1340_v25 = vld [vmem:[#allocation2 + $0x15a] sm:$0xff] }
  0xda   :  { %v1333_v49 = vld [vmem:[#allocation2 + $0x10a] sm:$0xff]  ;;  %v14154_v27 = vpack.c.bf16 %v1340_v25, %v1339_v9  ;;  %v1370_v25 = vld [vmem:[#allocation2 + $0x2f2] sm:$0xff] }
  0xdb   :  { %v1369_v9 = vld [vmem:[#allocation2 + $0x2ea] sm:$0xff] }
  0xdc   :  { %10883 = vmatmul.mubr.bf16.gmra.mrb[56].mxu0 %v14030_v52 }
  0xdd   :  { %10886 = vmatprep.mubr.bf16.mxu0 %v14032_v1 }
  0xe4   :  { %10887 = vmatmul.mubr.bf16.gmra.mrb[60].mxu0 %v14036_v59 }
  0xe5   :  { %10906 = vmatprep.mubr.bf16.mxu0 %v861_v44  ;;  %v1375_v44 = vpack.c.bf16 %v1312_v43, %v1311_v0  ;;  %v1344_v0 = vld [vmem:[#allocation2 + $0x1ba] sm:$0xff]  ;;  %v14164_v43 = vpack.c.bf16 %v1342_v50, %v1341_v38  ;;  %v1371_v38 = vld [vmem:[#allocation2 + $0x302] sm:$0xff]  ;;  %v1372_v50 = vld [vmem:[#allocation2 + $0x30a] sm:$0xff] }
  0xec   :  { %10907 = vmatmul.mubr.bf16.vlgmr.msra.gmra.mrb[0].mxu0 %v15221_v48  ;;  %v1314_v48 = vld [vmem:[#allocation2 + $0x22] sm:$0xff] }
  0xed   :  { %10971 = vmatpush3.bf16.msra.mxu0 %v14012_v45  ;;  %10910 = vmatprep.mubr.bf16.mxu0 %v15222_v60  ;;  %v887_v45 = vpack.c.bf16 %v15240_v58, %v15239_v57  ;;  %v1315_v60 = vld [vmem:[#allocation2 + $0x32] sm:$0xff]  ;;  %v1335_v57 = vld [vmem:[#allocation2 + $0x122] sm:$0xff]  ;;  %v1336_v58 = vld [vmem:[#allocation2 + $0x12a] sm:$0xff] }
  0xee   :  { %10972 = vmatprep.subr.bf16.mxu0 %v13428_v62  ;;  %v14148_v2 = vpack.c.bf16 %v1336_v58, %v1335_v57  ;;  %v1367_v57 = vld [vmem:[#allocation2 + $0x2d2] sm:$0xff]  ;;  %v1368_v58 = vld [vmem:[#allocation2 + $0x2da] sm:$0xff] }
  0xf1   :  { %10973 = vmatpush3.bf16.msra.mxu0 %v13428_v62  ;;  %v1313_v62 = vld [vmem:[#allocation2 + $0x1a] sm:$0xff] }
  0xf2   :  { %10974 = vmatprep.subr.bf16.mxu0 %v13429_v63 }
  0xf4   :  { %10911 = vmatmul.mubr.bf16.gmra.mrb[4].mxu0 %v15223_v8 }
  0xf5   :  { %10914 = vmatprep.mubr.bf16.mxu0 %v15224_v53  ;;  %10975 = vmatpush3.bf16.msra.mxu0 %v13429_v63  ;;  %v1316_v63 = vld [vmem:[#allocation2 + $0x3a] sm:$0xff]  ;;  %v13436_v53 = vld [vmem:[#allocation6 + $0xc8] sm:$0xff]  }
  0xf6   :  { %10976 = vmatprep.subr.bf16.mxu0 %v13430_v55  ;;  %v14115_v8 = vpack.c.bf16 %v1316_v63, %v1315_v60  ;;  %v1349_v63 = vld [vmem:[#allocation2 + $0x1fa] sm:$0xff] }
  0xf9   :  { %10977 = vmatpush3.bf16.msra.mxu0 %v13430_v55  ;;  %v14113_v55 = vpack.c.bf16 %v1314_v48, %v1313_v62  ;;  %v1348_v62 = vld [vmem:[#allocation2 + $0x1ea] sm:$0xff] }
  0xfa   :  { %10978 = vmatprep.subr.bf16.mxu0 %v13431_v6 }
  0xfc   :  { %10915 = vmatmul.mubr.bf16.gmra.mrb[8].mxu0 %v15225_v10  ;;  %v1319_v10 = vld [vmem:[#allocation2 + $0x62] sm:$0xff] }
  0xfd   :  { %10918 = vmatprep.mubr.bf16.mxu0 %v15226_v11  ;;  %10979 = vmatpush3.bf16.msra.mxu0 %v13431_v6  ;;  %v1317_v6 = vld [vmem:[#allocation2 + $0x4a] sm:$0xff] }
  0xfe   :  { %10980 = vmatprep.subr.bf16.mxu0 %v13432_v7  ;;  %v1320_v11 = vld [vmem:[#allocation2 + $0x6a] sm:$0xff] }
 0x101   :  { %10981 = vmatpush3.bf16.msra.mxu0 %v13432_v7  ;;  %v1318_v7 = vld [vmem:[#allocation2 + $0x52] sm:$0xff] }
 0x102   :  { %10982 = vmatprep.subr.bf16.mxu0 %v13433_v12 }
 0x104   :  { %10919 = vmatmul.mubr.bf16.gmra.mrb[12].mxu0 %v15227_v14  ;;  %v14121_v14 = vpack.c.bf16 %v1320_v11, %v1319_v10 }
 0x105   :  { %10922 = vmatprep.mubr.bf16.mxu0 %v15228_v15  ;;  %10983 = vmatpush3.bf16.msra.mxu0 %v13433_v12  ;;  %v13437_v12 = vld [vmem:[#allocation6 + $0xd0] sm:$0xff]   ;;  %v13438_v15 = vld [vmem:[#allocation6 + $0xd8] sm:$0xff]  }
 0x106   :  { %10984 = vmatprep.subr.bf16.mxu0 %v13434_v13 }
 0x109   :  { %10985 = vmatpush3.bf16.msra.mxu0 %v13434_v13  ;;  %v14119_v13 = vpack.c.bf16 %v1318_v7, %v1317_v6  ;;  %v1351_v6 = vld [vmem:[#allocation2 + $0x212] sm:$0xff]  ;;  %v1352_v7 = vld [vmem:[#allocation2 + $0x21a] sm:$0xff] }
 0x10a   :  { %11050 = vmatprep.subr.bf16.mxu0 %v13435_v16  ;;  %v14175_v11 = vpack.c.bf16 %v1352_v7, %v1351_v6  ;;  %v1827_v7 = vld [vmem:[#allocation2 + $0x30] sm:$0xff] }
 0x10c   :  { %10923 = vmatmul.mubr.bf16.gmra.mrb[16].mxu0 %v15229_v17  ;;  %v1322_v17 = vld [vmem:[#allocation2 + $0x82] sm:$0xff] }
 0x10d   :  { %10926 = vmatprep.mubr.bf16.mxu0 %v15230_v18  ;;  %v1323_v18 = vld [vmem:[#allocation2 + $0x92] sm:$0xff] }
 0x114   :  { %10927 = vmatmul.mubr.bf16.gmra.mrb[20].mxu0 %v15231_v19  ;;  %v1324_v19 = vld [vmem:[#allocation2 + $0x9a] sm:$0xff] }
 0x115   :  { %10930 = vmatprep.mubr.bf16.mxu0 %v15232_v20  ;;  %v13439_v20 = vld [vmem:[#allocation6 + $0xe0] sm:$0xff]  }
 0x11c   :  { %10931 = vmatmul.mubr.bf16.gmra.mrb[24].mxu0 %v15233_v21 }
 0x11d   :  { %10934 = vmatprep.mubr.bf16.mxu0 %v15234_v22  ;;  %v14127_v22 = vpack.c.bf16 %v1324_v19, %v1323_v18 }
 0x124   :  { %10935 = vmatmul.mubr.bf16.gmra.mrb[28].mxu0 %v15235_v28  ;;  %v1327_v28 = vld [vmem:[#allocation2 + $0xc2] sm:$0xff] }
 0x125   :  { %10938 = vmatprep.mubr.bf16.mxu0 %v877_v26  ;;  %v1326_v26 = vld [vmem:[#allocation2 + $0xb2] sm:$0xff] }
 0x12c   :  { %10939 = vmatmul.mubr.bf16.gmra.mrb[32].mxu0 %v15236_v33  ;;  %v14133_v33 = vpack.c.bf16 %v1328_v29, %v1327_v28 }
 0x12d   :  { %10942 = vmatprep.mubr.bf16.mxu0 %v879_v32  ;;  %v14131_v32 = vpack.c.bf16 %v1326_v26, %v1325_v24  ;;  %v1359_v24 = vld [vmem:[#allocation2 + $0x272] sm:$0xff]  ;;  %v1360_v26 = vld [vmem:[#allocation2 + $0x27a] sm:$0xff] }
 0x12e   :  { %v14187_v29 = vpack.c.bf16 %v1360_v26, %v1359_v24  ;;  %v1831_v24 = vld [vmem:[#allocation2 + $0x60] sm:$0xff]  ;;  %v1832_v26 = vld [vmem:[#allocation2 + $0x68] sm:$0xff] }
 0x134   :  { %10943 = vmatmul.mubr.bf16.gmra.mrb[36].mxu0 %v880_v36  ;;  %v1329_v36 = vld [vmem:[#allocation2 + $0xda] sm:$0xff] }
 0x135   :  { %10946 = vmatprep.mubr.bf16.mxu0 %v881_v37  ;;  %v1330_v37 = vld [vmem:[#allocation2 + $0xe2] sm:$0xff] }
 0x13c   :  { %10947 = vmatmul.mubr.bf16.gmra.mrb[40].mxu0 %v882_v40  ;;  %v1331_v40 = vld [vmem:[#allocation2 + $0xf2] sm:$0xff] }
 0x13d   :  { %10950 = vmatprep.mubr.bf16.mxu0 %v883_v41  ;;  %v1332_v41 = vld [vmem:[#allocation2 + $0xfa] sm:$0xff] }
 0x13e   :  { %v14141_v47 = vpack.c.bf16 %v1332_v41, %v1331_v40 }
 0x144   :  { %10951 = vmatmul.mubr.bf16.gmra.mrb[44].mxu0 %v884_v42  ;;  %v14137_v42 = vld [vmem:[#allocation6 + $0x100] sm:$0xff]  }
 0x145   :  { %10954 = vmatprep.mubr.bf16.mxu0 %v885_v46  ;;  %v14139_v46 = vpack.c.bf16 %v1330_v37, %v1329_v36  ;;  %v1363_v36 = vld [vmem:[#allocation2 + $0x2a2] sm:$0xff]  ;;  %v1364_v37 = vld [vmem:[#allocation2 + $0x2aa] sm:$0xff] }
 0x146   :  { %v14193_v41 = vpack.c.bf16 %v1364_v37, %v1363_v36  ;;  %v13445_v36 = vld [vmem:[#allocation6 + $0x110] sm:$0xff]   ;;  %v14225_v37 = vpack.c.bf16 %v1832_v26, %v1831_v24  ;;  %v1844_v24 = vld [vmem:[#allocation2 + $0xf8] sm:$0xff]  ;;  %v1845_v26 = vld [vmem:[#allocation2 + $0x108] sm:$0xff] }
 0x14c   :  { %10955 = vmatmul.mubr.bf16.gmra.mrb[48].mxu0 %v886_v56  ;;  %v1334_v56 = vld [vmem:[#allocation2 + $0x112] sm:$0xff] }
 0x14d   :  { %10958 = vmatprep.mubr.bf16.mxu0 %v887_v45  ;;  %v14146_v45 = vpack.c.bf16 %v1334_v56, %v1333_v49  ;;  %v1365_v49 = vld [vmem:[#allocation2 + $0x2ba] sm:$0xff]  ;;  %v1366_v56 = vld [vmem:[#allocation2 + $0x2c2] sm:$0xff] }
 0x154   :  { %10959 = vmatmul.mubr.bf16.gmra.mrb[52].mxu0 %v888_v5  ;;  %v1338_v5 = vld [vmem:[#allocation2 + $0x142] sm:$0xff] }
 0x155   :  { %10962 = vmatprep.mubr.bf16.mxu0 %v889_v54  ;;  %v14152_v54 = vpack.c.bf16 %v1338_v5, %v1337_v3  ;;  %v14197_v3 = vpack.c.bf16 %v1366_v56, %v1365_v49  ;;  %v14199_v5 = vpack.c.bf16 %v1368_v58, %v1367_v57  ;;  %v13446_v56 = vld [vmem:[#allocation6 + $0x118] sm:$0xff]   ;;  %v1837_v58 = vld [vmem:[#allocation2 + $0xa8] sm:$0xff] }
 0x156   :  { %v1836_v57 = vld [vmem:[#allocation2 + $0x98] sm:$0xff] }
 0x15c   :  { %10963 = vmatmul.mubr.bf16.gmra.mrb[56].mxu0 %v890_v34  ;;  %v14158_v34 = vld [vmem:[#allocation3 + $0xf8] sm:$0xff] }
 0x15d   :  { %10966 = vmatprep.mubr.bf16.mxu0 %v891_v39  ;;  %244 = vst [vmem:[#allocation2 + $0x189] sm:$0xff] %v14158_v34  ;;  %v1343_v39 = vld [vmem:[#allocation2 + $0x1b2] sm:$0xff] }
 0x15e   :  { %v1391_v61 = vpack.c.bf16 %v1344_v0, %v1343_v39  ;;  %v14203_v39 = vpack.c.bf16 %v1370_v25, %v1369_v9  ;;  %v14205_v0 = vpack.c.bf16 %v1372_v50, %v1371_v38  ;;  %v1838_v9 = vld [vmem:[#allocation2 + $0xb0] sm:$0xff]  ;;  %v13447_v25 = vld [vmem:[#allocation6 + $0x120] sm:$0xff]  }
 0x15f   :  { %v14233_v50 = vpack.c.bf16 %v1838_v9, %v1837_v58  ;;  %v1849_v58 = vld [vmem:[#allocation2 + $0x138] sm:$0xff]  ;;  %v1850_v9 = vld [vmem:[#allocation2 + $0x140] sm:$0xff] }
 0x164   :  { %10967 = vmatmul.mubr.bf16.gmra.mrb[60].mxu0 %v892_v4  ;;  %v1346_v4 = vld [vmem:[#allocation2 + $0x1d2] sm:$0xff] }
 0x165   :  { %10986 = vmatprep.mubr.bf16.mxu0 %v1375_v44  ;;  %v1347_v44 = vld [vmem:[#allocation2 + $0x1e2] sm:$0xff]  ;;  %v14167_v48 = vpack.c.bf16 %v1346_v4, %v1345_v51  ;;  %v14209_v51 = vld [vmem:[#allocation3 + $0x1f8] sm:$0xff] }
 0x166   :  { %v14169_v60 = vpack.c.bf16 %v1348_v62, %v1347_v44  ;;  %276 = vst [vmem:[#allocation2 + $0x339] sm:$0xff] %v14209_v51  ;;  %v1373_v4 = vld [vmem:[#allocation2 + $0x31a] sm:$0xff]  ;;  %v1374_v44 = vld [vmem:[#allocation2 + $0x322] sm:$0xff] }
 0x167   :  { %v1825_v62 = vld [vmem:[#allocation2 + $0x18] sm:$0xff] }
 0x16c   :  { %10987 = vmatmul.mubr.bf16.vlgmr.msra.gmra.mrb[0].mxu0 %v14113_v55 }
 0x16d   :  { %11051 = vmatpush3.bf16.msra.mxu0 %v13435_v16  ;;  %10990 = vmatprep.mubr.bf16.mxu0 %v14115_v8  ;;  %v1321_v16 = vld [vmem:[#allocation2 + $0x7a] sm:$0xff] }
 0x16e   :  { %11052 = vmatprep.subr.bf16.mxu0 %v13436_v53  ;;  %v14125_v21 = vpack.c.bf16 %v1322_v17, %v1321_v16  ;;  %v1355_v16 = vld [vmem:[#allocation2 + $0x242] sm:$0xff]  ;;  %v1356_v17 = vld [vmem:[#allocation2 + $0x24a] sm:$0xff] }
 0x16f   :  { %v14181_v19 = vpack.c.bf16 %v1356_v17, %v1355_v16  ;;  %v1830_v16 = vld [vmem:[#allocation2 + $0x50] sm:$0xff] }
 0x171   :  { %11053 = vmatpush3.bf16.msra.mxu0 %v13436_v53  ;;  %v1350_v53 = vld [vmem:[#allocation2 + $0x202] sm:$0xff] }
 0x172   :  { %11054 = vmatprep.subr.bf16.mxu0 %v13437_v12  ;;  %v14173_v10 = vpack.c.bf16 %v1350_v53, %v1349_v63  ;;  %v1826_v63 = vld [vmem:[#allocation2 + $0x20] sm:$0xff]  ;;  %v14215_v53 = vpack.c.bf16 %v1374_v44, %v1373_v4  ;;  %v13448_v4 = vld [vmem:[#allocation6 + $0x128] sm:$0xff]  }
 0x173   :  { %v1889_v6 = vpack.c.bf16 %v1826_v63, %v1825_v62  ;;  %v1839_v44 = vld [vmem:[#allocation2 + $0xc0] sm:$0xff]  ;;  %v1840_v62 = vld [vmem:[#allocation2 + $0xc8] sm:$0xff]  ;;  %v1841_v63 = vld [vmem:[#allocation2 + $0xd8] sm:$0xff] }
 0x174   :  { %10991 = vmatmul.mubr.bf16.gmra.mrb[4].mxu0 %v14119_v13 }
 0x175   :  { %10994 = vmatprep.mubr.bf16.mxu0 %v14121_v14  ;;  %11055 = vmatpush3.bf16.msra.mxu0 %v13437_v12  ;;  %v1353_v12 = vld [vmem:[#allocation2 + $0x22a] sm:$0xff] }
 0x176   :  { %11056 = vmatprep.subr.bf16.mxu0 %v13438_v15 }
 0x179   :  { %11057 = vmatpush3.bf16.msra.mxu0 %v13438_v15  ;;  %v1354_v15 = vld [vmem:[#allocation2 + $0x232] sm:$0xff] }
 0x17a   :  { %11058 = vmatprep.subr.bf16.mxu0 %v13439_v20  ;;  %v14179_v18 = vpack.c.bf16 %v1354_v15, %v1353_v12  ;;  %v1828_v12 = vld [vmem:[#allocation2 + $0x38] sm:$0xff]  ;;  %v1829_v15 = vld [vmem:[#allocation2 + $0x48] sm:$0xff] }
 0x17b   :  { %v14218_v17 = vpack.c.bf16 %v1828_v12, %v1827_v7  ;;  %v13449_v7 = vld [vmem:[#allocation6 + $0x130] sm:$0xff]   ;;  %v14237_v12 = vpack.c.bf16 %v1840_v62, %v1839_v44  ;;  %v1852_v62 = vld [vmem:[#allocation2 + $0x158] sm:$0xff] }
 0x17c   :  { %10995 = vmatmul.mubr.bf16.gmra.mrb[8].mxu0 %v14125_v21  ;;  %v1851_v44 = vld [vmem:[#allocation2 + $0x150] sm:$0xff] }
 0x17d   :  { %10998 = vmatprep.mubr.bf16.mxu0 %v14127_v22  ;;  %11059 = vmatpush3.bf16.msra.mxu0 %v13439_v20  ;;  %v1357_v20 = vld [vmem:[#allocation2 + $0x25a] sm:$0xff] }
 0x17e   :  { %11060 = vmatprep.subr.bf16.mxu0 %v13440_v23 }
 0x181   :  { %11061 = vmatpush3.bf16.msra.mxu0 %v13440_v23  ;;  %v1358_v23 = vld [vmem:[#allocation2 + $0x262] sm:$0xff] }
 0x182   :  { %11062 = vmatprep.subr.bf16.mxu0 %v13441_v30  ;;  %v14185_v28 = vpack.c.bf16 %v1358_v23, %v1357_v20  ;;  %v14220_v20 = vpack.c.bf16 %v1830_v16, %v1829_v15  ;;  %v13444_v23 = vld [vmem:[#allocation6 + $0x108] sm:$0xff]   ;;  %v13450_v16 = vld [vmem:[#allocation6 + $0x138] sm:$0xff]  }
 0x184   :  { %10999 = vmatmul.mubr.bf16.gmra.mrb[12].mxu0 %v14131_v32 }
 0x185   :  { %11002 = vmatprep.mubr.bf16.mxu0 %v14133_v33  ;;  %11063 = vmatpush3.bf16.msra.mxu0 %v13441_v30  ;;  %v1361_v30 = vld [vmem:[#allocation2 + $0x28a] sm:$0xff] }
 0x186   :  { %11064 = vmatprep.subr.bf16.mxu0 %v13442_v35 }
 0x189   :  { %11065 = vmatpush3.bf16.msra.mxu0 %v13442_v35  ;;  %v1362_v35 = vld [vmem:[#allocation2 + $0x292] sm:$0xff] }
 0x18a   :  { %11130 = vmatprep.subr.bf16.mxu0 %v14137_v42  ;;  %v14191_v40 = vpack.c.bf16 %v1362_v35, %v1361_v30  ;;  %v1833_v30 = vld [vmem:[#allocation2 + $0x78] sm:$0xff]  ;;  %v1834_v35 = vld [vmem:[#allocation2 + $0x80] sm:$0xff] }
 0x18b   :  { %v14227_v49 = vpack.c.bf16 %v1834_v35, %v1833_v30  ;;  %v1846_v30 = vld [vmem:[#allocation2 + $0x110] sm:$0xff]  ;;  %v14243_v35 = vld [vmem:[#allocation6 + $0x140] sm:$0xff]  }
 0x18c   :  { %11003 = vmatmul.mubr.bf16.gmra.mrb[16].mxu0 %v14139_v46 }
 0x18d   :  { %11006 = vmatprep.mubr.bf16.mxu0 %v14141_v47 }
 0x194   :  { %11007 = vmatmul.mubr.bf16.gmra.mrb[20].mxu0 %v14146_v45 }
 0x195   :  { %11010 = vmatprep.mubr.bf16.mxu0 %v14148_v2 }
 0x19c   :  { %11011 = vmatmul.mubr.bf16.gmra.mrb[24].mxu0 %v14152_v54 }
 0x19d   :  { %11014 = vmatprep.mubr.bf16.mxu0 %v14154_v27 }
 0x1a4   :  { %11015 = vmatmul.mubr.bf16.gmra.mrb[28].mxu0 %v14164_v43 }
 0x1a5   :  { %11018 = vmatprep.mubr.bf16.mxu0 %v1391_v61  ;;  %v14207_v61 = vld [vmem:[#allocation3 + $0x1f0] sm:$0xff] }
 0x1a6   :  { %275 = vst [vmem:[#allocation2 + $0x331] sm:$0xff] %v14207_v61 }
 0x1ac   :  { %11019 = vmatmul.mubr.bf16.gmra.mrb[32].mxu0 %v14167_v48 }
 0x1ad   :  { %11022 = vmatprep.mubr.bf16.mxu0 %v14169_v60 }
 0x1b4   :  { %11023 = vmatmul.mubr.bf16.gmra.mrb[36].mxu0 %v14173_v10 }
 0x1b5   :  { %11026 = vmatprep.mubr.bf16.mxu0 %v14175_v11 }
 0x1bc   :  { %11027 = vmatmul.mubr.bf16.gmra.mrb[40].mxu0 %v14179_v18 }
 0x1bd   :  { %11030 = vmatprep.mubr.bf16.mxu0 %v14181_v19 }
 0x1c4   :  { %11031 = vmatmul.mubr.bf16.gmra.mrb[44].mxu0 %v14185_v28 }
 0x1c5   :  { %11034 = vmatprep.mubr.bf16.mxu0 %v14187_v29 }
 0x1cc   :  { %11035 = vmatmul.mubr.bf16.gmra.mrb[48].mxu0 %v14191_v40 }
 0x1cd   :  { %11038 = vmatprep.mubr.bf16.mxu0 %v14193_v41 }
 0x1d4   :  { %11039 = vmatmul.mubr.bf16.gmra.mrb[52].mxu0 %v14197_v3 }
 0x1d5   :  { %11042 = vmatprep.mubr.bf16.mxu0 %v14199_v5 }
 0x1dc   :  { %11043 = vmatmul.mubr.bf16.gmra.mrb[56].mxu0 %v14203_v39 }
 0x1dd   :  { %11046 = vmatprep.mubr.bf16.mxu0 %v14205_v0 }
 0x1e4   :  { %11047 = vmatmul.mubr.bf16.gmra.mrb[60].mxu0 %v14215_v53 }
 0x1e5   :  { %11066 = vmatprep.mubr.bf16.mxu0 %v1889_v6  ;;  %v1842_v6 = vld [vmem:[#allocation2 + $0xe0] sm:$0xff] }
 0x1e6   :  { %v14239_v15 = vpack.c.bf16 %v1842_v6, %v1841_v63  ;;  %v1853_v63 = vld [vmem:[#allocation2 + $0x168] sm:$0xff]  ;;  %v1854_v6 = vld [vmem:[#allocation2 + $0x170] sm:$0xff] }
 0x1ec   :  { %11067 = vmatmul.mubr.bf16.vlgmr.msra.gmra.mrb[0].mxu0 %v14218_v17 }
 0x1ed   :  { %11131 = vmatpush3.bf16.msra.mxu0 %v14137_v42  ;;  %11070 = vmatprep.mubr.bf16.mxu0 %v14220_v20  ;;  %v1835_v42 = vld [vmem:[#allocation2 + $0x90] sm:$0xff] }
 0x1ee   :  { %11132 = vmatprep.subr.bf16.mxu0 %v13444_v23  ;;  %v14231_v38 = vpack.c.bf16 %v1836_v57, %v1835_v42  ;;  %v1847_v42 = vld [vmem:[#allocation2 + $0x120] sm:$0xff]  ;;  %v1848_v57 = vld [vmem:[#allocation2 + $0x128] sm:$0xff] }
 0x1f1   :  { %11133 = vmatpush3.bf16.msra.mxu0 %v13444_v23  ;;  %v1843_v23 = vld [vmem:[#allocation2 + $0xf0] sm:$0xff] }
 0x1f2   :  { %11134 = vmatprep.subr.bf16.mxu0 %v13445_v36 }
 0x1f4   :  { %11071 = vmatmul.mubr.bf16.gmra.mrb[4].mxu0 %v14225_v37 }
 0x1f5   :  { %11074 = vmatprep.mubr.bf16.mxu0 %v14227_v49  ;;  %11135 = vmatpush3.bf16.msra.mxu0 %v13445_v36  ;;  %v14245_v36 = vpack.c.bf16 %v1844_v24, %v1843_v23  ;;  %v1855_v23 = vld [vmem:[#allocation2 + $0x180] sm:$0xff]  ;;  %v1856_v24 = vld [vmem:[#allocation2 + $0x188] sm:$0xff] }
 0x1f6   :  { %11136 = vmatprep.subr.bf16.mxu0 %v13446_v56 }
 0x1f9   :  { %11137 = vmatpush3.bf16.msra.mxu0 %v13446_v56  ;;  %v14247_v56 = vpack.c.bf16 %v1846_v30, %v1845_v26  ;;  %v1857_v26 = vld [vmem:[#allocation2 + $0x1c8] sm:$0xff]  ;;  %v1858_v30 = vld [vmem:[#allocation2 + $0x1d0] sm:$0xff] }
 0x1fa   :  { %11138 = vmatprep.subr.bf16.mxu0 %v13447_v25 }
 0x1fc   :  { %11075 = vmatmul.mubr.bf16.gmra.mrb[8].mxu0 %v14231_v38 }
 0x1fd   :  { %11078 = vmatprep.mubr.bf16.mxu0 %v14233_v50  ;;  %11139 = vmatpush3.bf16.msra.mxu0 %v13447_v25  ;;  %v14252_v25 = vpack.c.bf16 %v1848_v57, %v1847_v42  ;;  %v14264_v42 = vpack.c.bf16 %v1856_v24, %v1855_v23  ;;  %v1905_v57 = vpack.c.bf16 %v1858_v30, %v1857_v26  ;;  %v1865_v23 = vld [vmem:[#allocation2 + $0x228] sm:$0xff]  ;;  %v1866_v24 = vld [vmem:[#allocation2 + $0x230] sm:$0xff] }
 0x1fe   :  { %11140 = vmatprep.subr.bf16.mxu0 %v13448_v4  ;;  %v14275_v30 = vpack.c.bf16 %v1866_v24, %v1865_v23  ;;  %v1873_v23 = vld [vmem:[#allocation2 + $0x288] sm:$0xff]  ;;  %v1874_v24 = vld [vmem:[#allocation2 + $0x290] sm:$0xff] }
 0x200   :  { %15256 = vst [vmem:[#allocation18_spill] sm:$0xff] %v14275_v30 }
 0x201   :  { %11141 = vmatpush3.bf16.msra.mxu0 %v13448_v4  ;;  %v14254_v4 = vpack.c.bf16 %v1850_v9, %v1849_v58  ;;  %v1859_v58 = vld [vmem:[#allocation2 + $0x1e0] sm:$0xff]  ;;  %v1860_v9 = vld [vmem:[#allocation2 + $0x1e8] sm:$0xff] }
 0x202   :  { %11142 = vmatprep.subr.bf16.mxu0 %v13449_v7 }
 0x204   :  { %11079 = vmatmul.mubr.bf16.gmra.mrb[12].mxu0 %v14237_v12 }
 0x205   :  { %11082 = vmatprep.mubr.bf16.mxu0 %v14239_v15  ;;  %11143 = vmatpush3.bf16.msra.mxu0 %v13449_v7  ;;  %v14258_v7 = vpack.c.bf16 %v1852_v62, %v1851_v44  ;;  %v1861_v44 = vld [vmem:[#allocation2 + $0x1f8] sm:$0xff]  ;;  %v1862_v62 = vld [vmem:[#allocation2 + $0x200] sm:$0xff] }
 0x206   :  { %11144 = vmatprep.subr.bf16.mxu0 %v13450_v16 }
 0x207   :  { %15251 = vst [vmem:[#allocation13_spill] sm:$0xff] %v14258_v7 }
 0x209   :  { %11145 = vmatpush3.bf16.msra.mxu0 %v13450_v16  ;;  %v14260_v16 = vpack.c.bf16 %v1854_v6, %v1853_v63  ;;  %v14267_v63 = vpack.c.bf16 %v1860_v9, %v1859_v58  ;;  %v14269_v6 = vpack.c.bf16 %v1862_v62, %v1861_v44  ;;  %v1868_v58 = vld [vmem:[#allocation2 + $0x248] sm:$0xff]  ;;  %v1869_v9 = vld [vmem:[#allocation2 + $0x258] sm:$0xff]  ;;  %v1870_v44 = vld [vmem:[#allocation2 + $0x260] sm:$0xff] }
 0x20a   :  { %11210 = vmatprep.subr.bf16.mxu0 %v14243_v35 }
 0x20b   :  { %15252 = vst [vmem:[#allocation14_spill] sm:$0xff] %v14260_v16  ;;  %15253 = vst [vmem:[#allocation15_spill] sm:$0xff] %v14267_v63 }
 0x20c   :  { %11083 = vmatmul.mubr.bf16.gmra.mrb[16].mxu0 %v14245_v36  ;;  %15254 = vst [vmem:[#allocation16_spill] sm:$0xff] %v14269_v6 }
 0x20d   :  { %11086 = vmatprep.mubr.bf16.mxu0 %v14247_v56 }
 0x214   :  { %11087 = vmatmul.mubr.bf16.gmra.mrb[20].mxu0 %v14252_v25 }
 0x215   :  { %11090 = vmatprep.mubr.bf16.mxu0 %v14254_v4 }
 0x21c   :  { %11091 = vmatmul.mubr.bf16.gmra.mrb[24].mxu0 %v14258_v7  ;;  %v1864_v7 = vld [vmem:[#allocation2 + $0x218] sm:$0xff] }
 0x21d   :  { %11094 = vmatprep.mubr.bf16.mxu0 %v14260_v16  ;;  %v1863_v16 = vld [vmem:[#allocation2 + $0x210] sm:$0xff] }
 0x21e   :  { %v14273_v26 = vpack.c.bf16 %v1864_v7, %v1863_v16  ;;  %v1871_v7 = vld [vmem:[#allocation2 + $0x270] sm:$0xff]  ;;  %v1872_v16 = vld [vmem:[#allocation2 + $0x278] sm:$0xff] }
 0x220   :  { %15255 = vst [vmem:[#allocation17_spill] sm:$0xff] %v14273_v26 }
 0x224   :  { %11095 = vmatmul.mubr.bf16.gmra.mrb[28].mxu0 %v14264_v42 }
 0x225   :  { %11098 = vmatprep.mubr.bf16.mxu0 %v1905_v57  ;;  %v1867_v57 = vld [vmem:[#allocation2 + $0x240] sm:$0xff] }
 0x226   :  { %v14279_v62 = vpack.c.bf16 %v1868_v58, %v1867_v57  ;;  %v1875_v57 = vld [vmem:[#allocation2 + $0x2a0] sm:$0xff]  ;;  %v1876_v58 = vld [vmem:[#allocation2 + $0x2a8] sm:$0xff] }
 0x228   :  { %15257 = vst [vmem:[#allocation19_spill] sm:$0xff] %v14279_v62 }
 0x22c   :  { %11099 = vmatmul.mubr.bf16.gmra.mrb[32].mxu0 %v14267_v63  ;;  %v14281_v63 = vpack.c.bf16 %v1870_v44, %v1869_v9  ;;  %v1877_v9 = vld [vmem:[#allocation2 + $0x2b8] sm:$0xff]  ;;  %v1878_v44 = vld [vmem:[#allocation2 + $0x2c0] sm:$0xff] }
 0x22d   :  { %11102 = vmatprep.mubr.bf16.mxu0 %v14269_v6  ;;  %v14285_v6 = vpack.c.bf16 %v1872_v16, %v1871_v7  ;;  %v1879_v7 = vld [vmem:[#allocation2 + $0x2d0] sm:$0xff]  ;;  %v1880_v16 = vld [vmem:[#allocation2 + $0x2d8] sm:$0xff] }
 0x234   :  { %11103 = vmatmul.mubr.bf16.gmra.mrb[36].mxu0 %v14273_v26  ;;  %v14287_v26 = vpack.c.bf16 %v1874_v24, %v1873_v23  ;;  %v14297_v23 = vpack.c.bf16 %v1880_v16, %v1879_v7  ;;  %v1887_v24 = vld [vmem:[#allocation2 + $0x330] sm:$0xff]  ;;  %v2342_v16 = vld [vmem:[#allocation2 + $0x39] sm:$0xff] }
 0x235   :  { %11106 = vmatprep.mubr.bf16.mxu0 %v14275_v30  ;;  %v14291_v30 = vpack.c.bf16 %v1876_v58, %v1875_v57  ;;  %v1888_v57 = vld [vmem:[#allocation2 + $0x338] sm:$0xff] }
 0x236   :  { %15258 = vst [vmem:[#allocation20_spill] sm:$0xff] %v14287_v26  ;;  %15261 = vst [vmem:[#allocation23_spill] sm:$0xff] %v14297_v23  ;;  %v2339_v58 = vld [vmem:[#allocation2 + $0x19] sm:$0xff]  ;;  %v2341_v7 = vld [vmem:[#allocation2 + $0x31] sm:$0xff] }
 0x237   :  { %15259 = vst [vmem:[#allocation21_spill] sm:$0xff] %v14291_v30 }
 0x23c   :  { %11107 = vmatmul.mubr.bf16.gmra.mrb[40].mxu0 %v14279_v62  ;;  %v14293_v62 = vpack.c.bf16 %v1878_v44, %v1877_v9  ;;  %v2340_v9 = vld [vmem:[#allocation2 + $0x21] sm:$0xff]  ;;  %v14303_v44 = vpack.c.bf16 %v1888_v57, %v1887_v24  ;;  %v2346_v24 = vld [vmem:[#allocation2 + $0x69] sm:$0xff]  ;;  %v2347_v57 = vld [vmem:[#allocation2 + $0x79] sm:$0xff] }
 0x23d   :  { %11110 = vmatprep.mubr.bf16.mxu0 %v14281_v63 }
 0x23e   :  { %15260 = vst [vmem:[#allocation22_spill] sm:$0xff] %v14293_v62  ;;  %15262 = vst [vmem:[#allocation24_spill] sm:$0xff] %v14303_v44 }
 0x244   :  { %11111 = vmatmul.mubr.bf16.gmra.mrb[44].mxu0 %v14285_v6 }
 0x245   :  { %11114 = vmatprep.mubr.bf16.mxu0 %v14287_v26  ;;  %v14306_v26 = vpack.c.bf16 %v2342_v16, %v2341_v7  ;;  %v2351_v7 = vld [vmem:[#allocation2 + $0xa9] sm:$0xff]  ;;  %v2352_v16 = vld [vmem:[#allocation2 + $0xb1] sm:$0xff] }
 0x247   :  { %15263 = vst [vmem:[#allocation25_spill] sm:$0xff] %v14306_v26 }
 0x24c   :  { %11115 = vmatmul.mubr.bf16.gmra.mrb[48].mxu0 %v14291_v30  ;;  %v2403_v30 = vpack.c.bf16 %v2340_v9, %v2339_v58  ;;  %v2348_v58 = vld [vmem:[#allocation2 + $0x81] sm:$0xff] }
 0x24d   :  { %11118 = vmatprep.mubr.bf16.mxu0 %v14293_v62  ;;  %v2343_v62 = vld [vmem:[#allocation2 + $0x49] sm:$0xff] }
 0x254   :  { %11119 = vmatmul.mubr.bf16.gmra.mrb[52].mxu0 %v14297_v23  ;;  %v2344_v23 = vld [vmem:[#allocation2 + $0x51] sm:$0xff] }
 0x255   :  { %11122 = vmatprep.mubr.bf16.mxu0 %v14030_v52  ;;  %v14308_v52 = vpack.c.bf16 %v2344_v23, %v2343_v62  ;;  %v13454_v62 = vld [vmem:[#allocation6 + $0x158] sm:$0xff]  }
 0x256   :  { %v2350_v23 = vld [vmem:[#allocation2 + $0x99] sm:$0xff] }
 0x257   :  { %15264 = vst [vmem:[#allocation26_spill] sm:$0xff] %v14308_v52 }
 0x25c   :  { %11123 = vmatmul.mubr.bf16.gmra.mrb[56].mxu0 %v14032_v1  ;;  %v13452_v1 = vld [vmem:[#allocation6 + $0x148] sm:$0xff]  }
 0x25d   :  { %11126 = vmatprep.mubr.bf16.mxu0 %v14036_v59  ;;  %v2345_v59 = vld [vmem:[#allocation2 + $0x61] sm:$0xff] }
 0x25e   :  { %v14313_v9 = vpack.c.bf16 %v2346_v24, %v2345_v59  ;;  %v14321_v59 = vpack.c.bf16 %v2352_v16, %v2351_v7  ;;  %v2353_v24 = vld [vmem:[#allocation2 + $0xc1] sm:$0xff]  ;;  %v2358_v7 = vld [vmem:[#allocation2 + $0xf9] sm:$0xff]  ;;  %v2359_v16 = vld [vmem:[#allocation2 + $0x109] sm:$0xff] }
 0x260   :  { %15265 = vst [vmem:[#allocation27_spill] sm:$0xff] %v14313_v9  ;;  %15268 = vst [vmem:[#allocation30_spill] sm:$0xff] %v14321_v59 }
 0x264   :  { %11127 = vmatmul.mubr.bf16.gmra.mrb[60].mxu0 %v14303_v44  ;;  %v14315_v44 = vpack.c.bf16 %v2348_v58, %v2347_v57  ;;  %v2354_v57 = vld [vmem:[#allocation2 + $0xc9] sm:$0xff]  ;;  %v2355_v58 = vld [vmem:[#allocation2 + $0xd9] sm:$0xff] }
 0x265   :  { %11146 = vmatprep.mubr.bf16.mxu0 %v2403_v30  ;;  %v13453_v30 = vld [vmem:[#allocation6 + $0x150] sm:$0xff]  }
 0x266   :  { %15266 = vst [vmem:[#allocation28_spill] sm:$0xff] %v14315_v44 }
 0x26c   :  { %11147 = vmatmul.mubr.bf16.vlgmr.msra.gmra.mrb[0].mxu0 %v14306_v26 }
 0x26d   :  { %11211 = vmatpush3.bf16.msra.mxu0 %v14243_v35  ;;  %11150 = vmatprep.mubr.bf16.mxu0 %v14308_v52  ;;  %v2349_v35 = vld [vmem:[#allocation2 + $0x91] sm:$0xff]  ;;  %v13455_v52 = vld [vmem:[#allocation6 + $0x160] sm:$0xff]  }
 0x26e   :  { %11212 = vmatprep.subr.bf16.mxu0 %v13452_v1  ;;  %v14319_v26 = vpack.c.bf16 %v2350_v23, %v2349_v35  ;;  %v2357_v23 = vld [vmem:[#allocation2 + $0xf1] sm:$0xff] }
 0x270   :  { %15267 = vst [vmem:[#allocation29_spill] sm:$0xff] %v14319_v26 }
 0x271   :  { %11213 = vmatpush3.bf16.msra.mxu0 %v13452_v1  ;;  %v13456_v1 = vld [vmem:[#allocation6 + $0x168] sm:$0xff]  }
 0x272   :  { %11214 = vmatprep.subr.bf16.mxu0 %v13453_v30 }
 0x274   :  { %11151 = vmatmul.mubr.bf16.gmra.mrb[4].mxu0 %v14313_v9  ;;  %v14325_v9 = vpack.c.bf16 %v2354_v57, %v2353_v24  ;;  %v2362_v57 = vld [vmem:[#allocation2 + $0x129] sm:$0xff] }
 0x275   :  { %11154 = vmatprep.mubr.bf16.mxu0 %v14315_v44  ;;  %11215 = vmatpush3.bf16.msra.mxu0 %v13453_v30  ;;  %v2356_v30 = vld [vmem:[#allocation2 + $0xe1] sm:$0xff]  ;;  %v13457_v44 = vld [vmem:[#allocation6 + $0x170] sm:$0xff]  }
 0x276   :  { %11216 = vmatprep.subr.bf16.mxu0 %v13454_v62  ;;  %15269 = vst [vmem:[#allocation31_spill] sm:$0xff] %v14325_v9  ;;  %v14327_v35 = vpack.c.bf16 %v2356_v30, %v2355_v58  ;;  %v2363_v58 = vld [vmem:[#allocation2 + $0x139] sm:$0xff] }
 0x278   :  { %15270 = vst [vmem:[#allocation32_spill] sm:$0xff] %v14327_v35 }
 0x279   :  { %11217 = vmatpush3.bf16.msra.mxu0 %v13454_v62  ;;  %v13458_v62 = vld [vmem:[#allocation6 + $0x178] sm:$0xff]  }
 0x27a   :  { %11218 = vmatprep.subr.bf16.mxu0 %v13455_v52 }
 0x27c   :  { %11155 = vmatmul.mubr.bf16.gmra.mrb[8].mxu0 %v14319_v26  ;;  %v14333_v26 = vpack.c.bf16 %v2358_v7, %v2357_v23  ;;  %v2365_v23 = vld [vmem:[#allocation2 + $0x151] sm:$0xff]  ;;  %v2367_v7 = vld [vmem:[#allocation2 + $0x169] sm:$0xff] }
 0x27d   :  { %11158 = vmatprep.mubr.bf16.mxu0 %v14321_v59  ;;  %11219 = vmatpush3.bf16.msra.mxu0 %v13455_v52  ;;  %v2360_v52 = vld [vmem:[#allocation2 + $0x111] sm:$0xff]  ;;  %v14331_v59 = vld [vmem:[#allocation6 + $0x180] sm:$0xff]  }
 0x27e   :  { %11220 = vmatprep.subr.bf16.mxu0 %v13456_v1  ;;  %15271 = vst [vmem:[#allocation33_spill] sm:$0xff] %v14333_v26  ;;  %v14335_v24 = vpack.c.bf16 %v2360_v52, %v2359_v16  ;;  %v2368_v16 = vld [vmem:[#allocation2 + $0x171] sm:$0xff] }
 0x280   :  { %15272 = vst [vmem:[#allocation34_spill] sm:$0xff] %v14335_v24 }
 0x281   :  { %11221 = vmatpush3.bf16.msra.mxu0 %v13456_v1  ;;  %v2361_v1 = vld [vmem:[#allocation2 + $0x121] sm:$0xff] }
 0x282   :  { %11222 = vmatprep.subr.bf16.mxu0 %v13457_v44  ;;  %v14340_v30 = vpack.c.bf16 %v2362_v57, %v2361_v1  ;;  %v2371_v1 = vld [vmem:[#allocation2 + $0x1c9] sm:$0xff]  ;;  %v2372_v57 = vld [vmem:[#allocation2 + $0x1d1] sm:$0xff] }
 0x284   :  { %11159 = vmatmul.mubr.bf16.gmra.mrb[12].mxu0 %v14325_v9  ;;  %15273 = vst [vmem:[#allocation35_spill] sm:$0xff] %v14340_v30  ;;  %v2376_v9 = vld [vmem:[#allocation2 + $0x201] sm:$0xff] }
 0x285   :  { %11162 = vmatprep.mubr.bf16.mxu0 %v14327_v35  ;;  %11223 = vmatpush3.bf16.msra.mxu0 %v13457_v44  ;;  %v2364_v44 = vld [vmem:[#allocation2 + $0x141] sm:$0xff] }
 0x286   :  { %11224 = vmatprep.subr.bf16.mxu0 %v13458_v62  ;;  %v14342_v35 = vpack.c.bf16 %v2364_v44, %v2363_v58  ;;  %v2418_v58 = vpack.c.bf16 %v14158_v34, %v14156_v31  ;;  %v2419_v44 = vpack.c.bf16 %v2372_v57, %v2371_v1 }
 0x288   :  { %15274 = vst [vmem:[#allocation36_spill] sm:$0xff] %v14342_v35 }
 0x289   :  { %11225 = vmatpush3.bf16.msra.mxu0 %v13458_v62  ;;  %v2366_v62 = vld [vmem:[#allocation2 + $0x159] sm:$0xff] }
 0x28a   :  { %11290 = vmatprep.subr.bf16.mxu0 %v14331_v59  ;;  %v14346_v52 = vpack.c.bf16 %v2366_v62, %v2365_v23 }
 0x28c   :  { %11163 = vmatmul.mubr.bf16.gmra.mrb[16].mxu0 %v14333_v26  ;;  %15275 = vst [vmem:[#allocation37_spill] sm:$0xff] %v14346_v52  ;;  %v14348_v26 = vpack.c.bf16 %v2368_v16, %v2367_v7  ;;  %v2377_v7 = vld [vmem:[#allocation2 + $0x211] sm:$0xff]  ;;  %v2378_v16 = vld [vmem:[#allocation2 + $0x219] sm:$0xff] }
 0x28d   :  { %11166 = vmatprep.mubr.bf16.mxu0 %v14335_v24  ;;  %v2375_v24 = vld [vmem:[#allocation2 + $0x1f9] sm:$0xff]  ;;  %v14360_v31 = vpack.c.bf16 %v2378_v16, %v2377_v7 }
 0x28e   :  { %15276 = vst [vmem:[#allocation38_spill] sm:$0xff] %v14348_v26  ;;  %v14356_v62 = vpack.c.bf16 %v2376_v9, %v2375_v24  ;;  %v2383_v9 = vld [vmem:[#allocation2 + $0x259] sm:$0xff]  ;;  %v2384_v24 = vld [vmem:[#allocation2 + $0x261] sm:$0xff] }
 0x28f   :  { %v14368_v57 = vpack.c.bf16 %v2384_v24, %v2383_v9  ;;  %v2391_v9 = vld [vmem:[#allocation2 + $0x2b9] sm:$0xff]  ;;  %v2392_v24 = vld [vmem:[#allocation2 + $0x2c1] sm:$0xff] }
 0x291   :  { %15279 = vst [vmem:[#allocation41_spill] sm:$0xff] %v14368_v57 }
 0x294   :  { %11167 = vmatmul.mubr.bf16.gmra.mrb[20].mxu0 %v14340_v30  ;;  %v2374_v30 = vld [vmem:[#allocation2 + $0x1e9] sm:$0xff] }
 0x295   :  { %11170 = vmatprep.mubr.bf16.mxu0 %v14342_v35  ;;  %v2373_v35 = vld [vmem:[#allocation2 + $0x1e1] sm:$0xff] }
 0x296   :  { %v14354_v23 = vpack.c.bf16 %v2374_v30, %v2373_v35  ;;  %v2381_v35 = vld [vmem:[#allocation2 + $0x241] sm:$0xff]  ;;  %v2382_v30 = vld [vmem:[#allocation2 + $0x249] sm:$0xff] }
 0x297   :  { %v14366_v1 = vpack.c.bf16 %v2382_v30, %v2381_v35  ;;  %v2389_v35 = vld [vmem:[#allocation2 + $0x2a1] sm:$0xff]  ;;  %v2390_v30 = vld [vmem:[#allocation2 + $0x2a9] sm:$0xff] }
 0x299   :  { %15278 = vst [vmem:[#allocation40_spill] sm:$0xff] %v14366_v1 }
 0x29c   :  { %11171 = vmatmul.mubr.bf16.gmra.mrb[24].mxu0 %v14346_v52  ;;  %v2380_v52 = vld [vmem:[#allocation2 + $0x231] sm:$0xff] }
 0x29d   :  { %11174 = vmatprep.mubr.bf16.mxu0 %v14348_v26  ;;  %v2379_v26 = vld [vmem:[#allocation2 + $0x229] sm:$0xff] }
 0x29e   :  { %v14362_v34 = vpack.c.bf16 %v2380_v52, %v2379_v26  ;;  %v2387_v26 = vld [vmem:[#allocation2 + $0x289] sm:$0xff]  ;;  %v2388_v52 = vld [vmem:[#allocation2 + $0x291] sm:$0xff] }
 0x29f   :  { %v14374_v16 = vpack.c.bf16 %v2388_v52, %v2387_v26  ;;  %v2395_v26 = vld [vmem:[#allocation2 + $0x2e9] sm:$0xff]  ;;  %v2396_v52 = vld [vmem:[#allocation2 + $0x2f1] sm:$0xff] }
 0x2a0   :  { %15277 = vst [vmem:[#allocation39_spill] sm:$0xff] %v14362_v34 }
 0x2a1   :  { %15281 = vst [vmem:[#allocation43_spill] sm:$0xff] %v14374_v16 }
 0x2a4   :  { %11175 = vmatmul.mubr.bf16.gmra.mrb[28].mxu0 %v2418_v58  ;;  %v2385_v58 = vld [vmem:[#allocation2 + $0x271] sm:$0xff] }
 0x2a5   :  { %11178 = vmatprep.mubr.bf16.mxu0 %v2419_v44  ;;  %v2386_v44 = vld [vmem:[#allocation2 + $0x279] sm:$0xff] }
 0x2a6   :  { %v14372_v7 = vpack.c.bf16 %v2386_v44, %v2385_v58  ;;  %v2393_v58 = vld [vmem:[#allocation2 + $0x2d1] sm:$0xff]  ;;  %v2394_v44 = vld [vmem:[#allocation2 + $0x2d9] sm:$0xff] }
 0x2a8   :  { %15280 = vst [vmem:[#allocation42_spill] sm:$0xff] %v14372_v7 }
 0x2ac   :  { %11179 = vmatmul.mubr.bf16.gmra.mrb[32].mxu0 %v14354_v23 }
 0x2ad   :  { %11182 = vmatprep.mubr.bf16.mxu0 %v14356_v62 }
 0x2b4   :  { %11183 = vmatmul.mubr.bf16.gmra.mrb[36].mxu0 %v14360_v31 }
 0x2b5   :  { %11186 = vmatprep.mubr.bf16.mxu0 %v14362_v34  ;;  %v14378_v34 = vpack.c.bf16 %v2390_v30, %v2389_v35  ;;  %v2397_v35 = vld [vmem:[#allocation2 + $0x301] sm:$0xff]  ;;  %v2398_v30 = vld [vmem:[#allocation2 + $0x309] sm:$0xff] }
 0x2b7   :  { %15282 = vst [vmem:[#allocation44_spill] sm:$0xff] %v14378_v34 }
 0x2bc   :  { %11187 = vmatmul.mubr.bf16.gmra.mrb[40].mxu0 %v14366_v1  ;;  %v14380_v1 = vpack.c.bf16 %v2392_v24, %v2391_v9  ;;  %v2399_v9 = vld [vmem:[#allocation2 + $0x319] sm:$0xff]  ;;  %v2400_v24 = vld [vmem:[#allocation2 + $0x321] sm:$0xff] }
 0x2bd   :  { %11190 = vmatprep.mubr.bf16.mxu0 %v14368_v57  ;;  %v14384_v57 = vpack.c.bf16 %v2394_v44, %v2393_v58  ;;  %v2434_v58 = vpack.c.bf16 %v14209_v51, %v14207_v61  ;;  %v13460_v44 = vld [vmem:[#allocation6 + $0x188] sm:$0xff]   ;;  %v13463_v61 = vld [vmem:[#allocation6 + $0x1a0] sm:$0xff]  }
 0x2be   :  { %v15291_v51 = vld [vmem:[#allocation21_spill] sm:$0xff] }
 0x2c4   :  { %11191 = vmatmul.mubr.bf16.gmra.mrb[44].mxu0 %v14372_v7  ;;  %v14386_v7 = vpack.c.bf16 %v2396_v52, %v2395_v26  ;;  %v13461_v26 = vld [vmem:[#allocation6 + $0x190] sm:$0xff]   ;;  %v13462_v52 = vld [vmem:[#allocation6 + $0x198] sm:$0xff]  }
 0x2c5   :  { %11194 = vmatprep.mubr.bf16.mxu0 %v14374_v16  ;;  %v14390_v16 = vpack.c.bf16 %v2398_v30, %v2397_v35  ;;  %v15297_v35 = vld [vmem:[#allocation27_spill] sm:$0xff] }
 0x2c6   :  { %v13477_v30 = vld [vmem:[#allocation6 + $0x210] sm:$0xff]  }
 0x2cc   :  { %11195 = vmatmul.mubr.bf16.gmra.mrb[48].mxu0 %v14378_v34  ;;  %v14392_v34 = vpack.c.bf16 %v2400_v24, %v2399_v9  ;;  %v13478_v9 = vld [vmem:[#allocation6 + $0x218] sm:$0xff]  }
 0x2cd   :  { %11198 = vmatprep.mubr.bf16.mxu0 %v14380_v1  ;;  %v15298_v24 = vld [vmem:[#allocation28_spill] sm:$0xff] }
 0x2d4   :  { %11199 = vmatmul.mubr.bf16.gmra.mrb[52].mxu0 %v14384_v57 }
 0x2d5   :  { %11202 = vmatprep.mubr.bf16.mxu0 %v14386_v7 }
 0x2dc   :  { %11203 = vmatmul.mubr.bf16.gmra.mrb[56].mxu0 %v14390_v16 }
 0x2dd   :  { %11206 = vmatprep.mubr.bf16.mxu0 %v14392_v34 }
 0x2e4   :  { %11207 = vmatmul.mubr.bf16.gmra.mrb[60].mxu0 %v2434_v58  ;;  %v15299_v58 = vld [vmem:[#allocation29_spill] sm:$0xff] }
 0x2e5   :  { %11226 = vmatprep.mubr.bf16.mxu0 %v14113_v55  ;;  %v13464_v55 = vld [vmem:[#allocation6 + $0x1a8] sm:$0xff]  }
 0x2ec   :  { %11227 = vmatmul.mubr.bf16.vlgmr.msra.gmra.mrb[0].mxu0 %v14115_v8  ;;  %v13465_v8 = vld [vmem:[#allocation6 + $0x1b0] sm:$0xff]  }
 0x2ed   :  { %11291 = vmatpush3.bf16.msra.mxu0 %v14331_v59  ;;  %11230 = vmatprep.mubr.bf16.mxu0 %v14119_v13  ;;  %v13466_v13 = vld [vmem:[#allocation6 + $0x1b8] sm:$0xff]   ;;  %v15296_v59 = vld [vmem:[#allocation26_spill] sm:$0xff] }
 0x2ee   :  { %11292 = vmatprep.subr.bf16.mxu0 %v13460_v44 }
 0x2f1   :  { %11293 = vmatpush3.bf16.msra.mxu0 %v13460_v44  ;;  %v13479_v44 = vld [vmem:[#allocation6 + $0x220] sm:$0xff]  }
 0x2f2   :  { %11294 = vmatprep.subr.bf16.mxu0 %v13461_v26 }
 0x2f4   :  { %11231 = vmatmul.mubr.bf16.gmra.mrb[4].mxu0 %v14121_v14  ;;  %v13467_v14 = vld [vmem:[#allocation6 + $0x1c0] sm:$0xff]  }
 0x2f5   :  { %11234 = vmatprep.mubr.bf16.mxu0 %v14125_v21  ;;  %11295 = vmatpush3.bf16.msra.mxu0 %v13461_v26  ;;  %v2883_v21 = vld [vmem:[#allocation2 + $0x182] sm:$0xff] }
 0x2f6   :  { %11296 = vmatprep.subr.bf16.mxu0 %v13462_v52  ;;  %v13480_v26 = vld [vmem:[#allocation6 + $0x228] sm:$0xff]  }
 0x2f9   :  { %11297 = vmatpush3.bf16.msra.mxu0 %v13462_v52  ;;  %v15300_v52 = vld [vmem:[#allocation30_spill] sm:$0xff] }
 0x2fa   :  { %11298 = vmatprep.subr.bf16.mxu0 %v13463_v61 }
 0x2fc   :  { %11235 = vmatmul.mubr.bf16.gmra.mrb[8].mxu0 %v14127_v22  ;;  %v2884_v22 = vld [vmem:[#allocation2 + $0x18a] sm:$0xff] }
 0x2fd   :  { %11238 = vmatprep.mubr.bf16.mxu0 %v14131_v32  ;;  %11299 = vmatpush3.bf16.msra.mxu0 %v13463_v61  ;;  %v14414_v32 = vpack.c.bf16 %v2884_v22, %v2883_v21  ;;  %v15301_v61 = vld [vmem:[#allocation31_spill] sm:$0xff]  ;;  %v15304_v21 = vld [vmem:[#allocation34_spill] sm:$0xff] }
 0x2fe   :  { %11300 = vmatprep.subr.bf16.mxu0 %v13464_v55  ;;  %v15305_v22 = vld [vmem:[#allocation35_spill] sm:$0xff] }
 0x301   :  { %11301 = vmatpush3.bf16.msra.mxu0 %v13464_v55  ;;  %v13481_v55 = vld [vmem:[#allocation6 + $0x230] sm:$0xff]  }
 0x302   :  { %11302 = vmatprep.subr.bf16.mxu0 %v13465_v8 }
 0x304   :  { %11239 = vmatmul.mubr.bf16.gmra.mrb[12].mxu0 %v14133_v33  ;;  %v2915_v33 = vld [vmem:[#allocation2 + $0x332] sm:$0xff] }
 0x305   :  { %11242 = vmatprep.mubr.bf16.mxu0 %v14139_v46  ;;  %11303 = vmatpush3.bf16.msra.mxu0 %v13465_v8  ;;  %v2916_v46 = vld [vmem:[#allocation2 + $0x33a] sm:$0xff] }
 0x306   :  { %11304 = vmatprep.subr.bf16.mxu0 %v13466_v13  ;;  %v13482_v8 = vld [vmem:[#allocation6 + $0x238] sm:$0xff]  }
 0x309   :  { %11305 = vmatpush3.bf16.msra.mxu0 %v13466_v13  ;;  %v15302_v13 = vld [vmem:[#allocation32_spill] sm:$0xff] }
 0x30a   :  { %11370 = vmatprep.subr.bf16.mxu0 %v13467_v14 }
 0x30c   :  { %11243 = vmatmul.mubr.bf16.gmra.mrb[16].mxu0 %v14141_v47  ;;  %v14432_v47 = vpack.c.bf16 %v2916_v46, %v2915_v33  ;;  %v15306_v33 = vld [vmem:[#allocation36_spill] sm:$0xff]  ;;  %v15307_v46 = vld [vmem:[#allocation37_spill] sm:$0xff] }
 0x30d   :  { %11246 = vmatprep.mubr.bf16.mxu0 %v14146_v45  ;;  %v13468_v45 = vld [vmem:[#allocation6 + $0x1c8] sm:$0xff]  }
 0x314   :  { %11247 = vmatmul.mubr.bf16.gmra.mrb[20].mxu0 %v14148_v2  ;;  %v13469_v2 = vld [vmem:[#allocation6 + $0x1d0] sm:$0xff]  }
 0x315   :  { %11250 = vmatprep.mubr.bf16.mxu0 %v14152_v54  ;;  %v13470_v54 = vld [vmem:[#allocation6 + $0x1d8] sm:$0xff]  }
 0x31c   :  { %11251 = vmatmul.mubr.bf16.gmra.mrb[24].mxu0 %v14154_v27  ;;  %v13471_v27 = vld [vmem:[#allocation6 + $0x1e0] sm:$0xff]  }
 0x31d   :  { %11254 = vmatprep.mubr.bf16.mxu0 %v14164_v43  ;;  %v13472_v43 = vld [vmem:[#allocation6 + $0x1e8] sm:$0xff]  }
 0x324   :  { %11255 = vmatmul.mubr.bf16.gmra.mrb[28].mxu0 %v14414_v32 }
 0x325   :  { %11258 = vmatprep.mubr.bf16.mxu0 %v14167_v48  ;;  %v13473_v48 = vld [vmem:[#allocation6 + $0x1f0] sm:$0xff]  }
 0x32c   :  { %11259 = vmatmul.mubr.bf16.gmra.mrb[32].mxu0 %v14169_v60  ;;  %v13474_v60 = vld [vmem:[#allocation6 + $0x1f8] sm:$0xff]  }
 0x32d   :  { %11262 = vmatprep.mubr.bf16.mxu0 %v14173_v10  ;;  %v13475_v10 = vld [vmem:[#allocation6 + $0x200] sm:$0xff]  }
 0x334   :  { %11263 = vmatmul.mubr.bf16.gmra.mrb[36].mxu0 %v14175_v11  ;;  %v15283_v11 = vld [vmem:[#allocation13_spill] sm:$0xff] }
 0x335   :  { %11266 = vmatprep.mubr.bf16.mxu0 %v14179_v18  ;;  %v15284_v18 = vld [vmem:[#allocation14_spill] sm:$0xff] }
 0x33c   :  { %11267 = vmatmul.mubr.bf16.gmra.mrb[40].mxu0 %v14181_v19  ;;  %v3398_v19 = vld [vmem:[#allocation2 + $0x198] sm:$0xff] }
 0x33d   :  { %11270 = vmatprep.mubr.bf16.mxu0 %v14185_v28  ;;  %v14450_v28 = vld [vmem:[#allocation2 + $0x8] sm:$0xff] }
 0x344   :  { %11271 = vmatmul.mubr.bf16.gmra.mrb[44].mxu0 %v14187_v29  ;;  %v3447_v29 = vpack.c.bf16 %v14450_v28, %v3398_v19  ;;  %v15312_v19 = vld [vmem:[#allocation42_spill] sm:$0xff] }
 0x345   :  { %11274 = vmatprep.mubr.bf16.mxu0 %v14191_v40  ;;  %v15285_v40 = vld [vmem:[#allocation15_spill] sm:$0xff] }
 0x34c   :  { %11275 = vmatmul.mubr.bf16.gmra.mrb[48].mxu0 %v14193_v41  ;;  %v15286_v41 = vld [vmem:[#allocation16_spill] sm:$0xff] }
 0x34d   :  { %11278 = vmatprep.mubr.bf16.mxu0 %v14197_v3  ;;  %v15287_v3 = vld [vmem:[#allocation17_spill] sm:$0xff] }
 0x354   :  { %11279 = vmatmul.mubr.bf16.gmra.mrb[52].mxu0 %v14199_v5  ;;  %v15288_v5 = vld [vmem:[#allocation18_spill] sm:$0xff] }
 0x355   :  { %11282 = vmatprep.mubr.bf16.mxu0 %v14203_v39  ;;  %v15289_v39 = vld [vmem:[#allocation19_spill] sm:$0xff] }
 0x35c   :  { %11283 = vmatmul.mubr.bf16.gmra.mrb[56].mxu0 %v14205_v0  ;;  %v15290_v0 = vld [vmem:[#allocation20_spill] sm:$0xff] }
 0x35d   :  { %11286 = vmatprep.mubr.bf16.mxu0 %v14215_v53  ;;  %v15292_v53 = vld [vmem:[#allocation22_spill] sm:$0xff] }
 0x364   :  { %11287 = vmatmul.mubr.bf16.gmra.mrb[60].mxu0 %v14432_v47 }
 0x365   :  { %11306 = vmatprep.mubr.bf16.mxu0 %v14218_v17  ;;  %v15293_v17 = vld [vmem:[#allocation23_spill] sm:$0xff] }
 0x36c   :  { %11307 = vmatmul.mubr.bf16.vlgmr.msra.gmra.mrb[0].mxu0 %v14220_v20  ;;  %v3422_v20 = vld [vmem:[#allocation2 + $0x2e8] sm:$0xff] }
 0x36d   :  { %11371 = vmatpush3.bf16.msra.mxu0 %v13467_v14  ;;  %11310 = vmatprep.mubr.bf16.mxu0 %v14225_v37  ;;  %v3423_v37 = vld [vmem:[#allocation2 + $0x2f0] sm:$0xff]  ;;  %v15303_v14 = vld [vmem:[#allocation33_spill] sm:$0xff] }
 0x36e   :  { %11372 = vmatprep.subr.bf16.mxu0 %v13468_v45 }
 0x371   :  { %11373 = vmatpush3.bf16.msra.mxu0 %v13468_v45  ;;  %v3910_v45 = vld [vmem:[#allocation2 + $0x181] sm:$0xff] }
 0x372   :  { %11374 = vmatprep.subr.bf16.mxu0 %v13469_v2 }
 0x374   :  { %11311 = vmatmul.mubr.bf16.gmra.mrb[4].mxu0 %v14227_v49  ;;  %v3424_v49 = vld [vmem:[#allocation2 + $0x300] sm:$0xff] }
 0x375   :  { %11314 = vmatprep.mubr.bf16.mxu0 %v14231_v38  ;;  %11375 = vmatpush3.bf16.msra.mxu0 %v13469_v2  ;;  %v3425_v38 = vld [vmem:[#allocation2 + $0x308] sm:$0xff] }
 0x376   :  { %11376 = vmatprep.subr.bf16.mxu0 %v13470_v54  ;;  %v3911_v2 = vld [vmem:[#allocation2 + $0x189] sm:$0xff] }
 0x379   :  { %11377 = vmatpush3.bf16.msra.mxu0 %v13470_v54  ;;  %v3960_v54 = vpack.c.bf16 %v3911_v2, %v3910_v45  ;;  %v4422_v2 = vld [vmem:[#allocation2 + $0x16a] sm:$0xff] }
 0x37a   :  { %11378 = vmatprep.subr.bf16.mxu0 %v13471_v27 }
 0x37c   :  { %11315 = vmatmul.mubr.bf16.gmra.mrb[8].mxu0 %v14233_v50  ;;  %v3459_v50 = vpack.c.bf16 %v3423_v37, %v3422_v20 }
 0x37d   :  { %11318 = vmatprep.mubr.bf16.mxu0 %v14237_v12  ;;  %11379 = vmatpush3.bf16.msra.mxu0 %v13471_v27  ;;  %v3460_v12 = vpack.c.bf16 %v3425_v38, %v3424_v49  ;;  %v15308_v27 = vld [vmem:[#allocation38_spill] sm:$0xff]  ;;  %v13486_v49 = vld [vmem:[#allocation8 + $0x18] sm:$0xff]  }
 0x37e   :  { %11380 = vmatprep.subr.bf16.mxu0 %v13472_v43  ;;  %v4402_v38 = vld [vmem:[#allocation2 + $0x7a] sm:$0xff] }
 0x381   :  { %11381 = vmatpush3.bf16.msra.mxu0 %v13472_v43  ;;  %v3912_v43 = vld [vmem:[#allocation2 + $0x199] sm:$0xff] }
 0x382   :  { %11382 = vmatprep.subr.bf16.mxu0 %v13473_v48 }
 0x384   :  { %11319 = vmatmul.mubr.bf16.gmra.mrb[12].mxu0 %v14239_v15  ;;  %v3426_v15 = vld [vmem:[#allocation2 + $0x318] sm:$0xff] }
 0x385   :  { %11322 = vmatprep.mubr.bf16.mxu0 %v14245_v36  ;;  %11383 = vmatpush3.bf16.msra.mxu0 %v13473_v48  ;;  %v3427_v36 = vld [vmem:[#allocation2 + $0x320] sm:$0xff] }
 0x386   :  { %11384 = vmatprep.subr.bf16.mxu0 %v13474_v60  ;;  %v3913_v48 = vld [vmem:[#allocation2 + $0x1a1] sm:$0xff] }
 0x389   :  { %11385 = vmatpush3.bf16.msra.mxu0 %v13474_v60  ;;  %v3961_v60 = vpack.c.bf16 %v3913_v48, %v3912_v43  ;;  %v4426_v43 = vld [vmem:[#allocation2 + $0x19a] sm:$0xff]  ;;  %v4427_v48 = vld [vmem:[#allocation2 + $0x1a2] sm:$0xff] }
 0x38a   :  { %11450 = vmatprep.subr.bf16.mxu0 %v13475_v10 }
 0x38c   :  { %11323 = vmatmul.mubr.bf16.gmra.mrb[16].mxu0 %v14247_v56  ;;  %v3461_v56 = vpack.c.bf16 %v3427_v36, %v3426_v15  ;;  %v4405_v15 = vld [vmem:[#allocation2 + $0x9a] sm:$0xff] }
 0x38d   :  { %11326 = vmatprep.mubr.bf16.mxu0 %v14252_v25  ;;  %v15294_v25 = vld [vmem:[#allocation24_spill] sm:$0xff] }
 0x394   :  { %11327 = vmatmul.mubr.bf16.gmra.mrb[20].mxu0 %v14254_v4  ;;  %v3430_v4 = vld [vmem:[#allocation2 + $0x348] sm:$0xff] }
 0x395   :  { %11330 = vmatprep.mubr.bf16.mxu0 %v15283_v11  ;;  %v15310_v11 = vld [vmem:[#allocation40_spill] sm:$0xff] }
 0x39c   :  { %11331 = vmatmul.mubr.bf16.gmra.mrb[24].mxu0 %v15284_v18  ;;  %v15311_v18 = vld [vmem:[#allocation41_spill] sm:$0xff] }
 0x39d   :  { %11334 = vmatprep.mubr.bf16.mxu0 %v14264_v42  ;;  %v3463_v42 = vpack.c.bf16 %v14450_v28, %v3430_v4  ;;  %v4407_v4 = vld [vmem:[#allocation2 + $0xb2] sm:$0xff] }
 0x3a4   :  { %11335 = vmatmul.mubr.bf16.gmra.mrb[28].mxu0 %v3447_v29  ;;  %v15313_v29 = vld [vmem:[#allocation43_spill] sm:$0xff] }
 0x3a5   :  { %11338 = vmatprep.mubr.bf16.mxu0 %v15285_v40  ;;  %v15314_v40 = vld [vmem:[#allocation44_spill] sm:$0xff] }
 0x3ac   :  { %11339 = vmatmul.mubr.bf16.gmra.mrb[32].mxu0 %v15286_v41  ;;  %v3944_v41 = vld [vmem:[#allocation2 + $0x349] sm:$0xff] }
 0x3ad   :  { %11342 = vmatprep.mubr.bf16.mxu0 %v15287_v3  ;;  %v3945_v3 = vld [vmem:[#allocation2 + $0x351] sm:$0xff] }
 0x3b4   :  { %11343 = vmatmul.mubr.bf16.gmra.mrb[36].mxu0 %v15288_v5  ;;  %v4396_v5 = vld [vmem:[#allocation2 + $0x32] sm:$0xff] }
 0x3b5   :  { %11346 = vmatprep.mubr.bf16.mxu0 %v15289_v39  ;;  %v4397_v39 = vld [vmem:[#allocation2 + $0x3a] sm:$0xff] }
 0x3bc   :  { %11347 = vmatmul.mubr.bf16.gmra.mrb[40].mxu0 %v14281_v63  ;;  %v15295_v63 = vld [vmem:[#allocation25_spill] sm:$0xff] }
 0x3bd   :  { %11350 = vmatprep.mubr.bf16.mxu0 %v14285_v6  ;;  %v13476_v6 = vld [vmem:[#allocation6 + $0x208] sm:$0xff]  }
 0x3c4   :  { %11351 = vmatmul.mubr.bf16.gmra.mrb[44].mxu0 %v15290_v0  ;;  %v3977_v0 = vpack.c.bf16 %v3945_v3, %v3944_v41  ;;  %v4434_v41 = vld [vmem:[#allocation2 + $0x22a] sm:$0xff]  ;;  %v4435_v3 = vld [vmem:[#allocation2 + $0x232] sm:$0xff] }
 0x3c5   :  { %11354 = vmatprep.mubr.bf16.mxu0 %v15291_v51  ;;  %v4460_v51 = vpack.c.bf16 %v4397_v39, %v4396_v5  ;;  %v4436_v5 = vld [vmem:[#allocation2 + $0x242] sm:$0xff]  ;;  %v4479_v39 = vpack.c.bf16 %v4435_v3, %v4434_v41 }
 0x3cc   :  { %11355 = vmatmul.mubr.bf16.gmra.mrb[48].mxu0 %v15292_v53  ;;  %v13484_v53 = vld [vmem:[#allocation8 + $0x8] sm:$0xff]  }
 0x3cd   :  { %11358 = vmatprep.mubr.bf16.mxu0 %v15293_v17  ;;  %v4400_v17 = vld [vmem:[#allocation2 + $0x62] sm:$0xff] }
 0x3d4   :  { %11359 = vmatmul.mubr.bf16.gmra.mrb[52].mxu0 %v3459_v50  ;;  %v4403_v50 = vld [vmem:[#allocation2 + $0x82] sm:$0xff] }
 0x3d5   :  { %11362 = vmatprep.mubr.bf16.mxu0 %v3460_v12  ;;  %v4404_v12 = vld [vmem:[#allocation2 + $0x92] sm:$0xff]  ;;  %v4463_v36 = vpack.c.bf16 %v4403_v50, %v4402_v38 }
 0x3dc   :  { %11363 = vmatmul.mubr.bf16.gmra.mrb[56].mxu0 %v3461_v56  ;;  %v4464_v56 = vpack.c.bf16 %v4405_v15, %v4404_v12  ;;  %v13488_v12 = vld [vmem:[#allocation8 + $0x28] sm:$0xff]   ;;  %v4446_v15 = vld [vmem:[#allocation2 + $0x2ba] sm:$0xff] }
 0x3dd   :  { %11366 = vmatprep.mubr.bf16.mxu0 %v15294_v25  ;;  %v4406_v25 = vld [vmem:[#allocation2 + $0xaa] sm:$0xff] }
 0x3e4   :  { %11367 = vmatmul.mubr.bf16.gmra.mrb[60].mxu0 %v3463_v42  ;;  %v4408_v42 = vld [vmem:[#allocation2 + $0xc2] sm:$0xff] }
 0x3e5   :  { %11386 = vmatprep.mubr.bf16.mxu0 %v15295_v63  ;;  %v4409_v63 = vld [vmem:[#allocation2 + $0xca] sm:$0xff] }
 0x3ec   :  { %11387 = vmatmul.mubr.bf16.vlgmr.msra.gmra.mrb[0].mxu0 %v15296_v59  ;;  %v4466_v59 = vpack.c.bf16 %v4409_v63, %v4408_v42 }
 0x3ed   :  { %11451 = vmatpush3.bf16.msra.mxu0 %v13475_v10  ;;  %11390 = vmatprep.mubr.bf16.mxu0 %v15297_v35  ;;  %v15309_v10 = vld [vmem:[#allocation39_spill] sm:$0xff]  ;;  %v4410_v35 = vld [vmem:[#allocation2 + $0xda] sm:$0xff] }
 0x3ee   :  { %11452 = vmatprep.subr.bf16.mxu0 %v13476_v6 }
 0x3f1   :  { %11453 = vmatpush3.bf16.msra.mxu0 %v13476_v6  ;;  %v4465_v6 = vpack.c.bf16 %v4407_v4, %v4406_v25  ;;  %v4449_v25 = vld [vmem:[#allocation2 + $0x2da] sm:$0xff]  ;;  %v13489_v4 = vld [vmem:[#allocation8 + $0x30] sm:$0xff]  }
 0x3f2   :  { %11454 = vmatprep.subr.bf16.mxu0 %v13477_v30 }
 0x3f4   :  { %11391 = vmatmul.mubr.bf16.gmra.mrb[4].mxu0 %v15298_v24  ;;  %v4413_v24 = vld [vmem:[#allocation2 + $0xfa] sm:$0xff] }
 0x3f5   :  { %11394 = vmatprep.mubr.bf16.mxu0 %v15299_v58  ;;  %11455 = vmatpush3.bf16.msra.mxu0 %v13477_v30  ;;  %v4411_v30 = vld [vmem:[#allocation2 + $0xe2] sm:$0xff] }
 0x3f6   :  { %11456 = vmatprep.subr.bf16.mxu0 %v13478_v9  ;;  %v4467_v58 = vpack.c.bf16 %v4411_v30, %v4410_v35  ;;  %v4451_v35 = vld [vmem:[#allocation2 + $0x2f2] sm:$0xff]  ;;  %v5039_v30 = vld [vmem:[#allocation2] sm:$0xff] }
 0x3f9   :  { %11457 = vmatpush3.bf16.msra.mxu0 %v13478_v9  ;;  %v4412_v9 = vld [vmem:[#allocation2 + $0xf2] sm:$0xff] }
 0x3fa   :  { %11458 = vmatprep.subr.bf16.mxu0 %v13479_v44 }
 0x3fc   :  { %11395 = vmatmul.mubr.bf16.gmra.mrb[8].mxu0 %v15300_v52  ;;  %v4415_v52 = vld [vmem:[#allocation2 + $0x112] sm:$0xff] }
 0x3fd   :  { %11398 = vmatprep.mubr.bf16.mxu0 %v15301_v61  ;;  %11459 = vmatpush3.bf16.msra.mxu0 %v13479_v44  ;;  %v4468_v44 = vpack.c.bf16 %v4413_v24, %v4412_v9  ;;  %v4416_v61 = vld [vmem:[#allocation2 + $0x122] sm:$0xff]  ;;  %v4453_v24 = vld [vmem:[#allocation2 + $0x30a] sm:$0xff] }
 0x3fe   :  { %11460 = vmatprep.subr.bf16.mxu0 %v13480_v26  ;;  %v4452_v9 = vld [vmem:[#allocation2 + $0x302] sm:$0xff] }
 0x401   :  { %11461 = vmatpush3.bf16.msra.mxu0 %v13480_v26  ;;  %v4414_v26 = vld [vmem:[#allocation2 + $0x10a] sm:$0xff] }
 0x402   :  { %11462 = vmatprep.subr.bf16.mxu0 %v13481_v55 }
 0x404   :  { %11399 = vmatmul.mubr.bf16.gmra.mrb[12].mxu0 %v15302_v13 }
 0x405   :  { %11402 = vmatprep.mubr.bf16.mxu0 %v15303_v14  ;;  %11463 = vmatpush3.bf16.msra.mxu0 %v13481_v55  ;;  %v4417_v55 = vld [vmem:[#allocation2 + $0x12a] sm:$0xff]  ;;  %v4418_v14 = vld [vmem:[#allocation2 + $0x13a] sm:$0xff] }
 0x406   :  { %11464 = vmatprep.subr.bf16.mxu0 %v13482_v8  ;;  %v4470_v13 = vpack.c.bf16 %v4417_v55, %v4416_v61  ;;  %v4455_v61 = vld [vmem:[#allocation2 + $0x322] sm:$0xff] }
 0x407   :  { %v13491_v55 = vld [vmem:[#allocation8 + $0x40] sm:$0xff]  }
 0x409   :  { %11465 = vmatpush3.bf16.msra.mxu0 %v13482_v8  ;;  %v4469_v8 = vpack.c.bf16 %v4415_v52, %v4414_v26  ;;  %v4488_v26 = vpack.c.bf16 %v4453_v24, %v4452_v9  ;;  %v4454_v52 = vld [vmem:[#allocation2 + $0x31a] sm:$0xff] }
 0x40c   :  { %11403 = vmatmul.mubr.bf16.gmra.mrb[16].mxu0 %v15304_v21  ;;  %v4419_v21 = vld [vmem:[#allocation2 + $0x142] sm:$0xff] }
 0x40d   :  { %11406 = vmatprep.mubr.bf16.mxu0 %v15305_v22  ;;  %v4420_v22 = vld [vmem:[#allocation2 + $0x152] sm:$0xff] }
 0x414   :  { %11407 = vmatmul.mubr.bf16.gmra.mrb[20].mxu0 %v15306_v33  ;;  %v4421_v33 = vld [vmem:[#allocation2 + $0x15a] sm:$0xff] }
 0x415   :  { %11410 = vmatprep.mubr.bf16.mxu0 %v15307_v46  ;;  %v4471_v46 = vpack.c.bf16 %v4419_v21, %v4418_v14  ;;  %v4472_v45 = vpack.c.bf16 %v4421_v33, %v4420_v22  ;;  %v4459_v14 = vld [vmem:[#allocation2 + $0x352] sm:$0xff]  ;;  %v14500_v22 = vld [vmem:[%s15128_s3] ss:$0 sm:$0xff] }
 0x41c   :  { %11411 = vmatmul.mubr.bf16.gmra.mrb[24].mxu0 %v15308_v27 }
 0x41d   :  { %11414 = vmatprep.mubr.bf16.mxu0 %v3960_v54  ;;  %v4423_v54 = vld [vmem:[#allocation2 + $0x172] sm:$0xff] }
 0x41e   :  { %v4473_v27 = vpack.c.bf16 %v4423_v54, %v4422_v2 }
 0x424   :  { %11415 = vmatmul.mubr.bf16.gmra.mrb[28].mxu0 %v3961_v60  ;;  %v4428_v60 = vld [vmem:[#allocation2 + $0x1e2] sm:$0xff] }
 0x425   :  { %11418 = vmatprep.mubr.bf16.mxu0 %v14354_v23  ;;  %v3942_v23 = vld [vmem:[#allocation2 + $0x331] sm:$0xff] }
 0x42c   :  { %11419 = vmatmul.mubr.bf16.gmra.mrb[32].mxu0 %v14356_v62  ;;  %v3943_v62 = vld [vmem:[#allocation2 + $0x339] sm:$0xff] }
 0x42d   :  { %11422 = vmatprep.mubr.bf16.mxu0 %v14360_v31  ;;  %v3976_v31 = vpack.c.bf16 %v3943_v62, %v3942_v23  ;;  %v4433_v23 = vld [vmem:[#allocation2 + $0x21a] sm:$0xff] }
 0x434   :  { %11423 = vmatmul.mubr.bf16.gmra.mrb[36].mxu0 %v15309_v10  ;;  %v4429_v10 = vld [vmem:[#allocation2 + $0x1ea] sm:$0xff] }
 0x435   :  { %11426 = vmatprep.mubr.bf16.mxu0 %v15310_v11  ;;  %v4475_v11 = vpack.c.bf16 %v4427_v48, %v4426_v43 }
 0x43c   :  { %11427 = vmatmul.mubr.bf16.gmra.mrb[40].mxu0 %v15311_v18  ;;  %v4476_v18 = vpack.c.bf16 %v4429_v10, %v4428_v60 }
 0x43d   :  { %11430 = vmatprep.mubr.bf16.mxu0 %v15312_v19  ;;  %v4430_v19 = vld [vmem:[#allocation2 + $0x1fa] sm:$0xff] }
 0x444   :  { %11431 = vmatmul.mubr.bf16.gmra.mrb[44].mxu0 %v15313_v29  ;;  %v4431_v29 = vld [vmem:[#allocation2 + $0x202] sm:$0xff] }
 0x445   :  { %11434 = vmatprep.mubr.bf16.mxu0 %v15314_v40  ;;  %v4432_v40 = vld [vmem:[#allocation2 + $0x212] sm:$0xff]  ;;  %v4477_v62 = vpack.c.bf16 %v4431_v29, %v4430_v19 }
 0x44c   :  { %11435 = vmatmul.mubr.bf16.gmra.mrb[48].mxu0 %v14380_v1  ;;  %v13483_v1 = vld [vmem:[#allocation8] sm:$0xff]  }
 0x44d   :  { %11438 = vmatprep.mubr.bf16.mxu0 %v14384_v57  ;;  %v4398_v57 = vld [vmem:[#allocation2 + $0x4a] sm:$0xff]  ;;  %11530 = vmatprep.subr.bf16.mxu1 %v13483_v1 }
 0x44e   :  { %11531 = vmatpush3.bf16.msra.mxu1 %v13483_v1  ;;  %v4439_v1 = vld [vmem:[#allocation2 + $0x262] sm:$0xff] }
 0x44f   :  { %11532 = vmatprep.subr.bf16.mxu1 %v13484_v53 }
 0x452   :  { %11533 = vmatpush3.bf16.msra.mxu1 %v13484_v53  ;;  %v4440_v53 = vld [vmem:[#allocation2 + $0x272] sm:$0xff] }
 0x454   :  { %11439 = vmatmul.mubr.bf16.gmra.mrb[52].mxu0 %v14386_v7  ;;  %v4399_v7 = vld [vmem:[#allocation2 + $0x52] sm:$0xff] }
 0x455   :  { %11442 = vmatprep.mubr.bf16.mxu0 %v14390_v16  ;;  %v4401_v16 = vld [vmem:[#allocation2 + $0x6a] sm:$0xff]  ;;  %v4461_v20 = vpack.c.bf16 %v4399_v7, %v4398_v57  ;;  %v4441_v57 = vld [vmem:[#allocation2 + $0x27a] sm:$0xff] }
 0x456   :  { %v4462_v37 = vpack.c.bf16 %v4401_v16, %v4400_v17  ;;  %v4482_v17 = vpack.c.bf16 %v4441_v57, %v4440_v53  ;;  %v4442_v16 = vld [vmem:[#allocation2 + $0x28a] sm:$0xff] }
 0x45c   :  { %11443 = vmatmul.mubr.bf16.gmra.mrb[56].mxu0 %v14392_v34  ;;  %v13485_v34 = vld [vmem:[#allocation8 + $0x10] sm:$0xff]  }
 0x45d   :  { %11446 = vmatprep.mubr.bf16.mxu0 %v3976_v31  ;;  %11534 = vmatprep.subr.bf16.mxu1 %v13485_v34  ;;  %v4478_v31 = vpack.c.bf16 %v4433_v23, %v4432_v40 }
 0x45e   :  { %11535 = vmatpush3.bf16.msra.mxu1 %v13485_v34  ;;  %v4444_v34 = vld [vmem:[#allocation2 + $0x2a2] sm:$0xff] }
 0x45f   :  { %11536 = vmatprep.subr.bf16.mxu1 %v13486_v49 }
 0x462   :  { %11537 = vmatpush3.bf16.msra.mxu1 %v13486_v49  ;;  %v13487_v49 = vld [vmem:[#allocation8 + $0x20] sm:$0xff]  }
 0x463   :  { %11538 = vmatprep.subr.bf16.mxu1 %v13487_v49 }
 0x464   :  { %11447 = vmatmul.mubr.bf16.gmra.mrb[60].mxu0 %v3977_v0 }
 0x465   :  { %11466 = vmatprep.mubr.bf16.mxu0 %v4460_v51  ;;  %v4438_v51 = vld [vmem:[#allocation2 + $0x25a] sm:$0xff] }
 0x466   :  { %v4481_v7 = vpack.c.bf16 %v4439_v1, %v4438_v51  ;;  %11539 = vmatpush3.bf16.msra.mxu1 %v13487_v49 }
 0x467   :  { %11540 = vmatprep.subr.bf16.mxu1 %v13488_v12 }
 0x46a   :  { %11541 = vmatpush3.bf16.msra.mxu1 %v13488_v12 }
 0x46b   :  { %11542 = vmatprep.subr.bf16.mxu1 %v13489_v4 }
 0x46c   :  { %11467 = vmatmul.mubr.bf16.vlgmr.msra.gmra.mrb[0].mxu0 %v4461_v20  ;;  %v4443_v20 = vld [vmem:[#allocation2 + $0x292] sm:$0xff] }
 0x46d   :  { %11470 = vmatprep.mubr.bf16.mxu0 %v4462_v37  ;;  %v4445_v37 = vld [vmem:[#allocation2 + $0x2aa] sm:$0xff]  ;;  %v4483_v38 = vpack.c.bf16 %v4443_v20, %v4442_v16 }
 0x46e   :  { %v4484_v50 = vpack.c.bf16 %v4445_v37, %v4444_v34  ;;  %11543 = vmatpush3.bf16.msra.mxu1 %v13489_v4  ;;  %v13492_v34 = vld [vmem:[#allocation8 + $0x48] sm:$0xff]  }
 0x474   :  { %11471 = vmatmul.mubr.bf16.gmra.mrb[4].mxu0 %v4463_v36  ;;  %v4447_v36 = vld [vmem:[#allocation2 + $0x2c2] sm:$0xff] }
 0x475   :  { %11474 = vmatprep.mubr.bf16.mxu0 %v4464_v56  ;;  %v4448_v56 = vld [vmem:[#allocation2 + $0x2d2] sm:$0xff]  ;;  %v4485_v42 = vpack.c.bf16 %v4447_v36, %v4446_v15 }
 0x476   :  { %v4486_v63 = vpack.c.bf16 %v4449_v25, %v4448_v56 }
 0x47c   :  { %11475 = vmatmul.mubr.bf16.gmra.mrb[8].mxu0 %v4465_v6  ;;  %v13490_v6 = vld [vmem:[#allocation8 + $0x38] sm:$0xff]  }
 0x47d   :  { %11478 = vmatprep.mubr.bf16.mxu0 %v4466_v59  ;;  %v4450_v59 = vld [vmem:[#allocation2 + $0x2ea] sm:$0xff]  ;;  %11544 = vmatprep.subr.bf16.mxu1 %v13490_v6 }
 0x47e   :  { %11545 = vmatpush3.bf16.msra.mxu1 %v13490_v6 }
 0x47f   :  { %11610 = vmatprep.subr.bf16.mxu1 %v13491_v55 }
 0x484   :  { %11479 = vmatmul.mubr.bf16.gmra.mrb[12].mxu0 %v4467_v58  ;;  %v5103_v58 = vpack.c.bf16 %v14450_v28, %v5039_v30 }
 0x485   :  { %11482 = vmatprep.mubr.bf16.mxu0 %v4468_v44  ;;  %v4487_v44 = vpack.c.bf16 %v4451_v35, %v4450_v59 }
 0x486   :  { %11546 = vmatprep.mubr.bf16.mxu1 %v5103_v58 }
 0x48c   :  { %11483 = vmatmul.mubr.bf16.gmra.mrb[16].mxu0 %v4469_v8  ;;  %v4489_v8 = vpack.c.bf16 %v4455_v61, %v4454_v52  ;;  %v13494_v52 = vld [vmem:[#allocation8 + $0x58] sm:$0xff]  }
 0x48d   :  { %11486 = vmatprep.mubr.bf16.mxu0 %v4470_v13  ;;  %v4458_v13 = vld [vmem:[#allocation2 + $0x34a] sm:$0xff] }
 0x48e   :  { %v4491_v21 = vpack.c.bf16 %v4459_v14, %v4458_v13 }
 0x494   :  { %11487 = vmatmul.mubr.bf16.gmra.mrb[20].mxu0 %v4471_v46 }
 0x495   :  { %11490 = vmatprep.mubr.bf16.mxu0 %v4472_v45 }
 0x49c   :  { %11491 = vmatmul.mubr.bf16.gmra.mrb[24].mxu0 %v4473_v27 }
 0x49d   :  { %11494 = vmatprep.mubr.bf16.mxu0 %v14414_v32  ;;  %v4437_v32 = vld [vmem:[#allocation2 + $0x24a] sm:$0xff] }
 0x49e   :  { %v4480_v0 = vpack.c.bf16 %v4437_v32, %v4436_v5 }
 0x4a4   :  { %11495 = vmatmul.mubr.bf16.gmra.mrb[28].mxu0 %v4475_v11 }
 0x4a5   :  { %11498 = vmatprep.mubr.bf16.mxu0 %v4476_v18 }
 0x4ac   :  { %11499 = vmatmul.mubr.bf16.gmra.mrb[32].mxu0 %v4477_v62 }
 0x4ad   :  { %11502 = vmatprep.mubr.bf16.mxu0 %v4478_v31 }
 0x4b4   :  { %11503 = vmatmul.mubr.bf16.gmra.mrb[36].mxu0 %v4479_v39 }
 0x4b5   :  { %11506 = vmatprep.mubr.bf16.mxu0 %v4480_v0 }
 0x4bc   :  { %11507 = vmatmul.mubr.bf16.gmra.mrb[40].mxu0 %v4481_v7 }
 0x4bd   :  { %11510 = vmatprep.mubr.bf16.mxu0 %v4482_v17 }
 0x4c4   :  { %11511 = vmatmul.mubr.bf16.gmra.mrb[44].mxu0 %v4483_v38 }
 0x4c5   :  { %11514 = vmatprep.mubr.bf16.mxu0 %v4484_v50 }
 0x4cc   :  { %11515 = vmatmul.mubr.bf16.gmra.mrb[48].mxu0 %v4485_v42 }
 0x4cd   :  { %11518 = vmatprep.mubr.bf16.mxu0 %v4486_v63  ;;  %v13493_v63 = vld [vmem:[#allocation8 + $0x50] sm:$0xff]  }
 0x4d4   :  { %11519 = vmatmul.mubr.bf16.gmra.mrb[52].mxu0 %v4487_v44 }
 0x4d5   :  { %11522 = vmatprep.mubr.bf16.mxu0 %v4488_v26 }
 0x4dc   :  { %11523 = vmatmul.mubr.bf16.gmra.mrb[56].mxu0 %v4489_v8 }
 0x4dd   :  { %11526 = vmatprep.mubr.bf16.mxu0 %v14432_v47 }
 0x4e4   :  { %11527 = vmatmul.mubr.bf16.gmra.mrb[60].mxu0 %v4491_v21 }
 0x53f   :  { %v11468_v33 = vpop.f32.mrb[0].mxu0 }
 0x540   :  { %v12250_v46 = vadd.f32 %v11468_v33, %v14500_v22  ;;  %v4591_v45 = vpop.f32.mrb[1].mxu0 }
 0x541   :  { %v12251_v2 = vadd.f32 %v14500_v22, %v4591_v45  ;;  %v11469_v54 = vpop.f32.mrb[2].mxu0 }
 0x542   :  { %v4912_v27 = vmax.f32 %v12250_v46, 0.0  ;;  %v12252_v43 = vadd.f32 %v11469_v54, %v14500_v22  ;;  %v4594_v47 = vpop.f32.mrb[3].mxu0 }
 0x543   :  { %v4910_v48 = vmax.f32 %v12251_v2, 0.0  ;;  %v12253_v60 = vadd.f32 %v14500_v22, %v4594_v47 }
 0x544   :  { %4976 = vst [vmem:[#allocation2 + $0x31] sm:$0xff] %v4912_v27  ;;  %v4913_v10 = vmax.f32 %v12252_v43, 0.0 }
 0x545   :  { %4974 = vst [vmem:[#allocation2 + $0x19] sm:$0xff] %v4910_v48  ;;  %v4911_v11 = vmax.f32 %v12253_v60, 0.0 }
 0x546   :  { %4977 = vst [vmem:[#allocation2 + $0x39] sm:$0xff] %v4913_v10  ;;  %v14506_v18 = vpack.c.bf16 %v4913_v10, %v4912_v27  ;;  %v13495_v27 = vld [vmem:[#allocation8 + $0x60] sm:$0xff]  }
 0x547   :  { %4975 = vst [vmem:[#allocation2 + $0x21] sm:$0xff] %v4911_v11  ;;  %v11472_v19 = vpop.f32.mrb[4].mxu0  ;;  %v14508_v29 = vpack.c.bf16 %v4911_v11, %v4910_v48 }
 0x548   :  { %v12254_v40 = vadd.f32 %v11472_v19, %v14500_v22  ;;  %v4607_v23 = vpop.f32.mrb[5].mxu0 }
 0x549   :  { %v12255_v62 = vadd.f32 %v14500_v22, %v4607_v23  ;;  %v11473_v31 = vpop.f32.mrb[6].mxu0 }
 0x54a   :  { %v4916_v41 = vmax.f32 %v12254_v40, 0.0  ;;  %v12256_v3 = vadd.f32 %v11473_v31, %v14500_v22  ;;  %v4610_v5 = vpop.f32.mrb[7].mxu0 }
 0x54b   :  { %v4914_v32 = vmax.f32 %v12255_v62, 0.0  ;;  %v12257_v39 = vadd.f32 %v14500_v22, %v4610_v5  ;;  %v5043_v20 = vld [vmem:[#allocation2 + $0x30] sm:$0xff]  ;;  %v13496_v62 = vld [vmem:[#allocation8 + $0x68] sm:$0xff]  }
 0x54c   :  { %4980 = vst [vmem:[#allocation2 + $0x61] sm:$0xff] %v4916_v41  ;;  %v4917_v0 = vmax.f32 %v12256_v3, 0.0  ;;  %v5041_v53 = vld [vmem:[#allocation2 + $0x18] sm:$0xff] }
 0x54d   :  { %4978 = vst [vmem:[#allocation2 + $0x49] sm:$0xff] %v4914_v32  ;;  %v4915_v51 = vmax.f32 %v12257_v39, 0.0  ;;  %v5044_v1 = vld [vmem:[#allocation2 + $0x38] sm:$0xff] }
 0x54e   :  { %4981 = vst [vmem:[#allocation2 + $0x69] sm:$0xff] %v4917_v0  ;;  %v5042_v57 = vld [vmem:[#allocation2 + $0x20] sm:$0xff]  ;;  %v14514_v7 = vpack.c.bf16 %v4917_v0, %v4916_v41  ;;  %v5105_v50 = vpack.c.bf16 %v5044_v1, %v5043_v20 }
 0x54f   :  { %4979 = vst [vmem:[#allocation2 + $0x51] sm:$0xff] %v4915_v51  ;;  %v11476_v17 = vpop.f32.mrb[8].mxu0  ;;  %v5104_v16 = vpack.c.bf16 %v5042_v57, %v5041_v53  ;;  %v14516_v37 = vpack.c.bf16 %v4915_v51, %v4914_v32 }
 0x550   :  { %v12258_v49 = vadd.f32 %v11476_v17, %v14500_v22  ;;  %v4623_v38 = vpop.f32.mrb[9].mxu0  ;;  %v13497_v17 = vld [vmem:[#allocation8 + $0x70] sm:$0xff]  }
 0x551   :  { %v12259_v12 = vadd.f32 %v14500_v22, %v4623_v38  ;;  %v11477_v15 = vpop.f32.mrb[10].mxu0  ;;  %11547 = vmatmul.mubr.bf16.vlgmr.msra.gmra.mrb[0].mxu1 %v5104_v16 }
 0x552   :  { %v4920_v36 = vmax.f32 %v12258_v49, 0.0  ;;  %v12260_v56 = vadd.f32 %v11477_v15, %v14500_v22  ;;  %v4626_v25 = vpop.f32.mrb[11].mxu0  ;;  %11550 = vmatprep.mubr.bf16.mxu1 %v5105_v50  ;;  %11611 = vmatpush3.bf16.msra.mxu1 %v13491_v55 }
 0x553   :  { %v4918_v4 = vmax.f32 %v12259_v12, 0.0  ;;  %v12261_v42 = vadd.f32 %v14500_v22, %v4626_v25  ;;  %11612 = vmatprep.subr.bf16.mxu1 %v13492_v34  ;;  %v5047_v26 = vld [vmem:[#allocation2 + $0x60] sm:$0xff] }
 0x554   :  { %4984 = vst [vmem:[#allocation2 + $0x91] sm:$0xff] %v4920_v36  ;;  %v4921_v6 = vmax.f32 %v12260_v56, 0.0  ;;  %v5045_v30 = vld [vmem:[#allocation2 + $0x48] sm:$0xff]  ;;  %v13498_v56 = vld [vmem:[#allocation8 + $0x78] sm:$0xff]  }
 0x555   :  { %4982 = vst [vmem:[#allocation2 + $0x79] sm:$0xff] %v4918_v4  ;;  %v4919_v59 = vmax.f32 %v12261_v42, 0.0  ;;  %v5048_v35 = vld [vmem:[#allocation2 + $0x68] sm:$0xff] }
 0x556   :  { %4985 = vst [vmem:[#allocation2 + $0x99] sm:$0xff] %v4921_v6  ;;  %v5046_v9 = vld [vmem:[#allocation2 + $0x50] sm:$0xff]  ;;  %11613 = vmatpush3.bf16.msra.mxu1 %v13492_v34  ;;  %v14522_v24 = vpack.c.bf16 %v4921_v6, %v4920_v36  ;;  %v5107_v13 = vpack.c.bf16 %v5048_v35, %v5047_v26  ;;  %v14546_v26 = vld [vmem:[#allocation8 + $0x80] sm:$0xff]  }
 0x557   :  { %4983 = vst [vmem:[#allocation2 + $0x81] sm:$0xff] %v4919_v59  ;;  %v11480_v58 = vpop.f32.mrb[12].mxu0  ;;  %v5106_v44 = vpack.c.bf16 %v5046_v9, %v5045_v30  ;;  %11614 = vmatprep.subr.bf16.mxu1 %v13493_v63  ;;  %v14524_v61 = vpack.c.bf16 %v4919_v59, %v4918_v4 }
 0x558   :  { %v12262_v55 = vadd.f32 %v11480_v58, %v14500_v22  ;;  %v4639_v8 = vpop.f32.mrb[13].mxu0 }
 0x559   :  { %v12263_v14 = vadd.f32 %v14500_v22, %v4639_v8  ;;  %v11481_v21 = vpop.f32.mrb[14].mxu0  ;;  %11551 = vmatmul.mubr.bf16.gmra.mrb[4].mxu1 %v5106_v44 }
 0x55a   :  { %v4924_v33 = vmax.f32 %v12262_v55, 0.0  ;;  %v12264_v46 = vadd.f32 %v11481_v21, %v14500_v22  ;;  %v4642_v45 = vpop.f32.mrb[15].mxu0  ;;  %11554 = vmatprep.mubr.bf16.mxu1 %v5107_v13  ;;  %11615 = vmatpush3.bf16.msra.mxu1 %v13493_v63 }
 0x55b   :  { %v4922_v2 = vmax.f32 %v12263_v14, 0.0  ;;  %v12265_v54 = vadd.f32 %v14500_v22, %v4642_v45  ;;  %11616 = vmatprep.subr.bf16.mxu1 %v13494_v52  ;;  %v5051_v23 = vld [vmem:[#allocation2 + $0x90] sm:$0xff] }
 0x55c   :  { %4988 = vst [vmem:[#allocation2 + $0xc1] sm:$0xff] %v4924_v33  ;;  %v4925_v43 = vmax.f32 %v12264_v46, 0.0  ;;  %v5049_v60 = vld [vmem:[#allocation2 + $0x78] sm:$0xff] }
 0x55d   :  { %4986 = vst [vmem:[#allocation2 + $0xa9] sm:$0xff] %v4922_v2  ;;  %v4923_v47 = vmax.f32 %v12265_v54, 0.0  ;;  %v5052_v48 = vld [vmem:[#allocation2 + $0x98] sm:$0xff] }
 0x55e   :  { %4989 = vst [vmem:[#allocation2 + $0xc9] sm:$0xff] %v4925_v43  ;;  %v5050_v10 = vld [vmem:[#allocation2 + $0x80] sm:$0xff]  ;;  %11617 = vmatpush3.bf16.msra.mxu1 %v13494_v52  ;;  %v14530_v11 = vpack.c.bf16 %v4925_v43, %v4924_v33  ;;  %v5109_v5 = vpack.c.bf16 %v5052_v48, %v5051_v23 }
 0x55f   :  { %4987 = vst [vmem:[#allocation2 + $0xb1] sm:$0xff] %v4923_v47  ;;  %v11484_v19 = vpop.f32.mrb[16].mxu0  ;;  %v5108_v40 = vpack.c.bf16 %v5050_v10, %v5049_v60  ;;  %11618 = vmatprep.subr.bf16.mxu1 %v13495_v27  ;;  %v14532_v31 = vpack.c.bf16 %v4923_v47, %v4922_v2 }
 0x560   :  { %v12266_v41 = vadd.f32 %v11484_v19, %v14500_v22  ;;  %v4655_v3 = vpop.f32.mrb[17].mxu0 }
 0x561   :  { %v12267_v32 = vadd.f32 %v14500_v22, %v4655_v3  ;;  %v11485_v39 = vpop.f32.mrb[18].mxu0  ;;  %11555 = vmatmul.mubr.bf16.gmra.mrb[8].mxu1 %v5108_v40 }
 0x562   :  { %v4928_v0 = vmax.f32 %v12266_v41, 0.0  ;;  %v12268_v51 = vadd.f32 %v11485_v39, %v14500_v22  ;;  %v4658_v1 = vpop.f32.mrb[19].mxu0  ;;  %11558 = vmatprep.mubr.bf16.mxu1 %v5109_v5  ;;  %11619 = vmatpush3.bf16.msra.mxu1 %v13495_v27 }
 0x563   :  { %v4926_v53 = vmax.f32 %v12267_v32, 0.0  ;;  %v12269_v57 = vadd.f32 %v14500_v22, %v4658_v1  ;;  %11620 = vmatprep.subr.bf16.mxu1 %v13496_v62  ;;  %v5055_v36 = vld [vmem:[#allocation2 + $0xc0] sm:$0xff] }
 0x564   :  { %4992 = vst [vmem:[#allocation2 + $0xf1] sm:$0xff] %v4928_v0  ;;  %v4929_v16 = vmax.f32 %v12268_v51, 0.0  ;;  %v5053_v49 = vld [vmem:[#allocation2 + $0xa8] sm:$0xff] }
 0x565   :  { %4990 = vst [vmem:[#allocation2 + $0xd9] sm:$0xff] %v4926_v53  ;;  %v4927_v20 = vmax.f32 %v12269_v57, 0.0  ;;  %v5056_v34 = vld [vmem:[#allocation2 + $0xc8] sm:$0xff] }
 0x566   :  { %4993 = vst [vmem:[#allocation2 + $0xf9] sm:$0xff] %v4929_v16  ;;  %v5054_v38 = vld [vmem:[#allocation2 + $0xb0] sm:$0xff]  ;;  %11621 = vmatpush3.bf16.msra.mxu1 %v13496_v62  ;;  %v14538_v50 = vpack.c.bf16 %v4929_v16, %v4928_v0  ;;  %v5111_v63 = vpack.c.bf16 %v5056_v34, %v5055_v36 }
 0x567   :  { %4991 = vst [vmem:[#allocation2 + $0xe1] sm:$0xff] %v4927_v20  ;;  %v11488_v12 = vpop.f32.mrb[20].mxu0  ;;  %v5110_v15 = vpack.c.bf16 %v5054_v38, %v5053_v49  ;;  %11622 = vmatprep.subr.bf16.mxu1 %v13497_v17  ;;  %v14540_v25 = vpack.c.bf16 %v4927_v20, %v4926_v53 }
 0x568   :  { %v12270_v4 = vadd.f32 %v11488_v12, %v14500_v22  ;;  %v4671_v42 = vpop.f32.mrb[21].mxu0 }
 0x569   :  { %v12271_v6 = vadd.f32 %v14500_v22, %v4671_v42  ;;  %v11489_v59 = vpop.f32.mrb[22].mxu0  ;;  %11559 = vmatmul.mubr.bf16.gmra.mrb[12].mxu1 %v5110_v15 }
 0x56a   :  { %v4932_v35 = vmax.f32 %v12270_v4, 0.0  ;;  %v12272_v30 = vadd.f32 %v11489_v59, %v14500_v22  ;;  %v4674_v9 = vpop.f32.mrb[23].mxu0  ;;  %11562 = vmatprep.mubr.bf16.mxu1 %v5111_v63  ;;  %11623 = vmatpush3.bf16.msra.mxu1 %v13497_v17 }
 0x56b   :  { %v4930_v58 = vmax.f32 %v12271_v6, 0.0  ;;  %v12273_v44 = vadd.f32 %v14500_v22, %v4674_v9  ;;  %11624 = vmatprep.subr.bf16.mxu1 %v13498_v56  ;;  %v5059_v45 = vld [vmem:[#allocation2 + $0xf0] sm:$0xff] }
 0x56c   :  { %4996 = vst [vmem:[#allocation2 + $0x121] sm:$0xff] %v4932_v35  ;;  %v4933_v52 = vmax.f32 %v12272_v30, 0.0  ;;  %v5057_v13 = vld [vmem:[#allocation2 + $0xd8] sm:$0xff] }
 0x56d   :  { %4994 = vst [vmem:[#allocation2 + $0x109] sm:$0xff] %v4930_v58  ;;  %v4931_v55 = vmax.f32 %v12273_v44, 0.0  ;;  %v5060_v8 = vld [vmem:[#allocation2 + $0xf8] sm:$0xff] }
 0x56e   :  { %4997 = vst [vmem:[#allocation2 + $0x129] sm:$0xff] %v4933_v52  ;;  %v5058_v14 = vld [vmem:[#allocation2 + $0xe0] sm:$0xff]  ;;  %11625 = vmatpush3.bf16.msra.mxu1 %v13498_v56  ;;  %v14548_v21 = vpack.c.bf16 %v4933_v52, %v4932_v35  ;;  %v5113_v43 = vpack.c.bf16 %v5060_v8, %v5059_v45 }
 0x56f   :  { %4995 = vst [vmem:[#allocation2 + $0x111] sm:$0xff] %v4931_v55  ;;  %v11492_v33 = vpop.f32.mrb[24].mxu0  ;;  %v5112_v46 = vpack.c.bf16 %v5058_v14, %v5057_v13  ;;  %11690 = vmatprep.subr.bf16.mxu1 %v14546_v26  ;;  %v14551_v2 = vpack.c.bf16 %v4931_v55, %v4930_v58 }
 0x570   :  { %v12274_v54 = vadd.f32 %v11492_v33, %v14500_v22  ;;  %v4687_v27 = vpop.f32.mrb[25].mxu0 }
 0x571   :  { %v12275_v47 = vadd.f32 %v14500_v22, %v4687_v27  ;;  %v11493_v48 = vpop.f32.mrb[26].mxu0  ;;  %11563 = vmatmul.mubr.bf16.gmra.mrb[16].mxu1 %v5112_v46 }
 0x572   :  { %v4936_v60 = vmax.f32 %v12274_v54, 0.0  ;;  %v12276_v10 = vadd.f32 %v11493_v48, %v14500_v22  ;;  %v4690_v19 = vpop.f32.mrb[27].mxu0  ;;  %11566 = vmatprep.mubr.bf16.mxu1 %v5113_v43  ;;  %v5071_v54 = vld [vmem:[#allocation2 + $0x1b0] sm:$0xff] }
 0x573   :  { %v4934_v40 = vmax.f32 %v12275_v47, 0.0  ;;  %v12277_v23 = vadd.f32 %v14500_v22, %v4690_v19  ;;  %v5063_v1 = vld [vmem:[#allocation2 + $0x120] sm:$0xff] }
 0x574   :  { %5000 = vst [vmem:[#allocation2 + $0x151] sm:$0xff] %v4936_v60  ;;  %v4937_v62 = vmax.f32 %v12276_v10, 0.0  ;;  %v5061_v5 = vld [vmem:[#allocation2 + $0x108] sm:$0xff] }
 0x575   :  { %4998 = vst [vmem:[#allocation2 + $0x139] sm:$0xff] %v4934_v40  ;;  %v4935_v41 = vmax.f32 %v12277_v23, 0.0  ;;  %v5064_v3 = vld [vmem:[#allocation2 + $0x128] sm:$0xff] }
 0x576   :  { %5001 = vst [vmem:[#allocation2 + $0x159] sm:$0xff] %v4937_v62  ;;  %v5062_v32 = vld [vmem:[#allocation2 + $0x110] sm:$0xff]  ;;  %v14557_v39 = vpack.c.bf16 %v4937_v62, %v4936_v60  ;;  %v5115_v16 = vpack.c.bf16 %v5064_v3, %v5063_v1  ;;  %v5119_v60 = vpack.c.bf16 %v14450_v28, %v5071_v54 }
 0x577   :  { %4999 = vst [vmem:[#allocation2 + $0x141] sm:$0xff] %v4935_v41  ;;  %v11496_v0 = vpop.f32.mrb[28].mxu0  ;;  %v5114_v51 = vpack.c.bf16 %v5062_v32, %v5061_v5  ;;  %v14559_v53 = vpack.c.bf16 %v4935_v41, %v4934_v40 }
 0x578   :  { %v12278_v57 = vadd.f32 %v11496_v0, %v14500_v22  ;;  %v4703_v17 = vpop.f32.mrb[29].mxu0 }
 0x579   :  { %v12279_v20 = vadd.f32 %v14500_v22, %v4703_v17  ;;  %v11497_v34 = vpop.f32.mrb[30].mxu0  ;;  %11567 = vmatmul.mubr.bf16.gmra.mrb[20].mxu1 %v5114_v51 }
 0x57a   :  { %v4940_v49 = vmax.f32 %v12278_v57, 0.0  ;;  %v12280_v38 = vadd.f32 %v11497_v34, %v14500_v22  ;;  %v4706_v12 = vpop.f32.mrb[31].mxu0  ;;  %11570 = vmatprep.mubr.bf16.mxu1 %v5115_v16 }
 0x57b   :  { %v4938_v15 = vmax.f32 %v12279_v20, 0.0  ;;  %v12281_v36 = vadd.f32 %v14500_v22, %v4706_v12  ;;  %v5067_v30 = vld [vmem:[#allocation2 + $0x150] sm:$0xff] }
 0x57c   :  { %5004 = vst [vmem:[#allocation2 + $0x181] sm:$0xff] %v4940_v49  ;;  %v4941_v56 = vmax.f32 %v12280_v38, 0.0  ;;  %v5065_v63 = vld [vmem:[#allocation2 + $0x138] sm:$0xff] }
 0x57d   :  { %5002 = vst [vmem:[#allocation2 + $0x169] sm:$0xff] %v4938_v15  ;;  %v4939_v4 = vmax.f32 %v12281_v36, 0.0  ;;  %v5068_v42 = vld [vmem:[#allocation2 + $0x158] sm:$0xff] }
 0x57e   :  { %5005 = vst [vmem:[#allocation2 + $0x189] sm:$0xff] %v4941_v56  ;;  %v5066_v6 = vld [vmem:[#allocation2 + $0x140] sm:$0xff]  ;;  %v5117_v52 = vpack.c.bf16 %v5068_v42, %v5067_v30 }
 0x57f   :  { %5003 = vst [vmem:[#allocation2 + $0x171] sm:$0xff] %v4939_v4  ;;  %v11500_v59 = vpop.f32.mrb[32].mxu0  ;;  %v5116_v35 = vpack.c.bf16 %v5066_v6, %v5065_v63  ;;  %v14565_v9 = vpack.c.bf16 %v4939_v4, %v4938_v15 }
 0x580   :  { %v12282_v58 = vadd.f32 %v11500_v59, %v14500_v22  ;;  %v4719_v44 = vpop.f32.mrb[33].mxu0 }
 0x581   :  { %v12283_v55 = vadd.f32 %v14500_v22, %v4719_v44  ;;  %v11501_v8 = vpop.f32.mrb[34].mxu0  ;;  %11571 = vmatmul.mubr.bf16.gmra.mrb[24].mxu1 %v5116_v35 }
 0x582   :  { %v4944_v13 = vmax.f32 %v12282_v58, 0.0  ;;  %v12284_v14 = vadd.f32 %v11501_v8, %v14500_v22  ;;  %v4722_v33 = vpop.f32.mrb[35].mxu0  ;;  %11574 = vmatprep.mubr.bf16.mxu1 %v5117_v52 }
 0x583   :  { %v4942_v46 = vmax.f32 %v12283_v55, 0.0  ;;  %v12285_v45 = vadd.f32 %v14500_v22, %v4722_v33 }
 0x584   :  { %5008 = vst [vmem:[#allocation2 + $0x1e1] sm:$0xff] %v4944_v13  ;;  %v4945_v27 = vmax.f32 %v12284_v14, 0.0  ;;  %v5069_v47 = vld [vmem:[#allocation2 + $0x168] sm:$0xff] }
 0x585   :  { %5006 = vst [vmem:[#allocation2 + $0x1c9] sm:$0xff] %v4942_v46  ;;  %v4943_v43 = vmax.f32 %v12285_v45, 0.0 }
 0x586   :  { %5009 = vst [vmem:[#allocation2 + $0x1e9] sm:$0xff] %v4945_v27  ;;  %v5070_v48 = vld [vmem:[#allocation2 + $0x170] sm:$0xff]  ;;  %v14572_v10 = vpack.c.bf16 %v4945_v27, %v4944_v13 }
 0x587   :  { %5007 = vst [vmem:[#allocation2 + $0x1d1] sm:$0xff] %v4943_v43  ;;  %v11504_v19 = vpop.f32.mrb[36].mxu0  ;;  %v5118_v40 = vpack.c.bf16 %v5070_v48, %v5069_v47  ;;  %v14574_v23 = vpack.c.bf16 %v4943_v43, %v4942_v46 }
 0x588   :  { %v12286_v62 = vadd.f32 %v11504_v19, %v14500_v22  ;;  %v4735_v41 = vpop.f32.mrb[37].mxu0 }
 0x589   :  { %v12287_v3 = vadd.f32 %v14500_v22, %v4735_v41  ;;  %v11505_v5 = vpop.f32.mrb[38].mxu0  ;;  %11575 = vmatmul.mubr.bf16.gmra.mrb[28].mxu1 %v5118_v40 }
 0x58a   :  { %v4948_v32 = vmax.f32 %v12286_v62, 0.0  ;;  %v12288_v0 = vadd.f32 %v11505_v5, %v14500_v22  ;;  %v4738_v51 = vpop.f32.mrb[39].mxu0  ;;  %11578 = vmatprep.mubr.bf16.mxu1 %v5119_v60 }
 0x58b   :  { %v4946_v28 = vmax.f32 %v12287_v3, 0.0  ;;  %v12289_v1 = vadd.f32 %v14500_v22, %v4738_v51  ;;  %v5075_v15 = vld [vmem:[#allocation2 + $0x1e0] sm:$0xff] }
 0x58c   :  { %5012 = vst [vmem:[#allocation2 + $0x211] sm:$0xff] %v4948_v32  ;;  %v4949_v57 = vmax.f32 %v12288_v0, 0.0  ;;  %v5073_v20 = vld [vmem:[#allocation2 + $0x1c8] sm:$0xff] }
 0x58d   :  { %5010 = vst [vmem:[#allocation2 + $0x1f9] sm:$0xff] %v4946_v28  ;;  %v4947_v17 = vmax.f32 %v12289_v1, 0.0  ;;  %v5076_v16 = vld [vmem:[#allocation2 + $0x1e8] sm:$0xff] }
 0x58e   :  { %5013 = vst [vmem:[#allocation2 + $0x219] sm:$0xff] %v4949_v57  ;;  %v5074_v34 = vld [vmem:[#allocation2 + $0x1d0] sm:$0xff]  ;;  %v14580_v49 = vpack.c.bf16 %v4949_v57, %v4948_v32  ;;  %v5121_v42 = vpack.c.bf16 %v5076_v16, %v5075_v15 }
 0x58f   :  { %5011 = vst [vmem:[#allocation2 + $0x201] sm:$0xff] %v4947_v17  ;;  %v11508_v38 = vpop.f32.mrb[40].mxu0  ;;  %v5120_v12 = vpack.c.bf16 %v5074_v34, %v5073_v20  ;;  %v14582_v36 = vpack.c.bf16 %v4947_v17, %v4946_v28 }
 0x590   :  { %v12290_v56 = vadd.f32 %v11508_v38, %v14500_v22  ;;  %v4751_v4 = vpop.f32.mrb[41].mxu0 }
 0x591   :  { %v12291_v63 = vadd.f32 %v14500_v22, %v4751_v4  ;;  %v11509_v6 = vpop.f32.mrb[42].mxu0  ;;  %11579 = vmatmul.mubr.bf16.gmra.mrb[32].mxu1 %v5120_v12 }
 0x592   :  { %v4952_v59 = vmax.f32 %v12290_v56, 0.0  ;;  %v12292_v35 = vadd.f32 %v11509_v6, %v14500_v22  ;;  %v4754_v30 = vpop.f32.mrb[43].mxu0  ;;  %11582 = vmatprep.mubr.bf16.mxu1 %v5121_v42 }
 0x593   :  { %v4950_v58 = vmax.f32 %v12291_v63, 0.0  ;;  %v12293_v44 = vadd.f32 %v14500_v22, %v4754_v30  ;;  %v5079_v54 = vld [vmem:[#allocation2 + $0x210] sm:$0xff] }
 0x594   :  { %5016 = vst [vmem:[#allocation2 + $0x241] sm:$0xff] %v4952_v59  ;;  %v4953_v52 = vmax.f32 %v12292_v35, 0.0  ;;  %v5077_v13 = vld [vmem:[#allocation2 + $0x1f8] sm:$0xff] }
 0x595   :  { %5014 = vst [vmem:[#allocation2 + $0x229] sm:$0xff] %v4950_v58  ;;  %v4951_v55 = vmax.f32 %v12293_v44, 0.0  ;;  %v5080_v8 = vld [vmem:[#allocation2 + $0x218] sm:$0xff] }
 0x596   :  { %5017 = vst [vmem:[#allocation2 + $0x249] sm:$0xff] %v4953_v52  ;;  %v5078_v14 = vld [vmem:[#allocation2 + $0x200] sm:$0xff]  ;;  %v14588_v33 = vpack.c.bf16 %v4953_v52, %v4952_v59  ;;  %v5123_v48 = vpack.c.bf16 %v5080_v8, %v5079_v54 }
 0x597   :  { %5015 = vst [vmem:[#allocation2 + $0x231] sm:$0xff] %v4951_v55  ;;  %v11512_v46 = vpop.f32.mrb[44].mxu0  ;;  %v5122_v45 = vpack.c.bf16 %v5078_v14, %v5077_v13  ;;  %v14590_v27 = vpack.c.bf16 %v4951_v55, %v4950_v58 }
 0x598   :  { %v12294_v43 = vadd.f32 %v11512_v46, %v14500_v22  ;;  %v4767_v47 = vpop.f32.mrb[45].mxu0 }
 0x599   :  { %v12295_v60 = vadd.f32 %v14500_v22, %v4767_v47  ;;  %v11513_v19 = vpop.f32.mrb[46].mxu0  ;;  %11583 = vmatmul.mubr.bf16.gmra.mrb[36].mxu1 %v5122_v45 }
 0x59a   :  { %v4956_v40 = vmax.f32 %v12294_v43, 0.0  ;;  %v12296_v62 = vadd.f32 %v11513_v19, %v14500_v22  ;;  %v4770_v41 = vpop.f32.mrb[47].mxu0  ;;  %11586 = vmatprep.mubr.bf16.mxu1 %v5123_v48 }
 0x59b   :  { %v4954_v3 = vmax.f32 %v12295_v60, 0.0  ;;  %v12297_v5 = vadd.f32 %v14500_v22, %v4770_v41  ;;  %v5083_v20 = vld [vmem:[#allocation2 + $0x240] sm:$0xff] }
 0x59c   :  { %5020 = vst [vmem:[#allocation2 + $0x271] sm:$0xff] %v4956_v40  ;;  %v4957_v32 = vmax.f32 %v12296_v62, 0.0  ;;  %v5081_v28 = vld [vmem:[#allocation2 + $0x228] sm:$0xff] }
 0x59d   :  { %5018 = vst [vmem:[#allocation2 + $0x259] sm:$0xff] %v4954_v3  ;;  %v4955_v0 = vmax.f32 %v12297_v5, 0.0  ;;  %v5084_v51 = vld [vmem:[#allocation2 + $0x248] sm:$0xff] }
 0x59e   :  { %5021 = vst [vmem:[#allocation2 + $0x279] sm:$0xff] %v4957_v32  ;;  %v5082_v1 = vld [vmem:[#allocation2 + $0x230] sm:$0xff]  ;;  %v14596_v57 = vpack.c.bf16 %v4957_v32, %v4956_v40  ;;  %v5125_v15 = vpack.c.bf16 %v5084_v51, %v5083_v20 }
 0x59f   :  { %5019 = vst [vmem:[#allocation2 + $0x261] sm:$0xff] %v4955_v0  ;;  %v11516_v17 = vpop.f32.mrb[48].mxu0  ;;  %v5124_v16 = vpack.c.bf16 %v5082_v1, %v5081_v28  ;;  %v14598_v34 = vpack.c.bf16 %v4955_v0, %v4954_v3 }
 0x5a0   :  { %v12298_v38 = vadd.f32 %v11516_v17, %v14500_v22  ;;  %v4783_v12 = vpop.f32.mrb[49].mxu0 }
 0x5a1   :  { %v12299_v56 = vadd.f32 %v14500_v22, %v4783_v12  ;;  %v11517_v4 = vpop.f32.mrb[50].mxu0  ;;  %11587 = vmatmul.mubr.bf16.gmra.mrb[40].mxu1 %v5124_v16 }
 0x5a2   :  { %v4960_v42 = vmax.f32 %v12298_v38, 0.0  ;;  %v12300_v63 = vadd.f32 %v11517_v4, %v14500_v22  ;;  %v4786_v6 = vpop.f32.mrb[51].mxu0  ;;  %11590 = vmatprep.mubr.bf16.mxu1 %v5125_v15 }
 0x5a3   :  { %v4958_v59 = vmax.f32 %v12299_v56, 0.0  ;;  %v12301_v35 = vadd.f32 %v14500_v22, %v4786_v6  ;;  %v5087_v46 = vld [vmem:[#allocation2 + $0x270] sm:$0xff] }
 0x5a4   :  { %5024 = vst [vmem:[#allocation2 + $0x2a1] sm:$0xff] %v4960_v42  ;;  %v4961_v30 = vmax.f32 %v12300_v63, 0.0  ;;  %v5085_v52 = vld [vmem:[#allocation2 + $0x258] sm:$0xff] }
 0x5a5   :  { %5022 = vst [vmem:[#allocation2 + $0x289] sm:$0xff] %v4958_v59  ;;  %v4959_v58 = vmax.f32 %v12301_v35, 0.0  ;;  %v5088_v44 = vld [vmem:[#allocation2 + $0x278] sm:$0xff] }
 0x5a6   :  { %5025 = vst [vmem:[#allocation2 + $0x2a9] sm:$0xff] %v4961_v30  ;;  %v5086_v55 = vld [vmem:[#allocation2 + $0x260] sm:$0xff]  ;;  %v14604_v8 = vpack.c.bf16 %v4961_v30, %v4960_v42  ;;  %v5127_v47 = vpack.c.bf16 %v5088_v44, %v5087_v46 }
 0x5a7   :  { %5023 = vst [vmem:[#allocation2 + $0x291] sm:$0xff] %v4959_v58  ;;  %v11520_v13 = vpop.f32.mrb[52].mxu0  ;;  %v5126_v14 = vpack.c.bf16 %v5086_v55, %v5085_v52  ;;  %v14606_v45 = vpack.c.bf16 %v4959_v58, %v4958_v59 }
 0x5a8   :  { %v12302_v54 = vadd.f32 %v11520_v13, %v14500_v22  ;;  %v4799_v43 = vpop.f32.mrb[53].mxu0 }
 0x5a9   :  { %v12303_v48 = vadd.f32 %v14500_v22, %v4799_v43  ;;  %v11521_v60 = vpop.f32.mrb[54].mxu0  ;;  %11591 = vmatmul.mubr.bf16.gmra.mrb[44].mxu1 %v5126_v14 }
 0x5aa   :  { %v4964_v19 = vmax.f32 %v12302_v54, 0.0  ;;  %v12304_v40 = vadd.f32 %v11521_v60, %v14500_v22  ;;  %v4802_v62 = vpop.f32.mrb[55].mxu0  ;;  %11594 = vmatprep.mubr.bf16.mxu1 %v5127_v47 }
 0x5ab   :  { %v4962_v41 = vmax.f32 %v12303_v48, 0.0  ;;  %v12305_v3 = vadd.f32 %v14500_v22, %v4802_v62  ;;  %v5091_v20 = vld [vmem:[#allocation2 + $0x2a0] sm:$0xff] }
 0x5ac   :  { %5028 = vst [vmem:[#allocation2 + $0x2d1] sm:$0xff] %v4964_v19  ;;  %v4965_v5 = vmax.f32 %v12304_v40, 0.0  ;;  %v5089_v51 = vld [vmem:[#allocation2 + $0x288] sm:$0xff] }
 0x5ad   :  { %5026 = vst [vmem:[#allocation2 + $0x2b9] sm:$0xff] %v4962_v41  ;;  %v4963_v32 = vmax.f32 %v12305_v3, 0.0  ;;  %v5092_v0 = vld [vmem:[#allocation2 + $0x2a8] sm:$0xff] }
 0x5ae   :  { %5029 = vst [vmem:[#allocation2 + $0x2d9] sm:$0xff] %v4965_v5  ;;  %v5090_v28 = vld [vmem:[#allocation2 + $0x290] sm:$0xff]  ;;  %v14612_v1 = vpack.c.bf16 %v4965_v5, %v4964_v19  ;;  %v14617_v56 = vpack.c.bf16 %v5092_v0, %v5091_v20 }
 0x5af   :  { %5027 = vst [vmem:[#allocation2 + $0x2c1] sm:$0xff] %v4963_v32  ;;  %v11524_v17 = vpop.f32.mrb[56].mxu0  ;;  %v5128_v16 = vpack.c.bf16 %v5090_v28, %v5089_v51  ;;  %v14614_v38 = vpack.c.bf16 %v4963_v32, %v4962_v41 }
 0x5b0   :  { %v12306_v12 = vadd.f32 %v11524_v17, %v14500_v22  ;;  %v4815_v15 = vpop.f32.mrb[57].mxu0 }
 0x5b1   :  { %v12307_v4 = vadd.f32 %v14500_v22, %v4815_v15  ;;  %v11525_v42 = vpop.f32.mrb[58].mxu0  ;;  %11595 = vmatmul.mubr.bf16.gmra.mrb[48].mxu1 %v5128_v16 }
 0x5b2   :  { %v4968_v63 = vmax.f32 %v12306_v12, 0.0  ;;  %v12308_v6 = vadd.f32 %v11525_v42, %v14500_v22  ;;  %v4818_v59 = vpop.f32.mrb[59].mxu0  ;;  %11598 = vmatprep.mubr.bf16.mxu1 %v14617_v56 }
 0x5b3   :  { %v4966_v35 = vmax.f32 %v12307_v4, 0.0  ;;  %v12309_v30 = vadd.f32 %v14500_v22, %v4818_v59  ;;  %v5095_v43 = vld [vmem:[#allocation2 + $0x2d0] sm:$0xff] }
 0x5b4   :  { %5032 = vst [vmem:[#allocation2 + $0x301] sm:$0xff] %v4968_v63  ;;  %v4969_v58 = vmax.f32 %v12308_v6, 0.0  ;;  %v5093_v55 = vld [vmem:[#allocation2 + $0x2b8] sm:$0xff] }
 0x5b5   :  { %5030 = vst [vmem:[#allocation2 + $0x2e9] sm:$0xff] %v4966_v35  ;;  %v4967_v44 = vmax.f32 %v12309_v30, 0.0  ;;  %v5096_v52 = vld [vmem:[#allocation2 + $0x2d8] sm:$0xff] }
 0x5b6   :  { %5033 = vst [vmem:[#allocation2 + $0x309] sm:$0xff] %v4969_v58  ;;  %v5094_v13 = vld [vmem:[#allocation2 + $0x2c0] sm:$0xff]  ;;  %v14623_v14 = vpack.c.bf16 %v4969_v58, %v4968_v63  ;;  %v14630_v19 = vpack.c.bf16 %v5096_v52, %v5095_v43  ;;  %v5559_v63 = vld [vmem:[#allocation2 + $0x9] sm:$0xff]  ;;  %v13502_v52 = vld [vmem:[#allocation8 + $0x98] sm:$0xff]  }
 0x5b7   :  { %5031 = vst [vmem:[#allocation2 + $0x2f1] sm:$0xff] %v4967_v44  ;;  %v11528_v46 = vpop.f32.mrb[60].mxu0  ;;  %v14625_v54 = vpack.c.bf16 %v5094_v13, %v5093_v55  ;;  %v14627_v47 = vpack.c.bf16 %v4967_v44, %v4966_v35  ;;  %v13500_v58 = vld [vmem:[#allocation8 + $0x88] sm:$0xff]   ;;  %v13501_v44 = vld [vmem:[#allocation8 + $0x90] sm:$0xff]   ;;  %v13503_v55 = vld [vmem:[#allocation8 + $0xa0] sm:$0xff]  }
 0x5b8   :  { %v12310_v48 = vadd.f32 %v11528_v46, %v14500_v22  ;;  %v4831_v60 = vpop.f32.mrb[61].mxu0  ;;  %v13504_v13 = vld [vmem:[#allocation8 + $0xa8] sm:$0xff]  }
 0x5b9   :  { %v12311_v40 = vadd.f32 %v14500_v22, %v4831_v60  ;;  %v11529_v62 = vpop.f32.mrb[62].mxu0  ;;  %11599 = vmatmul.mubr.bf16.gmra.mrb[52].mxu1 %v14625_v54  ;;  %v13512_v43 = vld [vmem:[#allocation8 + $0xe8] sm:$0xff]  }
 0x5ba   :  { %v4972_v41 = vmax.f32 %v12310_v48, 0.0  ;;  %v12312_v3 = vadd.f32 %v11529_v62, %v14500_v22  ;;  %v4834_v5 = vpop.f32.mrb[63].mxu0  ;;  %11602 = vmatprep.mubr.bf16.mxu1 %v14630_v19  ;;  %v13513_v48 = vld [vmem:[#allocation8 + $0xf0] sm:$0xff]   ;;  %v6088_v62 = vld [vmem:[#allocation2 + $0xc2] sm:$0xff] }
 0x5bb   :  { %v4970_v32 = vmax.f32 %v12311_v40, 0.0  ;;  %v12313_v0 = vadd.f32 %v14500_v22, %v4834_v5  ;;  %v5099_v15 = vld [vmem:[#allocation2 + $0x300] sm:$0xff]  ;;  %v6086_v60 = vld [vmem:[#allocation2 + $0xaa] sm:$0xff]  ;;  %v6087_v40 = vld [vmem:[#allocation2 + $0xb2] sm:$0xff] }
 0x5bc   :  { %5036 = vst [vmem:[#allocation2 + $0x331] sm:$0xff] %v4972_v41  ;;  %v4973_v51 = vmax.f32 %v12312_v3, 0.0  ;;  %v5097_v16 = vld [vmem:[#allocation2 + $0x2e8] sm:$0xff]  ;;  %v14697_v3 = vpack.c.bf16 %v6087_v40, %v6086_v60  ;;  %v13514_v5 = vld [vmem:[#allocation8 + $0xf8] sm:$0xff]  }
 0x5bd   :  { %5034 = vst [vmem:[#allocation2 + $0x319] sm:$0xff] %v4970_v32  ;;  %v4971_v28 = vmax.f32 %v12313_v0, 0.0  ;;  %v5100_v17 = vld [vmem:[#allocation2 + $0x308] sm:$0xff]  ;;  %v14703_v0 = vld [vmem:[#allocation8 + $0x100] sm:$0xff]   ;;  %v6120_v60 = vld [vmem:[#allocation2 + $0x272] sm:$0xff] }
 0x5be   :  { %5037 = vst [vmem:[#allocation2 + $0x339] sm:$0xff] %v4973_v51  ;;  %v5098_v20 = vld [vmem:[#allocation2 + $0x2f0] sm:$0xff]  ;;  %v14641_v42 = vpack.c.bf16 %v5100_v17, %v5099_v15  ;;  %v5558_v22 = vld [vmem:[#allocation2 + $0x1] sm:$0xff] }
 0x5bf   :  { %5035 = vst [vmem:[#allocation2 + $0x321] sm:$0xff] %v4971_v28  ;;  %v14637_v12 = vpack.c.bf16 %v5098_v20, %v5097_v16  ;;  %v14639_v4 = vpack.c.bf16 %v4971_v28, %v4970_v32  ;;  %v5622_v35 = vpack.c.bf16 %v5559_v63, %v5558_v22  ;;  %v6089_v41 = vld [vmem:[#allocation2 + $0xca] sm:$0xff]  ;;  %v6090_v51 = vld [vmem:[#allocation2 + $0xda] sm:$0xff]  ;;  %v6091_v28 = vld [vmem:[#allocation2 + $0xe2] sm:$0xff] }
 0x5c0   :  { %v14699_v32 = vpack.c.bf16 %v6089_v41, %v6088_v62  ;;  %v6092_v17 = vld [vmem:[#allocation2 + $0xf2] sm:$0xff]  ;;  %v6093_v16 = vld [vmem:[#allocation2 + $0xfa] sm:$0xff]  ;;  %v14705_v20 = vpack.c.bf16 %v6091_v28, %v6090_v51  ;;  %v6096_v63 = vld [vmem:[#allocation2 + $0x122] sm:$0xff] }
 0x5c1   :  { %11603 = vmatmul.mubr.bf16.gmra.mrb[56].mxu1 %v14637_v12  ;;  %v14708_v15 = vpack.c.bf16 %v6093_v16, %v6092_v17  ;;  %v6095_v22 = vld [vmem:[#allocation2 + $0x112] sm:$0xff]  ;;  %v6121_v40 = vld [vmem:[#allocation2 + $0x27a] sm:$0xff]  ;;  %v6124_v28 = vld [vmem:[#allocation2 + $0x2a2] sm:$0xff] }
 0x5c2   :  { %11606 = vmatprep.mubr.bf16.mxu1 %v14641_v42  ;;  %v14747_v41 = vpack.c.bf16 %v6121_v40, %v6120_v60  ;;  %v6123_v51 = vld [vmem:[#allocation2 + $0x292] sm:$0xff]  ;;  %v6125_v17 = vld [vmem:[#allocation2 + $0x2aa] sm:$0xff]  ;;  %v6595_v40 = vld [vmem:[#allocation2 + $0x80] sm:$0xff] }
 0x5c3   :  { %v6593_v60 = vld [vmem:[#allocation2 + $0x68] sm:$0xff] }
 0x5c4   :  { %v5101_v6 = vld [vmem:[#allocation2 + $0x318] sm:$0xff] }
 0x5c6   :  { %v5102_v59 = vld [vmem:[#allocation2 + $0x320] sm:$0xff] }
 0x5c7   :  { %v14645_v30 = vpack.c.bf16 %v5102_v59, %v5101_v6  ;;  %v6097_v6 = vld [vmem:[#allocation2 + $0x12a] sm:$0xff] }
 0x5c9   :  { %11607 = vmatmul.mubr.bf16.gmra.mrb[60].mxu1 %v14645_v30 }
 0x5ca   :  { %11626 = vmatprep.mubr.bf16.mxu1 %v5622_v35  ;;  %v14714_v35 = vpack.c.bf16 %v6097_v6, %v6096_v63  ;;  %v6127_v63 = vld [vmem:[#allocation2 + $0x2c2] sm:$0xff]  ;;  %v6128_v6 = vld [vmem:[#allocation2 + $0x2d2] sm:$0xff] }
 0x5d1   :  { %11627 = vmatmul.mubr.bf16.vlgmr.msra.gmra.mrb[0].mxu1 %v14508_v29  ;;  %v13506_v29 = vld [vmem:[#allocation8 + $0xb8] sm:$0xff]  }
 0x5d2   :  { %11630 = vmatprep.mubr.bf16.mxu1 %v14506_v18  ;;  %11691 = vmatpush3.bf16.msra.mxu1 %v14546_v26  ;;  %v13505_v18 = vld [vmem:[#allocation8 + $0xb0] sm:$0xff]   ;;  %v6075_v26 = vld [vmem:[#allocation2 + $0x22] sm:$0xff] }
 0x5d3   :  { %11692 = vmatprep.subr.bf16.mxu1 %v13500_v58 }
 0x5d6   :  { %11693 = vmatpush3.bf16.msra.mxu1 %v13500_v58  ;;  %v6098_v58 = vld [vmem:[#allocation2 + $0x13a] sm:$0xff] }
 0x5d7   :  { %11694 = vmatprep.subr.bf16.mxu1 %v13501_v44 }
 0x5d9   :  { %11631 = vmatmul.mubr.bf16.gmra.mrb[4].mxu1 %v14516_v37  ;;  %v5590_v37 = vld [vmem:[#allocation2 + $0x1b1] sm:$0xff] }
 0x5da   :  { %11634 = vmatprep.mubr.bf16.mxu1 %v14514_v7  ;;  %11695 = vmatpush3.bf16.msra.mxu1 %v13501_v44  ;;  %v13507_v7 = vld [vmem:[#allocation8 + $0xc0] sm:$0xff]  }
 0x5db   :  { %11696 = vmatprep.subr.bf16.mxu1 %v13502_v52  ;;  %v6099_v44 = vld [vmem:[#allocation2 + $0x142] sm:$0xff] }
 0x5de   :  { %11697 = vmatpush3.bf16.msra.mxu1 %v13502_v52  ;;  %v6100_v52 = vld [vmem:[#allocation2 + $0x152] sm:$0xff] }
 0x5df   :  { %11698 = vmatprep.subr.bf16.mxu1 %v13503_v55 }
 0x5e1   :  { %11635 = vmatmul.mubr.bf16.gmra.mrb[8].mxu1 %v14524_v61 }
 0x5e2   :  { %11638 = vmatprep.mubr.bf16.mxu1 %v14522_v24  ;;  %11699 = vmatpush3.bf16.msra.mxu1 %v13503_v55  ;;  %v5591_v24 = vld [vmem:[#allocation2 + $0x1b9] sm:$0xff] }
 0x5e3   :  { %11700 = vmatprep.subr.bf16.mxu1 %v13504_v13  ;;  %v5638_v61 = vpack.c.bf16 %v5591_v24, %v5590_v37  ;;  %v6101_v55 = vld [vmem:[#allocation2 + $0x15a] sm:$0xff]  ;;  %v6102_v37 = vld [vmem:[#allocation2 + $0x16a] sm:$0xff]  ;;  %v6103_v24 = vld [vmem:[#allocation2 + $0x172] sm:$0xff] }
 0x5e6   :  { %11701 = vmatpush3.bf16.msra.mxu1 %v13504_v13  ;;  %v14718_v13 = vpack.c.bf16 %v6099_v44, %v6098_v58  ;;  %v6129_v58 = vld [vmem:[#allocation2 + $0x2da] sm:$0xff] }
 0x5e7   :  { %11702 = vmatprep.subr.bf16.mxu1 %v13505_v18 }
 0x5e9   :  { %11639 = vmatmul.mubr.bf16.gmra.mrb[12].mxu1 %v14532_v31  ;;  %v6073_v31 = vld [vmem:[#allocation2 + $0xa] sm:$0xff] }
 0x5ea   :  { %11642 = vmatprep.mubr.bf16.mxu1 %v14530_v11  ;;  %11703 = vmatpush3.bf16.msra.mxu1 %v13505_v18  ;;  %v6072_v11 = vld [vmem:[#allocation2 + $0x2] sm:$0xff]  ;;  %v14720_v18 = vpack.c.bf16 %v6101_v55, %v6100_v52  ;;  %v14759_v52 = vpack.c.bf16 %v6129_v58, %v6128_v6  ;;  %v6130_v55 = vld [vmem:[#allocation2 + $0x2ea] sm:$0xff] }
 0x5eb   :  { %11704 = vmatprep.subr.bf16.mxu1 %v13506_v29  ;;  %v6599_v6 = vld [vmem:[#allocation2 + $0xb0] sm:$0xff] }
 0x5ec   :  { %v6596_v58 = vld [vmem:[#allocation2 + $0x90] sm:$0xff] }
 0x5ee   :  { %11705 = vmatpush3.bf16.msra.mxu1 %v13506_v29  ;;  %v6104_v29 = vld [vmem:[#allocation2 + $0x1b2] sm:$0xff] }
 0x5ef   :  { %11770 = vmatprep.subr.bf16.mxu1 %v13507_v7 }
 0x5f1   :  { %11643 = vmatmul.mubr.bf16.gmra.mrb[16].mxu1 %v14540_v25  ;;  %v6074_v25 = vld [vmem:[#allocation2 + $0x1a] sm:$0xff] }
 0x5f2   :  { %11646 = vmatprep.mubr.bf16.mxu1 %v14538_v50  ;;  %v6136_v50 = vpack.c.bf16 %v6073_v31, %v6072_v11  ;;  %v14724_v11 = vpack.c.bf16 %v6103_v24, %v6102_v37  ;;  %v6106_v31 = vld [vmem:[#allocation2 + $0x1ca] sm:$0xff] }
 0x5f3   :  { %v6133_v37 = vld [vmem:[#allocation2 + $0x30a] sm:$0xff] }
 0x5f9   :  { %11647 = vmatmul.mubr.bf16.gmra.mrb[20].mxu1 %v14551_v2  ;;  %v6077_v2 = vld [vmem:[#allocation2 + $0x3a] sm:$0xff] }
 0x5fa   :  { %11650 = vmatprep.mubr.bf16.mxu1 %v14548_v21  ;;  %v6076_v21 = vld [vmem:[#allocation2 + $0x32] sm:$0xff] }
 0x601   :  { %11651 = vmatmul.mubr.bf16.gmra.mrb[24].mxu1 %v14559_v53  ;;  %v13508_v53 = vld [vmem:[#allocation8 + $0xc8] sm:$0xff]  }
 0x602   :  { %11654 = vmatprep.mubr.bf16.mxu1 %v14557_v39  ;;  %v14679_v39 = vpack.c.bf16 %v6075_v26, %v6074_v25  ;;  %v6108_v25 = vld [vmem:[#allocation2 + $0x1e2] sm:$0xff]  ;;  %v6109_v26 = vld [vmem:[#allocation2 + $0x1ea] sm:$0xff] }
 0x609   :  { %11655 = vmatmul.mubr.bf16.gmra.mrb[28].mxu1 %v14565_v9  ;;  %v14681_v9 = vpack.c.bf16 %v6077_v2, %v6076_v21  ;;  %v14729_v2 = vpack.c.bf16 %v6109_v26, %v6108_v25  ;;  %v6587_v25 = vld [vmem:[#allocation2 + $0x20] sm:$0xff] }
 0x60a   :  { %11658 = vmatprep.mubr.bf16.mxu1 %v5638_v61 }
 0x611   :  { %11659 = vmatmul.mubr.bf16.gmra.mrb[32].mxu1 %v14574_v23  ;;  %v6078_v23 = vld [vmem:[#allocation2 + $0x4a] sm:$0xff] }
 0x612   :  { %11662 = vmatprep.mubr.bf16.mxu1 %v14572_v10  ;;  %v13509_v10 = vld [vmem:[#allocation8 + $0xd0] sm:$0xff]  }
 0x619   :  { %11663 = vmatmul.mubr.bf16.gmra.mrb[36].mxu1 %v14582_v36  ;;  %v6080_v36 = vld [vmem:[#allocation2 + $0x62] sm:$0xff] }
 0x61a   :  { %11666 = vmatprep.mubr.bf16.mxu1 %v14580_v49  ;;  %v6079_v49 = vld [vmem:[#allocation2 + $0x52] sm:$0xff] }
 0x621   :  { %11667 = vmatmul.mubr.bf16.gmra.mrb[40].mxu1 %v14590_v27  ;;  %v14685_v27 = vpack.c.bf16 %v6079_v49, %v6078_v23  ;;  %v6112_v23 = vld [vmem:[#allocation2 + $0x212] sm:$0xff]  ;;  %v6113_v49 = vld [vmem:[#allocation2 + $0x21a] sm:$0xff] }
 0x622   :  { %11670 = vmatprep.mubr.bf16.mxu1 %v14588_v33  ;;  %v6081_v33 = vld [vmem:[#allocation2 + $0x6a] sm:$0xff] }
 0x629   :  { %11671 = vmatmul.mubr.bf16.gmra.mrb[44].mxu1 %v14598_v34  ;;  %v14687_v34 = vpack.c.bf16 %v6081_v33, %v6080_v36  ;;  %v14735_v33 = vpack.c.bf16 %v6113_v49, %v6112_v23  ;;  %v6589_v23 = vld [vmem:[#allocation2 + $0x38] sm:$0xff]  ;;  %v6591_v49 = vld [vmem:[#allocation2 + $0x50] sm:$0xff] }
 0x62a   :  { %11674 = vmatprep.mubr.bf16.mxu1 %v14596_v57  ;;  %v13510_v57 = vld [vmem:[#allocation8 + $0xd8] sm:$0xff]  }
 0x631   :  { %11675 = vmatmul.mubr.bf16.gmra.mrb[48].mxu1 %v14606_v45  ;;  %v6082_v45 = vld [vmem:[#allocation2 + $0x7a] sm:$0xff] }
 0x632   :  { %11678 = vmatprep.mubr.bf16.mxu1 %v14604_v8  ;;  %v13511_v8 = vld [vmem:[#allocation8 + $0xe0] sm:$0xff]  }
 0x639   :  { %11679 = vmatmul.mubr.bf16.gmra.mrb[52].mxu1 %v14614_v38  ;;  %v6084_v38 = vld [vmem:[#allocation2 + $0x92] sm:$0xff] }
 0x63a   :  { %11682 = vmatprep.mubr.bf16.mxu1 %v14612_v1  ;;  %v6083_v1 = vld [vmem:[#allocation2 + $0x82] sm:$0xff] }
 0x63b   :  { %v14691_v46 = vpack.c.bf16 %v6083_v1, %v6082_v45  ;;  %v6116_v45 = vld [vmem:[#allocation2 + $0x242] sm:$0xff]  ;;  %v6117_v1 = vld [vmem:[#allocation2 + $0x24a] sm:$0xff] }
 0x641   :  { %11683 = vmatmul.mubr.bf16.gmra.mrb[56].mxu1 %v14627_v47 }
 0x642   :  { %11686 = vmatprep.mubr.bf16.mxu1 %v14623_v14  ;;  %v6085_v14 = vld [vmem:[#allocation2 + $0x9a] sm:$0xff] }
 0x643   :  { %v14693_v47 = vpack.c.bf16 %v6085_v14, %v6084_v38  ;;  %v14741_v14 = vpack.c.bf16 %v6117_v1, %v6116_v45  ;;  %v6590_v45 = vld [vmem:[#allocation2 + $0x48] sm:$0xff] }
 0x644   :  { %v13516_v1 = vld [vmem:[#allocation8 + $0x108] sm:$0xff]  }
 0x649   :  { %11687 = vmatmul.mubr.bf16.gmra.mrb[60].mxu1 %v14639_v4  ;;  %v6094_v4 = vld [vmem:[#allocation2 + $0x10a] sm:$0xff] }
 0x64a   :  { %11706 = vmatprep.mubr.bf16.mxu1 %v6136_v50  ;;  %v14712_v59 = vpack.c.bf16 %v6095_v22, %v6094_v4  ;;  %v6107_v50 = vld [vmem:[#allocation2 + $0x1d2] sm:$0xff]  ;;  %v14753_v4 = vpack.c.bf16 %v6125_v17, %v6124_v28  ;;  %v6126_v22 = vld [vmem:[#allocation2 + $0x2ba] sm:$0xff] }
 0x64b   :  { %v14727_v21 = vpack.c.bf16 %v6107_v50, %v6106_v31  ;;  %v14757_v44 = vpack.c.bf16 %v6127_v63, %v6126_v22  ;;  %v6134_v31 = vld [vmem:[#allocation2 + $0x31a] sm:$0xff]  ;;  %v6135_v50 = vld [vmem:[#allocation2 + $0x322] sm:$0xff] }
 0x64c   :  { %v14769_v26 = vpack.c.bf16 %v6135_v50, %v6134_v31  ;;  %v6594_v28 = vld [vmem:[#allocation2 + $0x78] sm:$0xff]  ;;  %v13521_v31 = vld [vmem:[#allocation8 + $0x130] sm:$0xff]   ;;  %v6601_v50 = vld [vmem:[#allocation2 + $0xc8] sm:$0xff] }
 0x64d   :  { %v13518_v17 = vld [vmem:[#allocation8 + $0x118] sm:$0xff]   ;;  %v14781_v22 = vpack.c.bf16 %v6595_v40, %v6594_v28 }
 0x64e   :  { %v6597_v63 = vld [vmem:[#allocation2 + $0x98] sm:$0xff] }
 0x651   :  { %11707 = vmatmul.mubr.bf16.vlgmr.msra.gmra.mrb[0].mxu1 %v14679_v39 }
 0x652   :  { %11710 = vmatprep.mubr.bf16.mxu1 %v14681_v9  ;;  %11771 = vmatpush3.bf16.msra.mxu1 %v13507_v7  ;;  %v6105_v7 = vld [vmem:[#allocation2 + $0x1ba] sm:$0xff] }
 0x653   :  { %11772 = vmatprep.subr.bf16.mxu1 %v13508_v53  ;;  %v6152_v61 = vpack.c.bf16 %v6105_v7, %v6104_v29  ;;  %v6131_v29 = vld [vmem:[#allocation2 + $0x2f2] sm:$0xff]  ;;  %v6132_v7 = vld [vmem:[#allocation2 + $0x302] sm:$0xff] }
 0x654   :  { %v14763_v24 = vpack.c.bf16 %v6131_v29, %v6130_v55  ;;  %v14785_v55 = vpack.c.bf16 %v6597_v63, %v6596_v58  ;;  %v6598_v29 = vld [vmem:[#allocation2 + $0xa8] sm:$0xff]  ;;  %v6608_v63 = vld [vmem:[#allocation2 + $0x120] sm:$0xff]  ;;  %v6610_v58 = vld [vmem:[#allocation2 + $0x138] sm:$0xff] }
 0x656   :  { %11773 = vmatpush3.bf16.msra.mxu1 %v13508_v53  ;;  %v6110_v53 = vld [vmem:[#allocation2 + $0x1fa] sm:$0xff] }
 0x657   :  { %11774 = vmatprep.subr.bf16.mxu1 %v13509_v10 }
 0x659   :  { %11711 = vmatmul.mubr.bf16.gmra.mrb[4].mxu1 %v14685_v27 }
 0x65a   :  { %11714 = vmatprep.mubr.bf16.mxu1 %v14687_v34  ;;  %11775 = vmatpush3.bf16.msra.mxu1 %v13509_v10  ;;  %v6111_v10 = vld [vmem:[#allocation2 + $0x202] sm:$0xff] }
 0x65b   :  { %11776 = vmatprep.subr.bf16.mxu1 %v13510_v57  ;;  %v14733_v36 = vpack.c.bf16 %v6111_v10, %v6110_v53  ;;  %v6586_v53 = vld [vmem:[#allocation2 + $0x18] sm:$0xff] }
 0x65c   :  { %v6650_v10 = vpack.c.bf16 %v6587_v25, %v6586_v53  ;;  %v6603_v25 = vld [vmem:[#allocation2 + $0xe0] sm:$0xff] }
 0x65d   :  { %v6600_v53 = vld [vmem:[#allocation2 + $0xc0] sm:$0xff] }
 0x65e   :  { %11777 = vmatpush3.bf16.msra.mxu1 %v13510_v57  ;;  %v6114_v57 = vld [vmem:[#allocation2 + $0x22a] sm:$0xff] }
 0x65f   :  { %11778 = vmatprep.subr.bf16.mxu1 %v13511_v8 }
 0x661   :  { %11715 = vmatmul.mubr.bf16.gmra.mrb[8].mxu1 %v14691_v46 }
 0x662   :  { %11718 = vmatprep.mubr.bf16.mxu1 %v14693_v47  ;;  %11779 = vmatpush3.bf16.msra.mxu1 %v13511_v8  ;;  %v6115_v8 = vld [vmem:[#allocation2 + $0x232] sm:$0xff] }
 0x663   :  { %11780 = vmatprep.subr.bf16.mxu1 %v13512_v43  ;;  %v14739_v38 = vpack.c.bf16 %v6115_v8, %v6114_v57  ;;  %v6588_v57 = vld [vmem:[#allocation2 + $0x30] sm:$0xff] }
 0x664   :  { %v14772_v8 = vpack.c.bf16 %v6589_v23, %v6588_v57  ;;  %v6602_v23 = vld [vmem:[#allocation2 + $0xd8] sm:$0xff] }
 0x665   :  { %v14793_v57 = vpack.c.bf16 %v6603_v25, %v6602_v23 }
 0x666   :  { %11781 = vmatpush3.bf16.msra.mxu1 %v13512_v43  ;;  %v6118_v43 = vld [vmem:[#allocation2 + $0x25a] sm:$0xff] }
 0x667   :  { %11782 = vmatprep.subr.bf16.mxu1 %v13513_v48 }
 0x669   :  { %11719 = vmatmul.mubr.bf16.gmra.mrb[12].mxu1 %v14697_v3 }
 0x66a   :  { %11722 = vmatprep.mubr.bf16.mxu1 %v14699_v32  ;;  %11783 = vmatpush3.bf16.msra.mxu1 %v13513_v48  ;;  %v6119_v48 = vld [vmem:[#allocation2 + $0x262] sm:$0xff] }
 0x66b   :  { %11784 = vmatprep.subr.bf16.mxu1 %v13514_v5  ;;  %v14745_v62 = vpack.c.bf16 %v6119_v48, %v6118_v43  ;;  %v14774_v43 = vpack.c.bf16 %v6591_v49, %v6590_v45  ;;  %v13517_v48 = vld [vmem:[#allocation8 + $0x110] sm:$0xff]   ;;  %v13522_v49 = vld [vmem:[#allocation8 + $0x138] sm:$0xff]   ;;  %v14797_v45 = vld [vmem:[#allocation8 + $0x140] sm:$0xff]  }
 0x66e   :  { %11785 = vmatpush3.bf16.msra.mxu1 %v13514_v5  ;;  %v6122_v5 = vld [vmem:[#allocation2 + $0x28a] sm:$0xff] }
 0x66f   :  { %11850 = vmatprep.subr.bf16.mxu1 %v14703_v0  ;;  %v14751_v16 = vpack.c.bf16 %v6123_v51, %v6122_v5  ;;  %v6592_v5 = vld [vmem:[#allocation2 + $0x60] sm:$0xff] }
 0x670   :  { %v14779_v51 = vpack.c.bf16 %v6593_v60, %v6592_v5  ;;  %v6604_v60 = vld [vmem:[#allocation2 + $0xf0] sm:$0xff]  ;;  %v6606_v5 = vld [vmem:[#allocation2 + $0x108] sm:$0xff] }
 0x671   :  { %11723 = vmatmul.mubr.bf16.gmra.mrb[16].mxu1 %v14705_v20 }
 0x672   :  { %11726 = vmatprep.mubr.bf16.mxu1 %v14708_v15 }
 0x679   :  { %11727 = vmatmul.mubr.bf16.gmra.mrb[20].mxu1 %v14712_v59 }
 0x67a   :  { %11730 = vmatprep.mubr.bf16.mxu1 %v14714_v35 }
 0x681   :  { %11731 = vmatmul.mubr.bf16.gmra.mrb[24].mxu1 %v14718_v13 }
 0x682   :  { %11734 = vmatprep.mubr.bf16.mxu1 %v14720_v18 }
 0x689   :  { %11735 = vmatmul.mubr.bf16.gmra.mrb[28].mxu1 %v14724_v11 }
 0x68a   :  { %11738 = vmatprep.mubr.bf16.mxu1 %v6152_v61  ;;  %v14765_v61 = vpack.c.bf16 %v6133_v37, %v6132_v7  ;;  %v13520_v7 = vld [vmem:[#allocation8 + $0x128] sm:$0xff]   ;;  %v14787_v37 = vpack.c.bf16 %v6599_v6, %v6598_v29 }
 0x691   :  { %11739 = vmatmul.mubr.bf16.gmra.mrb[32].mxu1 %v14727_v21 }
 0x692   :  { %11742 = vmatprep.mubr.bf16.mxu1 %v14729_v2 }
 0x699   :  { %11743 = vmatmul.mubr.bf16.gmra.mrb[36].mxu1 %v14733_v36 }
 0x69a   :  { %11746 = vmatprep.mubr.bf16.mxu1 %v14735_v33 }
 0x6a1   :  { %11747 = vmatmul.mubr.bf16.gmra.mrb[40].mxu1 %v14739_v38 }
 0x6a2   :  { %11750 = vmatprep.mubr.bf16.mxu1 %v14741_v14 }
 0x6a9   :  { %11751 = vmatmul.mubr.bf16.gmra.mrb[44].mxu1 %v14745_v62 }
 0x6aa   :  { %11754 = vmatprep.mubr.bf16.mxu1 %v14747_v41 }
 0x6b1   :  { %11755 = vmatmul.mubr.bf16.gmra.mrb[48].mxu1 %v14751_v16 }
 0x6b2   :  { %11758 = vmatprep.mubr.bf16.mxu1 %v14753_v4 }
 0x6b9   :  { %11759 = vmatmul.mubr.bf16.gmra.mrb[52].mxu1 %v14757_v44 }
 0x6ba   :  { %11762 = vmatprep.mubr.bf16.mxu1 %v14759_v52 }
 0x6c1   :  { %11763 = vmatmul.mubr.bf16.gmra.mrb[56].mxu1 %v14763_v24 }
 0x6c2   :  { %11766 = vmatprep.mubr.bf16.mxu1 %v14765_v61 }
 0x6c9   :  { %11767 = vmatmul.mubr.bf16.gmra.mrb[60].mxu1 %v14769_v26 }
 0x6ca   :  { %11786 = vmatprep.mubr.bf16.mxu1 %v6650_v10  ;;  %v14791_v10 = vpack.c.bf16 %v6601_v50, %v6600_v53  ;;  %v6612_v50 = vld [vmem:[#allocation2 + $0x150] sm:$0xff]  ;;  %v6614_v53 = vld [vmem:[#allocation2 + $0x168] sm:$0xff] }
 0x6d1   :  { %11787 = vmatmul.mubr.bf16.vlgmr.msra.gmra.mrb[0].mxu1 %v14772_v8 }
 0x6d2   :  { %11790 = vmatprep.mubr.bf16.mxu1 %v14774_v43  ;;  %11851 = vmatpush3.bf16.msra.mxu1 %v14703_v0  ;;  %v13519_v0 = vld [vmem:[#allocation8 + $0x120] sm:$0xff]  }
 0x6d3   :  { %11852 = vmatprep.subr.bf16.mxu1 %v13516_v1 }
 0x6d6   :  { %11853 = vmatpush3.bf16.msra.mxu1 %v13516_v1  ;;  %v6605_v1 = vld [vmem:[#allocation2 + $0xf8] sm:$0xff] }
 0x6d7   :  { %11854 = vmatprep.subr.bf16.mxu1 %v13517_v48  ;;  %v14799_v40 = vpack.c.bf16 %v6605_v1, %v6604_v60  ;;  %v6619_v1 = vld [vmem:[#allocation2 + $0x1d0] sm:$0xff] }
 0x6d9   :  { %11791 = vmatmul.mubr.bf16.gmra.mrb[4].mxu1 %v14779_v51 }
 0x6da   :  { %11794 = vmatprep.mubr.bf16.mxu1 %v14781_v22  ;;  %11855 = vmatpush3.bf16.msra.mxu1 %v13517_v48  ;;  %v6607_v48 = vld [vmem:[#allocation2 + $0x110] sm:$0xff] }
 0x6db   :  { %11856 = vmatprep.subr.bf16.mxu1 %v13518_v17  ;;  %v14802_v28 = vpack.c.bf16 %v6607_v48, %v6606_v5  ;;  %v6616_v48 = vld [vmem:[#allocation2 + $0x180] sm:$0xff]  ;;  %v6618_v5 = vld [vmem:[#allocation2 + $0x1c8] sm:$0xff] }
 0x6de   :  { %11857 = vmatpush3.bf16.msra.mxu1 %v13518_v17  ;;  %v6609_v17 = vld [vmem:[#allocation2 + $0x128] sm:$0xff] }
 0x6df   :  { %11858 = vmatprep.subr.bf16.mxu1 %v13519_v0  ;;  %v14806_v6 = vpack.c.bf16 %v6609_v17, %v6608_v63  ;;  %v6666_v17 = vpack.c.bf16 %v6619_v1, %v6618_v5  ;;  %v6623_v63 = vld [vmem:[#allocation2 + $0x200] sm:$0xff]  ;;  %v6626_v1 = vld [vmem:[#allocation2 + $0x228] sm:$0xff] }
 0x6e1   :  { %11795 = vmatmul.mubr.bf16.gmra.mrb[8].mxu1 %v14785_v55 }
 0x6e2   :  { %11798 = vmatprep.mubr.bf16.mxu1 %v14787_v37  ;;  %11859 = vmatpush3.bf16.msra.mxu1 %v13519_v0  ;;  %v6611_v0 = vld [vmem:[#allocation2 + $0x140] sm:$0xff] }
 0x6e3   :  { %11860 = vmatprep.subr.bf16.mxu1 %v13520_v7  ;;  %v14808_v29 = vpack.c.bf16 %v6611_v0, %v6610_v58  ;;  %v6621_v0 = vld [vmem:[#allocation2 + $0x1e8] sm:$0xff]  ;;  %v6620_v58 = vld [vmem:[#allocation2 + $0x1e0] sm:$0xff] }
 0x6e6   :  { %11861 = vmatpush3.bf16.msra.mxu1 %v13520_v7  ;;  %v6613_v7 = vld [vmem:[#allocation2 + $0x158] sm:$0xff] }
 0x6e7   :  { %11862 = vmatprep.subr.bf16.mxu1 %v13521_v31  ;;  %v14812_v25 = vpack.c.bf16 %v6613_v7, %v6612_v50  ;;  %v14821_v7 = vpack.c.bf16 %v6621_v0, %v6620_v58  ;;  %v6631_v0 = vld [vmem:[#allocation2 + $0x260] sm:$0xff] }
 0x6e9   :  { %11799 = vmatmul.mubr.bf16.gmra.mrb[12].mxu1 %v14791_v10  ;;  %15316 = vst [vmem:[#allocation14_spill] sm:$0xff] %v14821_v7 }
 0x6ea   :  { %11802 = vmatprep.mubr.bf16.mxu1 %v14793_v57  ;;  %11863 = vmatpush3.bf16.msra.mxu1 %v13521_v31  ;;  %v6615_v31 = vld [vmem:[#allocation2 + $0x170] sm:$0xff] }
 0x6eb   :  { %11864 = vmatprep.subr.bf16.mxu1 %v13522_v49  ;;  %v14814_v23 = vpack.c.bf16 %v6615_v31, %v6614_v53  ;;  %v6622_v31 = vld [vmem:[#allocation2 + $0x1f8] sm:$0xff] }
 0x6ec   :  { %v14823_v50 = vpack.c.bf16 %v6623_v63, %v6622_v31  ;;  %v6625_v53 = vld [vmem:[#allocation2 + $0x218] sm:$0xff]  ;;  %v6628_v63 = vld [vmem:[#allocation2 + $0x240] sm:$0xff] }
 0x6ed   :  { %15315 = vst [vmem:[#allocation13_spill] sm:$0xff] %v14814_v23  ;;  %v6630_v31 = vld [vmem:[#allocation2 + $0x258] sm:$0xff] }
 0x6ee   :  { %11865 = vmatpush3.bf16.msra.mxu1 %v13522_v49  ;;  %v6617_v49 = vld [vmem:[#allocation2 + $0x188] sm:$0xff]  ;;  %15317 = vst [vmem:[#allocation15_spill] sm:$0xff] %v14823_v50 }
 0x6ef   :  { %11930 = vmatprep.subr.bf16.mxu1 %v14797_v45  ;;  %v14818_v60 = vpack.c.bf16 %v6617_v49, %v6616_v48  ;;  %v6627_v49 = vld [vmem:[#allocation2 + $0x230] sm:$0xff] }
 0x6f0   :  { %v6624_v48 = vld [vmem:[#allocation2 + $0x210] sm:$0xff]  ;;  %v14829_v5 = vpack.c.bf16 %v6627_v49, %v6626_v1 }
 0x6f1   :  { %11803 = vmatmul.mubr.bf16.gmra.mrb[16].mxu1 %v14799_v40  ;;  %v6632_v49 = vld [vmem:[#allocation2 + $0x270] sm:$0xff] }
 0x6f2   :  { %11806 = vmatprep.mubr.bf16.mxu1 %v14802_v28 }
 0x6f9   :  { %11807 = vmatmul.mubr.bf16.gmra.mrb[20].mxu1 %v14806_v6 }
 0x6fa   :  { %11810 = vmatprep.mubr.bf16.mxu1 %v14808_v29 }
 0x701   :  { %11811 = vmatmul.mubr.bf16.gmra.mrb[24].mxu1 %v14812_v25 }
 0x702   :  { %11814 = vmatprep.mubr.bf16.mxu1 %v14814_v23  ;;  %v14827_v23 = vpack.c.bf16 %v6625_v53, %v6624_v48  ;;  %v6633_v53 = vld [vmem:[#allocation2 + $0x278] sm:$0xff]  ;;  %v6635_v48 = vld [vmem:[#allocation2 + $0x290] sm:$0xff] }
 0x703   :  { %v14839_v1 = vpack.c.bf16 %v6633_v53, %v6632_v49  ;;  %v13524_v49 = vld [vmem:[#allocation8 + $0x148] sm:$0xff]  }
 0x704   :  { %15318 = vst [vmem:[#allocation16_spill] sm:$0xff] %v14827_v23 }
 0x709   :  { %11815 = vmatmul.mubr.bf16.gmra.mrb[28].mxu1 %v14818_v60 }
 0x70a   :  { %11818 = vmatprep.mubr.bf16.mxu1 %v6666_v17  ;;  %v6629_v17 = vld [vmem:[#allocation2 + $0x248] sm:$0xff] }
 0x70b   :  { %v14833_v58 = vpack.c.bf16 %v6629_v17, %v6628_v63  ;;  %v6649_v17 = vld [vmem:[#allocation2 + $0x338] sm:$0xff] }
 0x711   :  { %11819 = vmatmul.mubr.bf16.gmra.mrb[32].mxu1 %v14821_v7  ;;  %v14835_v7 = vpack.c.bf16 %v6631_v0, %v6630_v31  ;;  %v7101_v0 = vld [vmem:[#allocation2 + $0x21] sm:$0xff]  ;;  %v7100_v31 = vld [vmem:[#allocation2 + $0x19] sm:$0xff] }
 0x712   :  { %11822 = vmatprep.mubr.bf16.mxu1 %v14823_v50  ;;  %v7164_v53 = vpack.c.bf16 %v7101_v0, %v7100_v31  ;;  %v7109_v0 = vld [vmem:[#allocation2 + $0x81] sm:$0xff] }
 0x719   :  { %11823 = vmatmul.mubr.bf16.gmra.mrb[36].mxu1 %v14827_v23  ;;  %v6634_v23 = vld [vmem:[#allocation2 + $0x288] sm:$0xff] }
 0x71a   :  { %11826 = vmatprep.mubr.bf16.mxu1 %v14829_v5  ;;  %v14841_v50 = vpack.c.bf16 %v6635_v48, %v6634_v23  ;;  %v6648_v23 = vld [vmem:[#allocation2 + $0x330] sm:$0xff] }
 0x71b   :  { %v14851_v63 = vpack.c.bf16 %v6649_v17, %v6648_v23  ;;  %v7102_v48 = vld [vmem:[#allocation2 + $0x31] sm:$0xff]  ;;  %v7107_v17 = vld [vmem:[#allocation2 + $0x69] sm:$0xff]  ;;  %v7106_v23 = vld [vmem:[#allocation2 + $0x61] sm:$0xff] }
 0x71c   :  { %v14861_v31 = vpack.c.bf16 %v7107_v17, %v7106_v23  ;;  %v13528_v17 = vld [vmem:[#allocation8 + $0x168] sm:$0xff]  }
 0x71d   :  { %15319 = vst [vmem:[#allocation17_spill] sm:$0xff] %v14851_v63 }
 0x71e   :  { %15322 = vst [vmem:[#allocation20_spill] sm:$0xff] %v14861_v31 }
 0x721   :  { %11827 = vmatmul.mubr.bf16.gmra.mrb[40].mxu1 %v14833_v58 }
 0x722   :  { %11830 = vmatprep.mubr.bf16.mxu1 %v14835_v7 }
 0x729   :  { %11831 = vmatmul.mubr.bf16.gmra.mrb[44].mxu1 %v14839_v1 }
 0x72a   :  { %11834 = vmatprep.mubr.bf16.mxu1 %v14841_v50 }
 0x731   :  { %11835 = vmatmul.mubr.bf16.gmra.mrb[48].mxu1 %v14617_v56  ;;  %v7103_v56 = vld [vmem:[#allocation2 + $0x39] sm:$0xff] }
 0x732   :  { %11838 = vmatprep.mubr.bf16.mxu1 %v14625_v54  ;;  %v7105_v54 = vld [vmem:[#allocation2 + $0x51] sm:$0xff] }
 0x739   :  { %11839 = vmatmul.mubr.bf16.gmra.mrb[52].mxu1 %v14630_v19  ;;  %v14854_v19 = vpack.c.bf16 %v7103_v56, %v7102_v48  ;;  %v13526_v56 = vld [vmem:[#allocation8 + $0x158] sm:$0xff]  }
 0x73a   :  { %11842 = vmatprep.mubr.bf16.mxu1 %v14637_v12  ;;  %v7104_v12 = vld [vmem:[#allocation2 + $0x49] sm:$0xff] }
 0x73b   :  { %15320 = vst [vmem:[#allocation18_spill] sm:$0xff] %v14854_v19 }
 0x741   :  { %11843 = vmatmul.mubr.bf16.gmra.mrb[56].mxu1 %v14641_v42  ;;  %v14856_v42 = vpack.c.bf16 %v7105_v54, %v7104_v12  ;;  %v7111_v54 = vld [vmem:[#allocation2 + $0x99] sm:$0xff]  ;;  %v7113_v12 = vld [vmem:[#allocation2 + $0xb1] sm:$0xff] }
 0x742   :  { %11846 = vmatprep.mubr.bf16.mxu1 %v14645_v30  ;;  %v13525_v30 = vld [vmem:[#allocation8 + $0x150] sm:$0xff]  }
 0x743   :  { %15321 = vst [vmem:[#allocation19_spill] sm:$0xff] %v14856_v42 }
 0x749   :  { %11847 = vmatmul.mubr.bf16.gmra.mrb[60].mxu1 %v14851_v63 }
 0x74a   :  { %11866 = vmatprep.mubr.bf16.mxu1 %v7164_v53  ;;  %v7108_v53 = vld [vmem:[#allocation2 + $0x79] sm:$0xff] }
 0x74b   :  { %v14863_v48 = vpack.c.bf16 %v7109_v0, %v7108_v53  ;;  %v7115_v0 = vld [vmem:[#allocation2 + $0xc9] sm:$0xff]  ;;  %v7117_v53 = vld [vmem:[#allocation2 + $0xe1] sm:$0xff] }
 0x74d   :  { %15323 = vst [vmem:[#allocation21_spill] sm:$0xff] %v14863_v48 }
 0x751   :  { %11867 = vmatmul.mubr.bf16.vlgmr.msra.gmra.mrb[0].mxu1 %v14854_v19 }
 0x752   :  { %11870 = vmatprep.mubr.bf16.mxu1 %v14856_v42  ;;  %11931 = vmatpush3.bf16.msra.mxu1 %v14797_v45  ;;  %v13527_v45 = vld [vmem:[#allocation8 + $0x160] sm:$0xff]   ;;  %v7110_v42 = vld [vmem:[#allocation2 + $0x91] sm:$0xff] }
 0x753   :  { %11932 = vmatprep.subr.bf16.mxu1 %v13524_v49  ;;  %v14867_v19 = vpack.c.bf16 %v7111_v54, %v7110_v42  ;;  %v7116_v42 = vld [vmem:[#allocation2 + $0xd9] sm:$0xff] }
 0x754   :  { %v14875_v54 = vpack.c.bf16 %v7117_v53, %v7116_v42  ;;  %v7123_v53 = vld [vmem:[#allocation2 + $0x129] sm:$0xff]  ;;  %v7122_v42 = vld [vmem:[#allocation2 + $0x121] sm:$0xff] }
 0x755   :  { %15324 = vst [vmem:[#allocation22_spill] sm:$0xff] %v14867_v19 }
 0x756   :  { %11933 = vmatpush3.bf16.msra.mxu1 %v13524_v49  ;;  %v7112_v49 = vld [vmem:[#allocation2 + $0xa9] sm:$0xff]  ;;  %15327 = vst [vmem:[#allocation25_spill] sm:$0xff] %v14875_v54 }
 0x757   :  { %11934 = vmatprep.subr.bf16.mxu1 %v13525_v30  ;;  %v14869_v23 = vpack.c.bf16 %v7113_v12, %v7112_v49  ;;  %v7119_v12 = vld [vmem:[#allocation2 + $0xf9] sm:$0xff]  ;;  %v7121_v49 = vld [vmem:[#allocation2 + $0x111] sm:$0xff] }
 0x759   :  { %11871 = vmatmul.mubr.bf16.gmra.mrb[4].mxu1 %v14861_v31  ;;  %15325 = vst [vmem:[#allocation23_spill] sm:$0xff] %v14869_v23 }
 0x75a   :  { %11874 = vmatprep.mubr.bf16.mxu1 %v14863_v48  ;;  %11935 = vmatpush3.bf16.msra.mxu1 %v13525_v30  ;;  %v13529_v30 = vld [vmem:[#allocation8 + $0x170] sm:$0xff]   ;;  %v7114_v48 = vld [vmem:[#allocation2 + $0xc1] sm:$0xff] }
 0x75b   :  { %11936 = vmatprep.subr.bf16.mxu1 %v13526_v56  ;;  %v14873_v31 = vpack.c.bf16 %v7115_v0, %v7114_v48  ;;  %v7120_v48 = vld [vmem:[#allocation2 + $0x109] sm:$0xff] }
 0x75c   :  { %v14884_v0 = vpack.c.bf16 %v7121_v49, %v7120_v48  ;;  %v7128_v48 = vld [vmem:[#allocation2 + $0x169] sm:$0xff] }
 0x75d   :  { %15326 = vst [vmem:[#allocation24_spill] sm:$0xff] %v14873_v31 }
 0x75e   :  { %11937 = vmatpush3.bf16.msra.mxu1 %v13526_v56  ;;  %v13530_v56 = vld [vmem:[#allocation8 + $0x178] sm:$0xff]   ;;  %15329 = vst [vmem:[#allocation27_spill] sm:$0xff] %v14884_v0 }
 0x75f   :  { %11938 = vmatprep.subr.bf16.mxu1 %v13527_v45 }
 0x761   :  { %11875 = vmatmul.mubr.bf16.gmra.mrb[8].mxu1 %v14867_v19 }
 0x762   :  { %11878 = vmatprep.mubr.bf16.mxu1 %v14869_v23  ;;  %11939 = vmatpush3.bf16.msra.mxu1 %v13527_v45  ;;  %v14879_v45 = vld [vmem:[#allocation8 + $0x180] sm:$0xff]   ;;  %v7118_v23 = vld [vmem:[#allocation2 + $0xf1] sm:$0xff] }
 0x763   :  { %11940 = vmatprep.subr.bf16.mxu1 %v13528_v17 }
 0x766   :  { %11941 = vmatpush3.bf16.msra.mxu1 %v13528_v17  ;;  %v14881_v17 = vpack.c.bf16 %v7119_v12, %v7118_v23  ;;  %v7127_v23 = vld [vmem:[#allocation2 + $0x159] sm:$0xff]  ;;  %v7126_v12 = vld [vmem:[#allocation2 + $0x151] sm:$0xff] }
 0x767   :  { %11942 = vmatprep.subr.bf16.mxu1 %v13529_v30  ;;  %v14894_v49 = vpack.c.bf16 %v7127_v23, %v7126_v12  ;;  %v7137_v23 = vld [vmem:[#allocation2 + $0x201] sm:$0xff] }
 0x768   :  { %15328 = vst [vmem:[#allocation26_spill] sm:$0xff] %v14881_v17  ;;  %v7134_v12 = vld [vmem:[#allocation2 + $0x1e1] sm:$0xff] }
 0x769   :  { %11879 = vmatmul.mubr.bf16.gmra.mrb[12].mxu1 %v14873_v31  ;;  %v7124_v31 = vld [vmem:[#allocation2 + $0x139] sm:$0xff]  ;;  %15332 = vst [vmem:[#allocation30_spill] sm:$0xff] %v14894_v49 }
 0x76a   :  { %11882 = vmatprep.mubr.bf16.mxu1 %v14875_v54  ;;  %11943 = vmatpush3.bf16.msra.mxu1 %v13529_v30  ;;  %v7125_v30 = vld [vmem:[#allocation2 + $0x141] sm:$0xff]  ;;  %v14888_v54 = vpack.c.bf16 %v7123_v53, %v7122_v42  ;;  %v7131_v53 = vld [vmem:[#allocation2 + $0x189] sm:$0xff]  ;;  %v7133_v42 = vld [vmem:[#allocation2 + $0x1d1] sm:$0xff] }
 0x76b   :  { %11944 = vmatprep.subr.bf16.mxu1 %v13530_v56  ;;  %v14890_v19 = vpack.c.bf16 %v7125_v30, %v7124_v31  ;;  %v7130_v31 = vld [vmem:[#allocation2 + $0x181] sm:$0xff] }
 0x76c   :  { %15330 = vst [vmem:[#allocation28_spill] sm:$0xff] %v14888_v54  ;;  %v14900_v30 = vpack.c.bf16 %v7131_v53, %v7130_v31  ;;  %v7141_v53 = vld [vmem:[#allocation2 + $0x231] sm:$0xff] }
 0x76d   :  { %15331 = vst [vmem:[#allocation29_spill] sm:$0xff] %v14890_v19  ;;  %v7138_v31 = vld [vmem:[#allocation2 + $0x211] sm:$0xff] }
 0x76e   :  { %11945 = vmatpush3.bf16.msra.mxu1 %v13530_v56  ;;  %v7129_v56 = vld [vmem:[#allocation2 + $0x171] sm:$0xff] }
 0x76f   :  { %12010 = vmatprep.subr.bf16.mxu1 %v14879_v45 }
 0x771   :  { %11883 = vmatmul.mubr.bf16.gmra.mrb[16].mxu1 %v14881_v17  ;;  %v14896_v17 = vpack.c.bf16 %v7129_v56, %v7128_v48  ;;  %v7136_v56 = vld [vmem:[#allocation2 + $0x1f9] sm:$0xff] }
 0x772   :  { %11886 = vmatprep.mubr.bf16.mxu1 %v14884_v0  ;;  %v14905_v48 = vpack.c.bf16 %v7137_v23, %v7136_v56  ;;  %v7142_v23 = vld [vmem:[#allocation2 + $0x241] sm:$0xff]  ;;  %v7144_v56 = vld [vmem:[#allocation2 + $0x259] sm:$0xff] }
 0x773   :  { %15333 = vst [vmem:[#allocation31_spill] sm:$0xff] %v14896_v17 }
 0x774   :  { %15335 = vst [vmem:[#allocation33_spill] sm:$0xff] %v14905_v48 }
 0x779   :  { %11887 = vmatmul.mubr.bf16.gmra.mrb[20].mxu1 %v14888_v54  ;;  %v7132_v54 = vld [vmem:[#allocation2 + $0x1c9] sm:$0xff] }
 0x77a   :  { %11890 = vmatprep.mubr.bf16.mxu1 %v14890_v19  ;;  %v7180_v0 = vpack.c.bf16 %v7133_v42, %v7132_v54  ;;  %v7135_v19 = vld [vmem:[#allocation2 + $0x1e9] sm:$0xff] }
 0x77b   :  { %v14903_v63 = vpack.c.bf16 %v7135_v19, %v7134_v12  ;;  %v7140_v54 = vld [vmem:[#allocation2 + $0x229] sm:$0xff] }
 0x77c   :  { %v14911_v42 = vpack.c.bf16 %v7141_v53, %v7140_v54  ;;  %v7143_v19 = vld [vmem:[#allocation2 + $0x249] sm:$0xff]  ;;  %v7146_v53 = vld [vmem:[#allocation2 + $0x271] sm:$0xff] }
 0x77d   :  { %15334 = vst [vmem:[#allocation32_spill] sm:$0xff] %v14903_v63  ;;  %v14915_v12 = vpack.c.bf16 %v7143_v19, %v7142_v23  ;;  %v7151_v19 = vld [vmem:[#allocation2 + $0x2a9] sm:$0xff]  ;;  %v7153_v23 = vld [vmem:[#allocation2 + $0x2c1] sm:$0xff] }
 0x77e   :  { %15337 = vst [vmem:[#allocation35_spill] sm:$0xff] %v14911_v42 }
 0x77f   :  { %15338 = vst [vmem:[#allocation36_spill] sm:$0xff] %v14915_v12 }
 0x781   :  { %11891 = vmatmul.mubr.bf16.gmra.mrb[24].mxu1 %v14894_v49 }
 0x782   :  { %11894 = vmatprep.mubr.bf16.mxu1 %v14896_v17  ;;  %v7139_v17 = vld [vmem:[#allocation2 + $0x219] sm:$0xff] }
 0x783   :  { %v14909_v49 = vpack.c.bf16 %v7139_v17, %v7138_v31  ;;  %v7147_v17 = vld [vmem:[#allocation2 + $0x279] sm:$0xff]  ;;  %v7149_v31 = vld [vmem:[#allocation2 + $0x291] sm:$0xff] }
 0x784   :  { %v14921_v54 = vpack.c.bf16 %v7147_v17, %v7146_v53  ;;  %v7155_v17 = vld [vmem:[#allocation2 + $0x2d9] sm:$0xff]  ;;  %v7157_v53 = vld [vmem:[#allocation2 + $0x2f1] sm:$0xff] }
 0x785   :  { %15336 = vst [vmem:[#allocation34_spill] sm:$0xff] %v14909_v49 }
 0x786   :  { %15340 = vst [vmem:[#allocation38_spill] sm:$0xff] %v14921_v54 }
 0x789   :  { %11895 = vmatmul.mubr.bf16.gmra.mrb[28].mxu1 %v14900_v30 }
 0x78a   :  { %11898 = vmatprep.mubr.bf16.mxu1 %v7180_v0  ;;  %v7145_v0 = vld [vmem:[#allocation2 + $0x261] sm:$0xff] }
 0x791   :  { %11899 = vmatmul.mubr.bf16.gmra.mrb[32].mxu1 %v14903_v63  ;;  %v14917_v63 = vpack.c.bf16 %v7145_v0, %v7144_v56  ;;  %v7150_v0 = vld [vmem:[#allocation2 + $0x2a1] sm:$0xff] }
 0x792   :  { %11902 = vmatprep.mubr.bf16.mxu1 %v14905_v48  ;;  %v14927_v56 = vpack.c.bf16 %v7151_v19, %v7150_v0  ;;  %v7159_v19 = vld [vmem:[#allocation2 + $0x309] sm:$0xff]  ;;  %v7161_v0 = vld [vmem:[#allocation2 + $0x321] sm:$0xff] }
 0x793   :  { %15339 = vst [vmem:[#allocation37_spill] sm:$0xff] %v14917_v63 }
 0x794   :  { %15342 = vst [vmem:[#allocation40_spill] sm:$0xff] %v14927_v56 }
 0x799   :  { %11903 = vmatmul.mubr.bf16.gmra.mrb[36].mxu1 %v14909_v49  ;;  %v7148_v49 = vld [vmem:[#allocation2 + $0x289] sm:$0xff] }
 0x79a   :  { %11906 = vmatprep.mubr.bf16.mxu1 %v14911_v42  ;;  %v14923_v48 = vpack.c.bf16 %v7149_v31, %v7148_v49  ;;  %v7154_v49 = vld [vmem:[#allocation2 + $0x2d1] sm:$0xff] }
 0x79b   :  { %v14933_v31 = vpack.c.bf16 %v7155_v17, %v7154_v49  ;;  %v7163_v17 = vld [vmem:[#allocation2 + $0x339] sm:$0xff]  ;;  %v7162_v49 = vld [vmem:[#allocation2 + $0x331] sm:$0xff] }
 0x79c   :  { %15341 = vst [vmem:[#allocation39_spill] sm:$0xff] %v14923_v48 }
 0x7a1   :  { %11907 = vmatmul.mubr.bf16.gmra.mrb[40].mxu1 %v14915_v12  ;;  %v7152_v12 = vld [vmem:[#allocation2 + $0x2b9] sm:$0xff] }
 0x7a2   :  { %11910 = vmatprep.mubr.bf16.mxu1 %v14917_v63  ;;  %v14929_v42 = vpack.c.bf16 %v7153_v23, %v7152_v12  ;;  %v7158_v12 = vld [vmem:[#allocation2 + $0x301] sm:$0xff] }
 0x7a3   :  { %v14939_v23 = vpack.c.bf16 %v7159_v19, %v7158_v12  ;;  %v13534_v19 = vld [vmem:[#allocation8 + $0x198] sm:$0xff]   ;;  %v13549_v12 = vld [vmem:[#allocation8 + $0x210] sm:$0xff]  }
 0x7a9   :  { %11911 = vmatmul.mubr.bf16.gmra.mrb[44].mxu1 %v14921_v54  ;;  %v7156_v54 = vld [vmem:[#allocation2 + $0x2e9] sm:$0xff] }
 0x7aa   :  { %11914 = vmatprep.mubr.bf16.mxu1 %v14923_v48  ;;  %v14935_v63 = vpack.c.bf16 %v7157_v53, %v7156_v54  ;;  %v14945_v54 = vpack.c.bf16 %v7163_v17, %v7162_v49  ;;  %v13532_v53 = vld [vmem:[#allocation8 + $0x188] sm:$0xff]   ;;  %v13550_v17 = vld [vmem:[#allocation8 + $0x218] sm:$0xff]   ;;  %v15351_v49 = vld [vmem:[#allocation21_spill] sm:$0xff] }
 0x7b1   :  { %11915 = vmatmul.mubr.bf16.gmra.mrb[48].mxu1 %v14927_v56  ;;  %v7160_v56 = vld [vmem:[#allocation2 + $0x319] sm:$0xff] }
 0x7b2   :  { %11918 = vmatprep.mubr.bf16.mxu1 %v14929_v42  ;;  %v14941_v48 = vpack.c.bf16 %v7161_v0, %v7160_v56  ;;  %v13533_v56 = vld [vmem:[#allocation8 + $0x190] sm:$0xff]   ;;  %v13535_v0 = vld [vmem:[#allocation8 + $0x1a0] sm:$0xff]  }
 0x7b9   :  { %11919 = vmatmul.mubr.bf16.gmra.mrb[52].mxu1 %v14933_v31 }
 0x7ba   :  { %11922 = vmatprep.mubr.bf16.mxu1 %v14935_v63 }
 0x7c1   :  { %11923 = vmatmul.mubr.bf16.gmra.mrb[56].mxu1 %v14939_v23 }
 0x7c2   :  { %11926 = vmatprep.mubr.bf16.mxu1 %v14941_v48 }
 0x7c9   :  { %11927 = vmatmul.mubr.bf16.gmra.mrb[60].mxu1 %v14945_v54 }
 0x7ca   :  { %11946 = vmatprep.mubr.bf16.mxu1 %v14679_v39  ;;  %v13536_v39 = vld [vmem:[#allocation8 + $0x1a8] sm:$0xff]  }
 0x7d1   :  { %11947 = vmatmul.mubr.bf16.vlgmr.msra.gmra.mrb[0].mxu1 %v14681_v9  ;;  %v13537_v9 = vld [vmem:[#allocation8 + $0x1b0] sm:$0xff]  }
 0x7d2   :  { %11950 = vmatprep.mubr.bf16.mxu1 %v14685_v27  ;;  %12011 = vmatpush3.bf16.msra.mxu1 %v14879_v45  ;;  %v13538_v27 = vld [vmem:[#allocation8 + $0x1b8] sm:$0xff]  }
 0x7d3   :  { %12012 = vmatprep.subr.bf16.mxu1 %v13532_v53  ;;  %v15350_v45 = vld [vmem:[#allocation20_spill] sm:$0xff] }
 0x7d6   :  { %12013 = vmatpush3.bf16.msra.mxu1 %v13532_v53  ;;  %v15352_v53 = vld [vmem:[#allocation22_spill] sm:$0xff] }
 0x7d7   :  { %12014 = vmatprep.subr.bf16.mxu1 %v13533_v56 }
 0x7d9   :  { %11951 = vmatmul.mubr.bf16.gmra.mrb[4].mxu1 %v14687_v34  ;;  %v13539_v34 = vld [vmem:[#allocation8 + $0x1c0] sm:$0xff]  }
 0x7da   :  { %11954 = vmatprep.mubr.bf16.mxu1 %v14691_v46  ;;  %12015 = vmatpush3.bf16.msra.mxu1 %v13533_v56  ;;  %v7644_v46 = vld [vmem:[#allocation2 + $0x182] sm:$0xff] }
 0x7db   :  { %12016 = vmatprep.subr.bf16.mxu1 %v13534_v19  ;;  %v13551_v56 = vld [vmem:[#allocation8 + $0x220] sm:$0xff]  }
 0x7de   :  { %12017 = vmatpush3.bf16.msra.mxu1 %v13534_v19  ;;  %v13552_v19 = vld [vmem:[#allocation8 + $0x228] sm:$0xff]  }
 0x7df   :  { %12018 = vmatprep.subr.bf16.mxu1 %v13535_v0 }
 0x7e1   :  { %11955 = vmatmul.mubr.bf16.gmra.mrb[8].mxu1 %v14693_v47  ;;  %v7645_v47 = vld [vmem:[#allocation2 + $0x18a] sm:$0xff] }
 0x7e2   :  { %11958 = vmatprep.mubr.bf16.mxu1 %v14697_v3  ;;  %12019 = vmatpush3.bf16.msra.mxu1 %v13535_v0  ;;  %v14964_v3 = vpack.c.bf16 %v7645_v47, %v7644_v46  ;;  %v15353_v0 = vld [vmem:[#allocation23_spill] sm:$0xff]  ;;  %v15356_v46 = vld [vmem:[#allocation26_spill] sm:$0xff] }
 0x7e3   :  { %12020 = vmatprep.subr.bf16.mxu1 %v13536_v39  ;;  %v15357_v47 = vld [vmem:[#allocation27_spill] sm:$0xff] }
 0x7e6   :  { %12021 = vmatpush3.bf16.msra.mxu1 %v13536_v39  ;;  %v15354_v39 = vld [vmem:[#allocation24_spill] sm:$0xff] }
 0x7e7   :  { %12022 = vmatprep.subr.bf16.mxu1 %v13537_v9 }
 0x7e9   :  { %11959 = vmatmul.mubr.bf16.gmra.mrb[12].mxu1 %v14699_v32  ;;  %v7676_v32 = vld [vmem:[#allocation2 + $0x332] sm:$0xff] }
 0x7ea   :  { %11962 = vmatprep.mubr.bf16.mxu1 %v14705_v20  ;;  %12023 = vmatpush3.bf16.msra.mxu1 %v13537_v9  ;;  %v7677_v20 = vld [vmem:[#allocation2 + $0x33a] sm:$0xff]  ;;  %v13553_v9 = vld [vmem:[#allocation8 + $0x230] sm:$0xff]  }
 0x7eb   :  { %12024 = vmatprep.subr.bf16.mxu1 %v13538_v27 }
 0x7ee   :  { %12025 = vmatpush3.bf16.msra.mxu1 %v13538_v27  ;;  %v13554_v27 = vld [vmem:[#allocation8 + $0x238] sm:$0xff]  }
 0x7ef   :  { %12090 = vmatprep.subr.bf16.mxu1 %v13539_v34 }
 0x7f1   :  { %11963 = vmatmul.mubr.bf16.gmra.mrb[16].mxu1 %v14708_v15  ;;  %v14982_v15 = vpack.c.bf16 %v7677_v20, %v7676_v32  ;;  %v15358_v32 = vld [vmem:[#allocation28_spill] sm:$0xff]  ;;  %v15359_v20 = vld [vmem:[#allocation29_spill] sm:$0xff] }
 0x7f2   :  { %11966 = vmatprep.mubr.bf16.mxu1 %v14712_v59  ;;  %v13540_v59 = vld [vmem:[#allocation8 + $0x1c8] sm:$0xff]  }
 0x7f9   :  { %11967 = vmatmul.mubr.bf16.gmra.mrb[20].mxu1 %v14714_v35  ;;  %v13541_v35 = vld [vmem:[#allocation8 + $0x1d0] sm:$0xff]  }
 0x7fa   :  { %11970 = vmatprep.mubr.bf16.mxu1 %v14718_v13  ;;  %v13542_v13 = vld [vmem:[#allocation8 + $0x1d8] sm:$0xff]  }
 0x801   :  { %11971 = vmatmul.mubr.bf16.gmra.mrb[24].mxu1 %v14720_v18  ;;  %v13543_v18 = vld [vmem:[#allocation8 + $0x1e0] sm:$0xff]  }
 0x802   :  { %11974 = vmatprep.mubr.bf16.mxu1 %v14724_v11  ;;  %v13544_v11 = vld [vmem:[#allocation8 + $0x1e8] sm:$0xff]  }
 0x809   :  { %11975 = vmatmul.mubr.bf16.gmra.mrb[28].mxu1 %v14964_v3 }
 0x80a   :  { %11978 = vmatprep.mubr.bf16.mxu1 %v14727_v21  ;;  %v13545_v21 = vld [vmem:[#allocation8 + $0x1f0] sm:$0xff]  }
 0x811   :  { %11979 = vmatmul.mubr.bf16.gmra.mrb[32].mxu1 %v14729_v2  ;;  %v13546_v2 = vld [vmem:[#allocation8 + $0x1f8] sm:$0xff]  }
 0x812   :  { %11982 = vmatprep.mubr.bf16.mxu1 %v14733_v36  ;;  %v13547_v36 = vld [vmem:[#allocation8 + $0x200] sm:$0xff]  }
 0x819   :  { %11983 = vmatmul.mubr.bf16.gmra.mrb[36].mxu1 %v14735_v33  ;;  %v15343_v33 = vld [vmem:[#allocation13_spill] sm:$0xff] }
 0x81a   :  { %11986 = vmatprep.mubr.bf16.mxu1 %v14739_v38  ;;  %v8158_v38 = vld [vmem:[#allocation2 + $0x198] sm:$0xff] }
 0x821   :  { %11987 = vmatmul.mubr.bf16.gmra.mrb[40].mxu1 %v14741_v14  ;;  %v13559_v14 = vld [vmem:[#allocation2 + $0x8] sm:$0xff] }
 0x822   :  { %11990 = vmatprep.mubr.bf16.mxu1 %v14745_v62  ;;  %v8207_v62 = vpack.c.bf16 %v13559_v14, %v8158_v38  ;;  %v15366_v38 = vld [vmem:[#allocation36_spill] sm:$0xff] }
 0x829   :  { %11991 = vmatmul.mubr.bf16.gmra.mrb[44].mxu1 %v14747_v41  ;;  %v15344_v41 = vld [vmem:[#allocation14_spill] sm:$0xff] }
 0x82a   :  { %11994 = vmatprep.mubr.bf16.mxu1 %v14751_v16  ;;  %v15345_v16 = vld [vmem:[#allocation15_spill] sm:$0xff] }
 0x831   :  { %11995 = vmatmul.mubr.bf16.gmra.mrb[48].mxu1 %v14753_v4  ;;  %v15346_v4 = vld [vmem:[#allocation16_spill] sm:$0xff] }
 0x832   :  { %11998 = vmatprep.mubr.bf16.mxu1 %v14757_v44  ;;  %v8177_v44 = vld [vmem:[#allocation2 + $0x2a8] sm:$0xff] }
 0x839   :  { %11999 = vmatmul.mubr.bf16.gmra.mrb[52].mxu1 %v14759_v52  ;;  %v8176_v52 = vld [vmem:[#allocation2 + $0x2a0] sm:$0xff] }
 0x83a   :  { %12002 = vmatprep.mubr.bf16.mxu1 %v14763_v24  ;;  %v8216_v24 = vpack.c.bf16 %v8177_v44, %v8176_v52  ;;  %v9156_v52 = vld [vmem:[#allocation2 + $0x32] sm:$0xff] }
 0x841   :  { %12003 = vmatmul.mubr.bf16.gmra.mrb[56].mxu1 %v14765_v61  ;;  %v8179_v61 = vld [vmem:[#allocation2 + $0x2c0] sm:$0xff] }
 0x842   :  { %12006 = vmatprep.mubr.bf16.mxu1 %v14769_v26  ;;  %v8181_v26 = vld [vmem:[#allocation2 + $0x2d8] sm:$0xff] }
 0x849   :  { %12007 = vmatmul.mubr.bf16.gmra.mrb[60].mxu1 %v14982_v15 }
 0x84a   :  { %12026 = vmatprep.mubr.bf16.mxu1 %v14772_v8  ;;  %v8178_v8 = vld [vmem:[#allocation2 + $0x2b8] sm:$0xff] }
 0x851   :  { %12027 = vmatmul.mubr.bf16.vlgmr.msra.gmra.mrb[0].mxu1 %v14774_v43  ;;  %v8217_v43 = vpack.c.bf16 %v8179_v61, %v8178_v8  ;;  %v9160_v8 = vld [vmem:[#allocation2 + $0x62] sm:$0xff] }
 0x852   :  { %12030 = vmatprep.mubr.bf16.mxu1 %v14779_v51  ;;  %12091 = vmatpush3.bf16.msra.mxu1 %v13539_v34  ;;  %v8180_v51 = vld [vmem:[#allocation2 + $0x2d0] sm:$0xff]  ;;  %v15355_v34 = vld [vmem:[#allocation25_spill] sm:$0xff] }
 0x853   :  { %12092 = vmatprep.subr.bf16.mxu1 %v13540_v59 }
 0x856   :  { %12093 = vmatpush3.bf16.msra.mxu1 %v13540_v59  ;;  %v15360_v59 = vld [vmem:[#allocation30_spill] sm:$0xff] }
 0x857   :  { %12094 = vmatprep.subr.bf16.mxu1 %v13541_v35 }
 0x859   :  { %12031 = vmatmul.mubr.bf16.gmra.mrb[4].mxu1 %v14781_v22  ;;  %v8218_v22 = vpack.c.bf16 %v8181_v26, %v8180_v51  ;;  %v9158_v26 = vld [vmem:[#allocation2 + $0x4a] sm:$0xff]  ;;  %v9164_v51 = vld [vmem:[#allocation2 + $0x92] sm:$0xff] }
 0x85a   :  { %12034 = vmatprep.mubr.bf16.mxu1 %v14785_v55  ;;  %12095 = vmatpush3.bf16.msra.mxu1 %v13541_v35  ;;  %v8183_v55 = vld [vmem:[#allocation2 + $0x2f0] sm:$0xff] }
 0x85b   :  { %12096 = vmatprep.subr.bf16.mxu1 %v13542_v13  ;;  %v15361_v35 = vld [vmem:[#allocation31_spill] sm:$0xff] }
 0x85e   :  { %12097 = vmatpush3.bf16.msra.mxu1 %v13542_v13  ;;  %v8672_v13 = vld [vmem:[#allocation2 + $0x199] sm:$0xff] }
 0x85f   :  { %12098 = vmatprep.subr.bf16.mxu1 %v13543_v18 }
 0x861   :  { %12035 = vmatmul.mubr.bf16.gmra.mrb[8].mxu1 %v14787_v37  ;;  %v8185_v37 = vld [vmem:[#allocation2 + $0x308] sm:$0xff] }
 0x862   :  { %12038 = vmatprep.mubr.bf16.mxu1 %v14791_v10  ;;  %12099 = vmatpush3.bf16.msra.mxu1 %v13543_v18  ;;  %v8182_v10 = vld [vmem:[#allocation2 + $0x2e8] sm:$0xff] }
 0x863   :  { %12100 = vmatprep.subr.bf16.mxu1 %v13544_v11  ;;  %v8673_v18 = vld [vmem:[#allocation2 + $0x1a1] sm:$0xff] }
 0x866   :  { %12101 = vmatpush3.bf16.msra.mxu1 %v13544_v11  ;;  %v8721_v11 = vpack.c.bf16 %v8673_v18, %v8672_v13  ;;  %v9190_v18 = vld [vmem:[#allocation2 + $0x1fa] sm:$0xff] }
 0x867   :  { %12102 = vmatprep.subr.bf16.mxu1 %v13545_v21 }
 0x869   :  { %12039 = vmatmul.mubr.bf16.gmra.mrb[12].mxu1 %v14793_v57  ;;  %v8219_v57 = vpack.c.bf16 %v8183_v55, %v8182_v10  ;;  %v9167_v10 = vld [vmem:[#allocation2 + $0xb2] sm:$0xff] }
 0x86a   :  { %12042 = vmatprep.mubr.bf16.mxu1 %v14799_v40  ;;  %12103 = vmatpush3.bf16.msra.mxu1 %v13545_v21  ;;  %v8184_v40 = vld [vmem:[#allocation2 + $0x300] sm:$0xff]  ;;  %v15362_v21 = vld [vmem:[#allocation32_spill] sm:$0xff] }
 0x86b   :  { %12104 = vmatprep.subr.bf16.mxu1 %v13546_v2 }
 0x86e   :  { %12105 = vmatpush3.bf16.msra.mxu1 %v13546_v2  ;;  %v15363_v2 = vld [vmem:[#allocation33_spill] sm:$0xff] }
 0x86f   :  { %12170 = vmatprep.subr.bf16.mxu1 %v13547_v36 }
 0x871   :  { %12043 = vmatmul.mubr.bf16.gmra.mrb[16].mxu1 %v14802_v28  ;;  %v8220_v28 = vpack.c.bf16 %v8185_v37, %v8184_v40  ;;  %v9166_v37 = vld [vmem:[#allocation2 + $0xaa] sm:$0xff] }
 0x872   :  { %12046 = vmatprep.mubr.bf16.mxu1 %v14806_v6  ;;  %v8187_v6 = vld [vmem:[#allocation2 + $0x320] sm:$0xff]  ;;  %v9169_v40 = vld [vmem:[#allocation2 + $0xca] sm:$0xff] }
 0x879   :  { %12047 = vmatmul.mubr.bf16.gmra.mrb[20].mxu1 %v14808_v29  ;;  %v8186_v29 = vld [vmem:[#allocation2 + $0x318] sm:$0xff] }
 0x87a   :  { %12050 = vmatprep.mubr.bf16.mxu1 %v14812_v25  ;;  %v8221_v25 = vpack.c.bf16 %v8187_v6, %v8186_v29  ;;  %v9170_v29 = vld [vmem:[#allocation2 + $0xda] sm:$0xff] }
 0x881   :  { %12051 = vmatmul.mubr.bf16.gmra.mrb[24].mxu1 %v15343_v33  ;;  %v15365_v33 = vld [vmem:[#allocation35_spill] sm:$0xff] }
 0x882   :  { %12054 = vmatprep.mubr.bf16.mxu1 %v14818_v60  ;;  %v15347_v60 = vld [vmem:[#allocation17_spill] sm:$0xff] }
 0x889   :  { %12055 = vmatmul.mubr.bf16.gmra.mrb[28].mxu1 %v8207_v62  ;;  %v15368_v62 = vld [vmem:[#allocation38_spill] sm:$0xff] }
 0x88a   :  { %12058 = vmatprep.mubr.bf16.mxu1 %v15344_v41  ;;  %v15369_v41 = vld [vmem:[#allocation39_spill] sm:$0xff] }
 0x891   :  { %12059 = vmatmul.mubr.bf16.gmra.mrb[32].mxu1 %v15345_v16  ;;  %v8704_v16 = vld [vmem:[#allocation2 + $0x349] sm:$0xff] }
 0x892   :  { %12062 = vmatprep.mubr.bf16.mxu1 %v15346_v4  ;;  %v8705_v4 = vld [vmem:[#allocation2 + $0x351] sm:$0xff] }
 0x893   :  { %v8737_v44 = vpack.c.bf16 %v8705_v4, %v8704_v16  ;;  %v9198_v16 = vld [vmem:[#allocation2 + $0x25a] sm:$0xff]  ;;  %v9199_v4 = vld [vmem:[#allocation2 + $0x262] sm:$0xff] }
 0x899   :  { %12063 = vmatmul.mubr.bf16.gmra.mrb[36].mxu1 %v14829_v5  ;;  %v15348_v5 = vld [vmem:[#allocation18_spill] sm:$0xff] }
 0x89a   :  { %12066 = vmatprep.mubr.bf16.mxu1 %v14833_v58  ;;  %v13548_v58 = vld [vmem:[#allocation8 + $0x208] sm:$0xff]  }
 0x8a1   :  { %12067 = vmatmul.mubr.bf16.gmra.mrb[40].mxu1 %v14835_v7  ;;  %v8190_v7 = vld [vmem:[#allocation2 + $0x348] sm:$0xff] }
 0x8a2   :  { %12070 = vmatprep.mubr.bf16.mxu1 %v14839_v1  ;;  %v15349_v1 = vld [vmem:[#allocation19_spill] sm:$0xff] }
 0x8a9   :  { %12071 = vmatmul.mubr.bf16.gmra.mrb[44].mxu1 %v14841_v50  ;;  %v8223_v50 = vpack.c.bf16 %v13559_v14, %v8190_v7  ;;  %v15367_v14 = vld [vmem:[#allocation37_spill] sm:$0xff] }
 0x8aa   :  { %12074 = vmatprep.mubr.bf16.mxu1 %v8216_v24  ;;  %v9157_v24 = vld [vmem:[#allocation2 + $0x3a] sm:$0xff] }
 0x8ab   :  { %v9220_v61 = vpack.c.bf16 %v9157_v24, %v9156_v52  ;;  %v9173_v7 = vld [vmem:[#allocation2 + $0xfa] sm:$0xff]  ;;  %v9241_v24 = vpack.c.bf16 %v9199_v4, %v9198_v16 }
 0x8ac   :  { %v9201_v52 = vld [vmem:[#allocation2 + $0x27a] sm:$0xff] }
 0x8b1   :  { %12075 = vmatmul.mubr.bf16.gmra.mrb[48].mxu1 %v8217_v43 }
 0x8b2   :  { %12078 = vmatprep.mubr.bf16.mxu1 %v8218_v22 }
 0x8b9   :  { %12079 = vmatmul.mubr.bf16.gmra.mrb[52].mxu1 %v8219_v57  ;;  %v9168_v57 = vld [vmem:[#allocation2 + $0xc2] sm:$0xff] }
 0x8ba   :  { %12082 = vmatprep.mubr.bf16.mxu1 %v8220_v28  ;;  %v9225_v28 = vpack.c.bf16 %v9167_v10, %v9166_v37  ;;  %v9226_v6 = vpack.c.bf16 %v9169_v40, %v9168_v57  ;;  %v9210_v37 = vld [vmem:[#allocation2 + $0x2ea] sm:$0xff]  ;;  %v9211_v10 = vld [vmem:[#allocation2 + $0x2f2] sm:$0xff]  ;;  %v9212_v57 = vld [vmem:[#allocation2 + $0x302] sm:$0xff] }
 0x8bb   :  { %v9213_v40 = vld [vmem:[#allocation2 + $0x30a] sm:$0xff] }
 0x8c1   :  { %12083 = vmatmul.mubr.bf16.gmra.mrb[56].mxu1 %v8221_v25  ;;  %v9171_v25 = vld [vmem:[#allocation2 + $0xe2] sm:$0xff] }
 0x8c2   :  { %12086 = vmatprep.mubr.bf16.mxu1 %v15347_v60  ;;  %v9172_v60 = vld [vmem:[#allocation2 + $0xf2] sm:$0xff] }
 0x8c9   :  { %12087 = vmatmul.mubr.bf16.gmra.mrb[60].mxu1 %v8223_v50  ;;  %v9227_v50 = vpack.c.bf16 %v9171_v25, %v9170_v29  ;;  %v9214_v29 = vld [vmem:[#allocation2 + $0x31a] sm:$0xff]  ;;  %v9215_v25 = vld [vmem:[#allocation2 + $0x322] sm:$0xff] }
 0x8ca   :  { %12106 = vmatprep.mubr.bf16.mxu1 %v15348_v5  ;;  %v9228_v5 = vpack.c.bf16 %v9173_v7, %v9172_v60  ;;  %v9249_v60 = vpack.c.bf16 %v9215_v25, %v9214_v29  ;;  %v9218_v7 = vld [vmem:[#allocation2 + $0x34a] sm:$0xff] }
 0x8d1   :  { %12107 = vmatmul.mubr.bf16.vlgmr.msra.gmra.mrb[0].mxu1 %v15349_v1  ;;  %v9175_v1 = vld [vmem:[#allocation2 + $0x112] sm:$0xff] }
 0x8d2   :  { %12110 = vmatprep.mubr.bf16.mxu1 %v15350_v45  ;;  %12171 = vmatpush3.bf16.msra.mxu1 %v13547_v36  ;;  %v15364_v36 = vld [vmem:[#allocation34_spill] sm:$0xff] }
 0x8d3   :  { %12172 = vmatprep.subr.bf16.mxu1 %v13548_v58  ;;  %v9176_v45 = vld [vmem:[#allocation2 + $0x122] sm:$0xff] }
 0x8d6   :  { %12173 = vmatpush3.bf16.msra.mxu1 %v13548_v58  ;;  %v9174_v58 = vld [vmem:[#allocation2 + $0x10a] sm:$0xff] }
 0x8d7   :  { %12174 = vmatprep.subr.bf16.mxu1 %v13549_v12 }
 0x8d9   :  { %12111 = vmatmul.mubr.bf16.gmra.mrb[4].mxu1 %v15351_v49 }
 0x8da   :  { %12114 = vmatprep.mubr.bf16.mxu1 %v15352_v53  ;;  %12175 = vmatpush3.bf16.msra.mxu1 %v13549_v12  ;;  %v9177_v12 = vld [vmem:[#allocation2 + $0x12a] sm:$0xff]  ;;  %v9178_v53 = vld [vmem:[#allocation2 + $0x13a] sm:$0xff] }
 0x8db   :  { %12176 = vmatprep.subr.bf16.mxu1 %v13550_v17  ;;  %v9230_v49 = vpack.c.bf16 %v9177_v12, %v9176_v45  ;;  %v9672_v45 = vld [vmem:[#allocation3 + $0x10] sm:$0xff] }
 0x8de   :  { %12177 = vmatpush3.bf16.msra.mxu1 %v13550_v17  ;;  %v9229_v17 = vpack.c.bf16 %v9175_v1, %v9174_v58  ;;  %v15044_v58 = vld [vmem:[%s15129_s4] ss:$0 sm:$0xff]  ;;  %s13662_s4 = smov [#allocation9]  }
 0x8df   :  { %12178 = vmatprep.subr.bf16.mxu1 %v13551_v56  ;;  %s9931_s8 = sshll.u32 %s13662_s4, 4  ;;  %s9932_s8 = int_to_ptr.vmem [resolvable:$true] %s9931_s8 }
 0x8e0   :  { %s13626_s9 = scalar_lea.vmem %s9932_s8, 8192  ;;  %p13631_p11 = scmp.lt.s32.totalorder %s9932_s8, %s9932_s8 }
 0x8e1   :  { %12115 = vmatmul.mubr.bf16.gmra.mrb[8].mxu1 %v15353_v0  ;;  %v9181_v0 = vld [vmem:[#allocation2 + $0x15a] sm:$0xff]  ;;  %p13627_p10 = scmp.ne.s32.totalorder %s9932_s8, %s13626_s9  ;;  %p13632_p12 = scmp.lt.s32.totalorder %s13626_s9, %s13626_s9 }
 0x8e2   :  { %12118 = vmatprep.mubr.bf16.mxu1 %v15354_v39  ;;  %12179 = vmatpush3.bf16.msra.mxu1 %v13551_v56  ;;  %v9179_v56 = vld [vmem:[#allocation2 + $0x142] sm:$0xff] }
 0x8e3   :  { %12180 = vmatprep.subr.bf16.mxu1 %v13552_v19  ;;  %v9231_v39 = vpack.c.bf16 %v9179_v56, %v9178_v53  ;;  %p13633_p13 = por %p13632_p12, %p13631_p11 }
 0x8e5   :  { %p13634_p0 = pnand %p13633_p13, %p13627_p10 }
 0x8e6   :  { %12181 = vmatpush3.bf16.msra.mxu1 %v13552_v19  ;;  %v9180_v19 = vld [vmem:[#allocation2 + $0x152] sm:$0xff] }
 0x8e7   :  { %12182 = vmatprep.subr.bf16.mxu1 %v13553_v9 }
 0x8e9   :  { %12119 = vmatmul.mubr.bf16.gmra.mrb[12].mxu1 %v15355_v34  ;;  %v9183_v34 = vld [vmem:[#allocation2 + $0x172] sm:$0xff] }
 0x8ea   :  { %12122 = vmatprep.mubr.bf16.mxu1 %v15356_v46  ;;  %12183 = vmatpush3.bf16.msra.mxu1 %v13553_v9  ;;  %v9232_v9 = vpack.c.bf16 %v9181_v0, %v9180_v19  ;;  %v9673_v19 = vld [vmem:[#allocation3 + $0x18] sm:$0xff] }
 0x8eb   :  { %12184 = vmatprep.subr.bf16.mxu1 %v13554_v27 }
 0x8ee   :  { %12185 = vmatpush3.bf16.msra.mxu1 %v13554_v27  ;;  %v9182_v27 = vld [vmem:[#allocation2 + $0x16a] sm:$0xff] }
 0x8ef   :  { %v9233_v46 = vpack.c.bf16 %v9183_v34, %v9182_v27 }
 0x8f1   :  { %12123 = vmatmul.mubr.bf16.gmra.mrb[16].mxu1 %v15357_v47  ;;  %v9186_v47 = vld [vmem:[#allocation2 + $0x19a] sm:$0xff] }
 0x8f2   :  { %12126 = vmatprep.mubr.bf16.mxu1 %v15358_v32  ;;  %v9187_v32 = vld [vmem:[#allocation2 + $0x1a2] sm:$0xff] }
 0x8f9   :  { %12127 = vmatmul.mubr.bf16.gmra.mrb[20].mxu1 %v15359_v20  ;;  %v9235_v20 = vpack.c.bf16 %v9187_v32, %v9186_v47 }
 0x8fa   :  { %12130 = vmatprep.mubr.bf16.mxu1 %v15360_v59  ;;  %v9188_v59 = vld [vmem:[#allocation2 + $0x1e2] sm:$0xff] }
 0x901   :  { %12131 = vmatmul.mubr.bf16.gmra.mrb[24].mxu1 %v15361_v35  ;;  %v9189_v35 = vld [vmem:[#allocation2 + $0x1ea] sm:$0xff] }
 0x902   :  { %12134 = vmatprep.mubr.bf16.mxu1 %v14900_v30  ;;  %v15370_v30 = vld [vmem:[#allocation40_spill] sm:$0xff]  ;;  %v9236_v13 = vpack.c.bf16 %v9189_v35, %v9188_v59 }
 0x909   :  { %12135 = vmatmul.mubr.bf16.gmra.mrb[28].mxu1 %v8721_v11  ;;  %v9191_v11 = vld [vmem:[#allocation2 + $0x202] sm:$0xff] }
 0x90a   :  { %12138 = vmatprep.mubr.bf16.mxu1 %v15362_v21  ;;  %v9192_v21 = vld [vmem:[#allocation2 + $0x212] sm:$0xff] }
 0x911   :  { %12139 = vmatmul.mubr.bf16.gmra.mrb[32].mxu1 %v15363_v2  ;;  %v9193_v2 = vld [vmem:[#allocation2 + $0x21a] sm:$0xff] }
 0x912   :  { %12142 = vmatprep.mubr.bf16.mxu1 %v15364_v36  ;;  %v9237_v36 = vpack.c.bf16 %v9191_v11, %v9190_v18  ;;  %v9676_v18 = vld [vmem:[#allocation3 + $0x30] sm:$0xff] }
 0x919   :  { %12143 = vmatmul.mubr.bf16.gmra.mrb[36].mxu1 %v15365_v33  ;;  %v9238_v33 = vpack.c.bf16 %v9193_v2, %v9192_v21  ;;  %v9674_v2 = vld [vmem:[#allocation3 + $0x20] sm:$0xff] }
 0x91a   :  { %12146 = vmatprep.mubr.bf16.mxu1 %v15366_v38  ;;  %v9194_v38 = vld [vmem:[#allocation2 + $0x22a] sm:$0xff] }
 0x921   :  { %12147 = vmatmul.mubr.bf16.gmra.mrb[40].mxu1 %v15367_v14  ;;  %v9195_v14 = vld [vmem:[#allocation2 + $0x232] sm:$0xff] }
 0x922   :  { %12150 = vmatprep.mubr.bf16.mxu1 %v15368_v62  ;;  %v9196_v62 = vld [vmem:[#allocation2 + $0x242] sm:$0xff] }
 0x929   :  { %12151 = vmatmul.mubr.bf16.gmra.mrb[44].mxu1 %v15369_v41  ;;  %v9239_v41 = vpack.c.bf16 %v9195_v14, %v9194_v38  ;;  %v9677_v38 = vld [vmem:[#allocation3 + $0x38] sm:$0xff] }
 0x92a   :  { %12154 = vmatprep.mubr.bf16.mxu1 %v15370_v30 }
 0x931   :  { %12155 = vmatmul.mubr.bf16.gmra.mrb[48].mxu1 %v14929_v42  ;;  %v9159_v42 = vld [vmem:[#allocation2 + $0x52] sm:$0xff] }
 0x932   :  { %12158 = vmatprep.mubr.bf16.mxu1 %v14933_v31  ;;  %v9161_v31 = vld [vmem:[#allocation2 + $0x6a] sm:$0xff]  ;;  %v9221_v43 = vpack.c.bf16 %v9159_v42, %v9158_v26  ;;  %v9203_v42 = vld [vmem:[#allocation2 + $0x292] sm:$0xff] }
 0x933   :  { %v9202_v26 = vld [vmem:[#allocation2 + $0x28a] sm:$0xff] }
 0x939   :  { %12159 = vmatmul.mubr.bf16.gmra.mrb[52].mxu1 %v14935_v63  ;;  %v9222_v63 = vpack.c.bf16 %v9161_v31, %v9160_v8  ;;  %v9204_v8 = vld [vmem:[#allocation2 + $0x2a2] sm:$0xff]  ;;  %v9205_v31 = vld [vmem:[#allocation2 + $0x2aa] sm:$0xff] }
 0x93a   :  { %12162 = vmatprep.mubr.bf16.mxu1 %v14939_v23  ;;  %v9162_v23 = vld [vmem:[#allocation2 + $0x7a] sm:$0xff] }
 0x941   :  { %12163 = vmatmul.mubr.bf16.gmra.mrb[56].mxu1 %v14941_v48  ;;  %v9163_v48 = vld [vmem:[#allocation2 + $0x82] sm:$0xff] }
 0x942   :  { %12166 = vmatprep.mubr.bf16.mxu1 %v14945_v54  ;;  %v9165_v54 = vld [vmem:[#allocation2 + $0x9a] sm:$0xff]  ;;  %v9223_v22 = vpack.c.bf16 %v9163_v48, %v9162_v23  ;;  %v9207_v48 = vld [vmem:[#allocation2 + $0x2c2] sm:$0xff] }
 0x943   :  { %v9224_v55 = vpack.c.bf16 %v9165_v54, %v9164_v51  ;;  %v9206_v23 = vld [vmem:[#allocation2 + $0x2ba] sm:$0xff]  ;;  %v9208_v51 = vld [vmem:[#allocation2 + $0x2d2] sm:$0xff] }
 0x944   :  { %v9209_v54 = vld [vmem:[#allocation2 + $0x2da] sm:$0xff] }
 0x949   :  { %12167 = vmatmul.mubr.bf16.gmra.mrb[60].mxu1 %v8737_v44  ;;  %v9200_v44 = vld [vmem:[#allocation2 + $0x272] sm:$0xff] }
 0x94a   :  { %12186 = vmatprep.mubr.bf16.mxu1 %v9220_v61  ;;  %v9242_v61 = vpack.c.bf16 %v9201_v52, %v9200_v44 }
 0x951   :  { %12187 = vmatmul.mubr.bf16.vlgmr.msra.gmra.mrb[0].mxu1 %v9221_v43  ;;  %v9243_v43 = vpack.c.bf16 %v9203_v42, %v9202_v26 }
 0x952   :  { %12190 = vmatprep.mubr.bf16.mxu1 %v9222_v63  ;;  %v9244_v63 = vpack.c.bf16 %v9205_v31, %v9204_v8  ;;  %v9680_v8 = vld [vmem:[#allocation3 + $0x50] sm:$0xff] }
 0x959   :  { %12191 = vmatmul.mubr.bf16.gmra.mrb[4].mxu1 %v9223_v22  ;;  %v9245_v22 = vpack.c.bf16 %v9207_v48, %v9206_v23 }
 0x95a   :  { %12194 = vmatprep.mubr.bf16.mxu1 %v9224_v55  ;;  %v9246_v55 = vpack.c.bf16 %v9209_v54, %v9208_v51  ;;  %v9681_v51 = vld [vmem:[#allocation3 + $0x58] sm:$0xff] }
 0x961   :  { %12195 = vmatmul.mubr.bf16.gmra.mrb[8].mxu1 %v9225_v28  ;;  %v9247_v28 = vpack.c.bf16 %v9211_v10, %v9210_v37  ;;  %v9679_v37 = vld [vmem:[#allocation3 + $0x48] sm:$0xff] }
 0x962   :  { %12198 = vmatprep.mubr.bf16.mxu1 %v9226_v6  ;;  %v9248_v6 = vpack.c.bf16 %v9213_v40, %v9212_v57 }
 0x969   :  { %12199 = vmatmul.mubr.bf16.gmra.mrb[12].mxu1 %v9227_v50  ;;  %v9219_v50 = vld [vmem:[#allocation2 + $0x352] sm:$0xff] }
 0x96a   :  { %12202 = vmatprep.mubr.bf16.mxu1 %v9228_v5  ;;  %v9251_v5 = vpack.c.bf16 %v9219_v50, %v9218_v7  ;;  %v9684_v50 = vld [vmem:[#allocation3 + $0x70] sm:$0xff] }
 0x971   :  { %12203 = vmatmul.mubr.bf16.gmra.mrb[16].mxu1 %v9229_v17 }
 0x972   :  { %12206 = vmatprep.mubr.bf16.mxu1 %v9230_v49  ;;  %v9670_v49 = vld [vmem:[#allocation3] sm:$0xff] }
 0x979   :  { %12207 = vmatmul.mubr.bf16.gmra.mrb[20].mxu1 %v9231_v39 }
 0x97a   :  { %12210 = vmatprep.mubr.bf16.mxu1 %v9232_v9  ;;  %v9671_v9 = vld [vmem:[#allocation3 + $0x8] sm:$0xff] }
 0x981   :  { %12211 = vmatmul.mubr.bf16.gmra.mrb[24].mxu1 %v9233_v46 }
 0x982   :  { %12214 = vmatprep.mubr.bf16.mxu1 %v14964_v3  ;;  %v9197_v3 = vld [vmem:[#allocation2 + $0x24a] sm:$0xff] }
 0x983   :  { %v9240_v30 = vpack.c.bf16 %v9197_v3, %v9196_v62 }
 0x989   :  { %12215 = vmatmul.mubr.bf16.gmra.mrb[28].mxu1 %v9235_v20 }
 0x98a   :  { %12218 = vmatprep.mubr.bf16.mxu1 %v9236_v13 }
 0x991   :  { %12219 = vmatmul.mubr.bf16.gmra.mrb[32].mxu1 %v9237_v36 }
 0x992   :  { %12222 = vmatprep.mubr.bf16.mxu1 %v9238_v33 }
 0x999   :  { %12223 = vmatmul.mubr.bf16.gmra.mrb[36].mxu1 %v9239_v41  ;;  %v9675_v41 = vld [vmem:[#allocation3 + $0x28] sm:$0xff] }
 0x99a   :  { %12226 = vmatprep.mubr.bf16.mxu1 %v9240_v30 }
 0x9a1   :  { %12227 = vmatmul.mubr.bf16.gmra.mrb[40].mxu1 %v9241_v24 }
 0x9a2   :  { %12230 = vmatprep.mubr.bf16.mxu1 %v9242_v61 }
 0x9a9   :  { %12231 = vmatmul.mubr.bf16.gmra.mrb[44].mxu1 %v9243_v43 }
 0x9aa   :  { %12234 = vmatprep.mubr.bf16.mxu1 %v9244_v63  ;;  %v9678_v63 = vld [vmem:[#allocation3 + $0x40] sm:$0xff] }
 0x9b1   :  { %12235 = vmatmul.mubr.bf16.gmra.mrb[48].mxu1 %v9245_v22 }
 0x9b2   :  { %12238 = vmatprep.mubr.bf16.mxu1 %v9246_v55 }
 0x9b9   :  { %12239 = vmatmul.mubr.bf16.gmra.mrb[52].mxu1 %v9247_v28 }
 0x9ba   :  { %12242 = vmatprep.mubr.bf16.mxu1 %v9248_v6 }
 0x9c1   :  { %12243 = vmatmul.mubr.bf16.gmra.mrb[56].mxu1 %v9249_v60 }
 0x9c2   :  { %12246 = vmatprep.mubr.bf16.mxu1 %v14982_v15 }
 0x9c9   :  { %12247 = vmatmul.mubr.bf16.gmra.mrb[60].mxu1 %v9251_v5 }
 0xa24   :  { %v12188_v1 = vpop.f32.mrb[0].mxu1 }
 0xa25   :  { %v12314_v12 = vadd.f32 %v12188_v1, %v15044_v58  ;;  %v9351_v17 = vpop.f32.mrb[1].mxu1 }
 0xa26   :  { %v12315_v53 = vadd.f32 %v15044_v58, %v9351_v17  ;;  %v12189_v56 = vpop.f32.mrb[2].mxu1 }
 0xa27   :  { %v9736_v15 = vadd.f32 %v12314_v12, %v9672_v45  ;;  %v12316_v0 = vadd.f32 %v12189_v56, %v15044_v58  ;;  %v9354_v39 = vpop.f32.mrb[3].mxu1  ;;  %v9682_v45 = vld [vmem:[#allocation3 + $0x60] sm:$0xff] }
 0xa28   :  { %v9734_v27 = vadd.f32 %v12315_v53, %v9670_v49  ;;  %v12317_v34 = vadd.f32 %v15044_v58, %v9354_v39  ;;  %v9685_v49 = vld [vmem:[#allocation3 + $0x78] sm:$0xff] }
 0xa29   :  { %v9800_v46 = vmax.f32 %v9736_v15, 0.0  ;;  %v9737_v47 = vadd.f32 %v12316_v0, %v9673_v19  ;;  %v9683_v15 = vld [vmem:[#allocation3 + $0x68] sm:$0xff] }
 0xa2a   :  { %v9798_v32 = vmax.f32 %v9734_v27, 0.0  ;;  %v9735_v20 = vadd.f32 %v12317_v34, %v9671_v9 }
 0xa2b   :  { %9864 = vst [vmem:[#allocation9 + $0x10] sm:$0xff] %v9800_v46  ;;  %v9801_v59 = vmax.f32 %v9737_v47, 0.0 }
 0xa2c   :  { %9862 = vst [vmem:[#allocation9] sm:$0xff] %v9798_v32  ;;  %v9799_v35 = vmax.f32 %v9735_v20, 0.0  ;;  %v12192_v13 = vpop.f32.mrb[4].mxu1 }
 0xa2d   :  { %9865 = vst [vmem:[#allocation9 + $0x18] sm:$0xff] %v9801_v59  ;;  %v12318_v11 = vadd.f32 %v12192_v13, %v15044_v58  ;;  %v9367_v21 = vpop.f32.mrb[5].mxu1  ;;  %v9688_v59 = vld [vmem:[#allocation3 + $0x90] sm:$0xff] }
 0xa2e   :  { %9863 = vst [vmem:[#allocation9 + $0x8] sm:$0xff] %v9799_v35  ;;  %v12319_v36 = vadd.f32 %v15044_v58, %v9367_v21  ;;  %v12193_v33 = vpop.f32.mrb[6].mxu1 }
 0xa2f   :  { %v9740_v14 = vadd.f32 %v12318_v11, %v9676_v18  ;;  %v12320_v62 = vadd.f32 %v12193_v33, %v15044_v58  ;;  %v9370_v3 = vpop.f32.mrb[7].mxu1  ;;  %v9686_v18 = vld [vmem:[#allocation3 + $0x80] sm:$0xff] }
 0xa30   :  { %v9738_v30 = vadd.f32 %v12319_v36, %v9674_v2  ;;  %v12321_v16 = vadd.f32 %v15044_v58, %v9370_v3  ;;  %v9689_v2 = vld [vmem:[#allocation3 + $0x98] sm:$0xff] }
 0xa31   :  { %v9804_v4 = vmax.f32 %v9740_v14, 0.0  ;;  %v9741_v44 = vadd.f32 %v12320_v62, %v9677_v38  ;;  %v9687_v14 = vld [vmem:[#allocation3 + $0x88] sm:$0xff] }
 0xa32   :  { %v9802_v52 = vmax.f32 %v9738_v30, 0.0  ;;  %v9739_v24 = vadd.f32 %v12321_v16, %v9675_v41 }
 0xa33   :  { %9868 = vst [vmem:[#allocation9 + $0x30] sm:$0xff] %v9804_v4  ;;  %v9805_v61 = vmax.f32 %v9741_v44, 0.0 }
 0xa34   :  { %9866 = vst [vmem:[#allocation9 + $0x20] sm:$0xff] %v9802_v52  ;;  %v9803_v26 = vmax.f32 %v9739_v24, 0.0  ;;  %v12196_v42 = vpop.f32.mrb[8].mxu1 }
 0xa35   :  { %9869 = vst [vmem:[#allocation9 + $0x38] sm:$0xff] %v9805_v61  ;;  %v12322_v31 = vadd.f32 %v12196_v42, %v15044_v58  ;;  %v9383_v43 = vpop.f32.mrb[9].mxu1  ;;  %v9692_v61 = vld [vmem:[#allocation3 + $0xb0] sm:$0xff] }
 0xa36   :  { %9867 = vst [vmem:[#allocation9 + $0x28] sm:$0xff] %v9803_v26  ;;  %v12323_v23 = vadd.f32 %v15044_v58, %v9383_v43  ;;  %v12197_v48 = vpop.f32.mrb[10].mxu1 }
 0xa37   :  { %v9744_v54 = vadd.f32 %v12322_v31, %v9680_v8  ;;  %v12324_v22 = vadd.f32 %v12197_v48, %v15044_v58  ;;  %v9386_v55 = vpop.f32.mrb[11].mxu1  ;;  %v9690_v8 = vld [vmem:[#allocation3 + $0xa0] sm:$0xff] }
 0xa38   :  { %v9742_v10 = vadd.f32 %v12323_v23, %v9678_v63  ;;  %v12325_v57 = vadd.f32 %v15044_v58, %v9386_v55  ;;  %v9693_v63 = vld [vmem:[#allocation3 + $0xb8] sm:$0xff] }
 0xa39   :  { %v9808_v40 = vmax.f32 %v9744_v54, 0.0  ;;  %v9745_v28 = vadd.f32 %v12324_v22, %v9681_v51  ;;  %v9691_v54 = vld [vmem:[#allocation3 + $0xa8] sm:$0xff] }
 0xa3a   :  { %v9806_v6 = vmax.f32 %v9742_v10, 0.0  ;;  %v9743_v29 = vadd.f32 %v12325_v57, %v9679_v37 }
 0xa3b   :  { %9872 = vst [vmem:[#allocation9 + $0x50] sm:$0xff] %v9808_v40  ;;  %v9809_v25 = vmax.f32 %v9745_v28, 0.0 }
 0xa3c   :  { %9870 = vst [vmem:[#allocation9 + $0x40] sm:$0xff] %v9806_v6  ;;  %v9807_v60 = vmax.f32 %v9743_v29, 0.0  ;;  %v12200_v7 = vpop.f32.mrb[12].mxu1 }
 0xa3d   :  { %9873 = vst [vmem:[#allocation9 + $0x58] sm:$0xff] %v9809_v25  ;;  %v12326_v5 = vadd.f32 %v12200_v7, %v15044_v58  ;;  %v9399_v1 = vpop.f32.mrb[13].mxu1  ;;  %v9696_v25 = vld [vmem:[#allocation3 + $0xd0] sm:$0xff] }
 0xa3e   :  { %9871 = vst [vmem:[#allocation9 + $0x48] sm:$0xff] %v9807_v60  ;;  %v12327_v12 = vadd.f32 %v15044_v58, %v9399_v1  ;;  %v12201_v17 = vpop.f32.mrb[14].mxu1 }
 0xa3f   :  { %v9748_v53 = vadd.f32 %v12326_v5, %v9684_v50  ;;  %v12328_v56 = vadd.f32 %v12201_v17, %v15044_v58  ;;  %v9402_v19 = vpop.f32.mrb[15].mxu1  ;;  %v9694_v50 = vld [vmem:[#allocation3 + $0xc0] sm:$0xff] }
 0xa40   :  { %v9746_v0 = vadd.f32 %v12327_v12, %v9682_v45  ;;  %v12329_v39 = vadd.f32 %v15044_v58, %v9402_v19  ;;  %v9697_v45 = vld [vmem:[#allocation3 + $0xd8] sm:$0xff] }
 0xa41   :  { %v9812_v9 = vmax.f32 %v9748_v53, 0.0  ;;  %v9749_v27 = vadd.f32 %v12328_v56, %v9685_v49  ;;  %v9695_v53 = vld [vmem:[#allocation3 + $0xc8] sm:$0xff] }
 0xa42   :  { %v9810_v34 = vmax.f32 %v9746_v0, 0.0  ;;  %v9747_v46 = vadd.f32 %v12329_v39, %v9683_v15 }
 0xa43   :  { %9876 = vst [vmem:[#allocation9 + $0x70] sm:$0xff] %v9812_v9  ;;  %v9813_v47 = vmax.f32 %v9749_v27, 0.0 }
 0xa44   :  { %9874 = vst [vmem:[#allocation9 + $0x60] sm:$0xff] %v9810_v34  ;;  %v9811_v32 = vmax.f32 %v9747_v46, 0.0  ;;  %v12204_v20 = vpop.f32.mrb[16].mxu1 }
 0xa45   :  { %9877 = vst [vmem:[#allocation9 + $0x78] sm:$0xff] %v9813_v47  ;;  %v12330_v35 = vadd.f32 %v12204_v20, %v15044_v58  ;;  %v9415_v13 = vpop.f32.mrb[17].mxu1  ;;  %v9700_v47 = vld [vmem:[#allocation3 + $0xf0] sm:$0xff] }
 0xa46   :  { %9875 = vst [vmem:[#allocation9 + $0x68] sm:$0xff] %v9811_v32  ;;  %v12331_v11 = vadd.f32 %v15044_v58, %v9415_v13  ;;  %v12205_v21 = vpop.f32.mrb[18].mxu1 }
 0xa47   :  { %v9752_v36 = vadd.f32 %v12330_v35, %v9688_v59  ;;  %v12332_v33 = vadd.f32 %v12205_v21, %v15044_v58  ;;  %v9418_v38 = vpop.f32.mrb[19].mxu1  ;;  %v9698_v59 = vld [vmem:[#allocation3 + $0xe0] sm:$0xff] }
 0xa48   :  { %v9750_v62 = vadd.f32 %v12331_v11, %v9686_v18  ;;  %v12333_v3 = vadd.f32 %v15044_v58, %v9418_v38  ;;  %v9701_v18 = vld [vmem:[#allocation3 + $0xf8] sm:$0xff] }
 0xa49   :  { %v9816_v41 = vmax.f32 %v9752_v36, 0.0  ;;  %v9753_v30 = vadd.f32 %v12332_v33, %v9689_v2  ;;  %v9699_v36 = vld [vmem:[#allocation3 + $0xe8] sm:$0xff] }
 0xa4a   :  { %v9814_v16 = vmax.f32 %v9750_v62, 0.0  ;;  %v9751_v4 = vadd.f32 %v12333_v3, %v9687_v14 }
 0xa4b   :  { %9880 = vst [vmem:[#allocation9 + $0x90] sm:$0xff] %v9816_v41  ;;  %v9817_v44 = vmax.f32 %v9753_v30, 0.0 }
 0xa4c   :  { %9878 = vst [vmem:[#allocation9 + $0x80] sm:$0xff] %v9814_v16  ;;  %v9815_v52 = vmax.f32 %v9751_v4, 0.0  ;;  %v12208_v24 = vpop.f32.mrb[20].mxu1 }
 0xa4d   :  { %9881 = vst [vmem:[#allocation9 + $0x98] sm:$0xff] %v9817_v44  ;;  %v12334_v26 = vadd.f32 %v12208_v24, %v15044_v58  ;;  %v9431_v42 = vpop.f32.mrb[21].mxu1  ;;  %v9704_v44 = vld [vmem:[#allocation3 + $0x110] sm:$0xff] }
 0xa4e   :  { %9879 = vst [vmem:[#allocation9 + $0x88] sm:$0xff] %v9815_v52  ;;  %v12335_v31 = vadd.f32 %v15044_v58, %v9431_v42  ;;  %v12209_v43 = vpop.f32.mrb[22].mxu1 }
 0xa4f   :  { %v9756_v23 = vadd.f32 %v12334_v26, %v9692_v61  ;;  %v12336_v48 = vadd.f32 %v12209_v43, %v15044_v58  ;;  %v9434_v51 = vpop.f32.mrb[23].mxu1  ;;  %v9702_v61 = vld [vmem:[#allocation3 + $0x100] sm:$0xff] }
 0xa50   :  { %v9754_v22 = vadd.f32 %v12335_v31, %v9690_v8  ;;  %v12337_v55 = vadd.f32 %v15044_v58, %v9434_v51  ;;  %v9705_v8 = vld [vmem:[#allocation3 + $0x118] sm:$0xff] }
 0xa51   :  { %v9820_v37 = vmax.f32 %v9756_v23, 0.0  ;;  %v9757_v10 = vadd.f32 %v12336_v48, %v9693_v63  ;;  %v9703_v23 = vld [vmem:[#allocation3 + $0x108] sm:$0xff] }
 0xa52   :  { %v9818_v57 = vmax.f32 %v9754_v22, 0.0  ;;  %v9755_v40 = vadd.f32 %v12337_v55, %v9691_v54 }
 0xa53   :  { %9884 = vst [vmem:[#allocation9 + $0xb0] sm:$0xff] %v9820_v37  ;;  %v9821_v28 = vmax.f32 %v9757_v10, 0.0 }
 0xa54   :  { %9882 = vst [vmem:[#allocation9 + $0xa0] sm:$0xff] %v9818_v57  ;;  %v9819_v6 = vmax.f32 %v9755_v40, 0.0  ;;  %v12212_v29 = vpop.f32.mrb[24].mxu1 }
 0xa55   :  { %9885 = vst [vmem:[#allocation9 + $0xb8] sm:$0xff] %v9821_v28  ;;  %v12338_v60 = vadd.f32 %v12212_v29, %v15044_v58  ;;  %v9447_v7 = vpop.f32.mrb[25].mxu1  ;;  %v9708_v28 = vld [vmem:[#allocation3 + $0x130] sm:$0xff] }
 0xa56   :  { %9883 = vst [vmem:[#allocation9 + $0xa8] sm:$0xff] %v9819_v6  ;;  %v12339_v5 = vadd.f32 %v15044_v58, %v9447_v7  ;;  %v12213_v1 = vpop.f32.mrb[26].mxu1 }
 0xa57   :  { %v9760_v12 = vadd.f32 %v12338_v60, %v9696_v25  ;;  %v12340_v17 = vadd.f32 %v12213_v1, %v15044_v58  ;;  %v9450_v49 = vpop.f32.mrb[27].mxu1  ;;  %v9706_v25 = vld [vmem:[#allocation3 + $0x120] sm:$0xff] }
 0xa58   :  { %v9758_v56 = vadd.f32 %v12339_v5, %v9694_v50  ;;  %v12341_v19 = vadd.f32 %v15044_v58, %v9450_v49  ;;  %v9709_v50 = vld [vmem:[#allocation3 + $0x138] sm:$0xff] }
 0xa59   :  { %v9824_v15 = vmax.f32 %v9760_v12, 0.0  ;;  %v9761_v0 = vadd.f32 %v12340_v17, %v9697_v45  ;;  %v9707_v12 = vld [vmem:[#allocation3 + $0x128] sm:$0xff] }
 0xa5a   :  { %v9822_v39 = vmax.f32 %v9758_v56, 0.0  ;;  %v9759_v9 = vadd.f32 %v12341_v19, %v9695_v53 }
 0xa5b   :  { %9888 = vst [vmem:[#allocation9 + $0xd0] sm:$0xff] %v9824_v15  ;;  %v9825_v27 = vmax.f32 %v9761_v0, 0.0 }
 0xa5c   :  { %9886 = vst [vmem:[#allocation9 + $0xc0] sm:$0xff] %v9822_v39  ;;  %v9823_v34 = vmax.f32 %v9759_v9, 0.0  ;;  %v12216_v46 = vpop.f32.mrb[28].mxu1 }
 0xa5d   :  { %9889 = vst [vmem:[#allocation9 + $0xd8] sm:$0xff] %v9825_v27  ;;  %v12342_v32 = vadd.f32 %v12216_v46, %v15044_v58  ;;  %v9463_v20 = vpop.f32.mrb[29].mxu1  ;;  %v9712_v27 = vld [vmem:[#allocation3 + $0x150] sm:$0xff] }
 0xa5e   :  { %9887 = vst [vmem:[#allocation9 + $0xc8] sm:$0xff] %v9823_v34  ;;  %v12343_v35 = vadd.f32 %v15044_v58, %v9463_v20  ;;  %v12217_v13 = vpop.f32.mrb[30].mxu1 }
 0xa5f   :  { %v9764_v11 = vadd.f32 %v12342_v32, %v9700_v47  ;;  %v12344_v21 = vadd.f32 %v12217_v13, %v15044_v58  ;;  %v9466_v2 = vpop.f32.mrb[31].mxu1  ;;  %v9710_v47 = vld [vmem:[#allocation3 + $0x140] sm:$0xff] }
 0xa60   :  { %v9762_v33 = vadd.f32 %v12343_v35, %v9698_v59  ;;  %v12345_v38 = vadd.f32 %v15044_v58, %v9466_v2  ;;  %v9713_v59 = vld [vmem:[#allocation3 + $0x158] sm:$0xff] }
 0xa61   :  { %v9828_v14 = vmax.f32 %v9764_v11, 0.0  ;;  %v9765_v62 = vadd.f32 %v12344_v21, %v9701_v18  ;;  %v9711_v11 = vld [vmem:[#allocation3 + $0x148] sm:$0xff] }
 0xa62   :  { %v9826_v3 = vmax.f32 %v9762_v33, 0.0  ;;  %v9763_v41 = vadd.f32 %v12345_v38, %v9699_v36 }
 0xa63   :  { %9892 = vst [vmem:[#allocation9 + $0xf0] sm:$0xff] %v9828_v14  ;;  %v9829_v30 = vmax.f32 %v9765_v62, 0.0 }
 0xa64   :  { %9890 = vst [vmem:[#allocation9 + $0xe0] sm:$0xff] %v9826_v3  ;;  %v9827_v16 = vmax.f32 %v9763_v41, 0.0  ;;  %v12220_v4 = vpop.f32.mrb[32].mxu1 }
 0xa65   :  { %9893 = vst [vmem:[#allocation9 + $0xf8] sm:$0xff] %v9829_v30  ;;  %v12346_v52 = vadd.f32 %v12220_v4, %v15044_v58  ;;  %v9479_v24 = vpop.f32.mrb[33].mxu1  ;;  %v9716_v30 = vld [vmem:[#allocation3 + $0x170] sm:$0xff] }
 0xa66   :  { %9891 = vst [vmem:[#allocation9 + $0xe8] sm:$0xff] %v9827_v16  ;;  %v12347_v26 = vadd.f32 %v15044_v58, %v9479_v24  ;;  %v12221_v42 = vpop.f32.mrb[34].mxu1 }
 0xa67   :  { %v9768_v31 = vadd.f32 %v12346_v52, %v9704_v44  ;;  %v12348_v43 = vadd.f32 %v12221_v42, %v15044_v58  ;;  %v9482_v63 = vpop.f32.mrb[35].mxu1  ;;  %v9714_v44 = vld [vmem:[#allocation3 + $0x160] sm:$0xff] }
 0xa68   :  { %v9766_v48 = vadd.f32 %v12347_v26, %v9702_v61  ;;  %v12349_v51 = vadd.f32 %v15044_v58, %v9482_v63  ;;  %v9717_v61 = vld [vmem:[#allocation3 + $0x178] sm:$0xff] }
 0xa69   :  { %v9832_v54 = vmax.f32 %v9768_v31, 0.0  ;;  %v9769_v22 = vadd.f32 %v12348_v43, %v9705_v8  ;;  %v9715_v31 = vld [vmem:[#allocation3 + $0x168] sm:$0xff] }
 0xa6a   :  { %v9830_v55 = vmax.f32 %v9766_v48, 0.0  ;;  %v9767_v37 = vadd.f32 %v12349_v51, %v9703_v23 }
 0xa6b   :  { %9896 = vst [vmem:[#allocation9 + $0x110] sm:$0xff] %v9832_v54  ;;  %v9833_v10 = vmax.f32 %v9769_v22, 0.0 }
 0xa6c   :  { %9894 = vst [vmem:[#allocation9 + $0x100] sm:$0xff] %v9830_v55  ;;  %v9831_v57 = vmax.f32 %v9767_v37, 0.0  ;;  %v12224_v40 = vpop.f32.mrb[36].mxu1 }
 0xa6d   :  { %9897 = vst [vmem:[#allocation9 + $0x118] sm:$0xff] %v9833_v10  ;;  %v12350_v6 = vadd.f32 %v12224_v40, %v15044_v58  ;;  %v9495_v29 = vpop.f32.mrb[37].mxu1  ;;  %v9720_v10 = vld [vmem:[#allocation3 + $0x190] sm:$0xff] }
 0xa6e   :  { %9895 = vst [vmem:[#allocation9 + $0x108] sm:$0xff] %v9831_v57  ;;  %v12351_v60 = vadd.f32 %v15044_v58, %v9495_v29  ;;  %v12225_v7 = vpop.f32.mrb[38].mxu1 }
 0xa6f   :  { %v9772_v5 = vadd.f32 %v12350_v6, %v9708_v28  ;;  %v12352_v1 = vadd.f32 %v12225_v7, %v15044_v58  ;;  %v9498_v45 = vpop.f32.mrb[39].mxu1  ;;  %v9718_v28 = vld [vmem:[#allocation3 + $0x180] sm:$0xff] }
 0xa70   :  { %v9770_v17 = vadd.f32 %v12351_v60, %v9706_v25  ;;  %v12353_v49 = vadd.f32 %v15044_v58, %v9498_v45  ;;  %v9721_v25 = vld [vmem:[#allocation3 + $0x198] sm:$0xff] }
 0xa71   :  { %v9836_v53 = vmax.f32 %v9772_v5, 0.0  ;;  %v9773_v56 = vadd.f32 %v12352_v1, %v9709_v50  ;;  %v9719_v5 = vld [vmem:[#allocation3 + $0x188] sm:$0xff] }
 0xa72   :  { %v9834_v19 = vmax.f32 %v9770_v17, 0.0  ;;  %v9771_v15 = vadd.f32 %v12353_v49, %v9707_v12 }
 0xa73   :  { %9900 = vst [vmem:[#allocation9 + $0x130] sm:$0xff] %v9836_v53  ;;  %v9837_v0 = vmax.f32 %v9773_v56, 0.0 }
 0xa74   :  { %9898 = vst [vmem:[#allocation9 + $0x120] sm:$0xff] %v9834_v19  ;;  %v9835_v39 = vmax.f32 %v9771_v15, 0.0  ;;  %v12228_v9 = vpop.f32.mrb[40].mxu1 }
 0xa75   :  { %9901 = vst [vmem:[#allocation9 + $0x138] sm:$0xff] %v9837_v0  ;;  %v12354_v34 = vadd.f32 %v12228_v9, %v15044_v58  ;;  %v9511_v46 = vpop.f32.mrb[41].mxu1  ;;  %v9724_v0 = vld [vmem:[#allocation3 + $0x1b0] sm:$0xff] }
 0xa76   :  { %9899 = vst [vmem:[#allocation9 + $0x128] sm:$0xff] %v9835_v39  ;;  %v12355_v32 = vadd.f32 %v15044_v58, %v9511_v46  ;;  %v12229_v20 = vpop.f32.mrb[42].mxu1 }
 0xa77   :  { %v9776_v35 = vadd.f32 %v12354_v34, %v9712_v27  ;;  %v12356_v13 = vadd.f32 %v12229_v20, %v15044_v58  ;;  %v9514_v18 = vpop.f32.mrb[43].mxu1  ;;  %v9722_v27 = vld [vmem:[#allocation3 + $0x1a0] sm:$0xff] }
 0xa78   :  { %v9774_v21 = vadd.f32 %v12355_v32, %v9710_v47  ;;  %v12357_v2 = vadd.f32 %v15044_v58, %v9514_v18  ;;  %v9725_v47 = vld [vmem:[#allocation3 + $0x1b8] sm:$0xff] }
 0xa79   :  { %v9840_v36 = vmax.f32 %v9776_v35, 0.0  ;;  %v9777_v33 = vadd.f32 %v12356_v13, %v9713_v59  ;;  %v9723_v35 = vld [vmem:[#allocation3 + $0x1a8] sm:$0xff] }
 0xa7a   :  { %v9838_v38 = vmax.f32 %v9774_v21, 0.0  ;;  %v9775_v14 = vadd.f32 %v12357_v2, %v9711_v11 }
 0xa7b   :  { %9904 = vst [vmem:[#allocation9 + $0x150] sm:$0xff] %v9840_v36  ;;  %v9841_v62 = vmax.f32 %v9777_v33, 0.0 }
 0xa7c   :  { %9902 = vst [vmem:[#allocation9 + $0x140] sm:$0xff] %v9838_v38  ;;  %v9839_v3 = vmax.f32 %v9775_v14, 0.0  ;;  %v12232_v41 = vpop.f32.mrb[44].mxu1 }
 0xa7d   :  { %9905 = vst [vmem:[#allocation9 + $0x158] sm:$0xff] %v9841_v62  ;;  %v12358_v16 = vadd.f32 %v12232_v41, %v15044_v58  ;;  %v9527_v4 = vpop.f32.mrb[45].mxu1  ;;  %v9728_v62 = vld [vmem:[#allocation3 + $0x1d0] sm:$0xff] }
 0xa7e   :  { %9903 = vst [vmem:[#allocation9 + $0x148] sm:$0xff] %v9839_v3  ;;  %v12359_v52 = vadd.f32 %v15044_v58, %v9527_v4  ;;  %v12233_v24 = vpop.f32.mrb[46].mxu1 }
 0xa7f   :  { %v9780_v26 = vadd.f32 %v12358_v16, %v9716_v30  ;;  %v12360_v42 = vadd.f32 %v12233_v24, %v15044_v58  ;;  %v9530_v8 = vpop.f32.mrb[47].mxu1  ;;  %v9726_v30 = vld [vmem:[#allocation3 + $0x1c0] sm:$0xff] }
 0xa80   :  { %v9778_v43 = vadd.f32 %v12359_v52, %v9714_v44  ;;  %v12361_v63 = vadd.f32 %v15044_v58, %v9530_v8  ;;  %v9729_v44 = vld [vmem:[#allocation3 + $0x1d8] sm:$0xff] }
 0xa81   :  { %v9844_v23 = vmax.f32 %v9780_v26, 0.0  ;;  %v9781_v48 = vadd.f32 %v12360_v42, %v9717_v61  ;;  %v9727_v26 = vld [vmem:[#allocation3 + $0x1c8] sm:$0xff] }
 0xa82   :  { %v9842_v51 = vmax.f32 %v9778_v43, 0.0  ;;  %v9779_v54 = vadd.f32 %v12361_v63, %v9715_v31 }
 0xa83   :  { %9908 = vst [vmem:[#allocation9 + $0x170] sm:$0xff] %v9844_v23  ;;  %v9845_v22 = vmax.f32 %v9781_v48, 0.0 }
 0xa84   :  { %9906 = vst [vmem:[#allocation9 + $0x160] sm:$0xff] %v9842_v51  ;;  %v9843_v55 = vmax.f32 %v9779_v54, 0.0  ;;  %v12236_v37 = vpop.f32.mrb[48].mxu1 }
 0xa85   :  { %9909 = vst [vmem:[#allocation9 + $0x178] sm:$0xff] %v9845_v22  ;;  %v12362_v57 = vadd.f32 %v12236_v37, %v15044_v58  ;;  %v9543_v40 = vpop.f32.mrb[49].mxu1  ;;  %v9732_v22 = vld [vmem:[#allocation3 + $0x1f0] sm:$0xff] }
 0xa86   :  { %9907 = vst [vmem:[#allocation9 + $0x168] sm:$0xff] %v9843_v55  ;;  %v12363_v6 = vadd.f32 %v15044_v58, %v9543_v40  ;;  %v12237_v29 = vpop.f32.mrb[50].mxu1 }
 0xa87   :  { %v9784_v60 = vadd.f32 %v12362_v57, %v9720_v10  ;;  %v12364_v7 = vadd.f32 %v12237_v29, %v15044_v58  ;;  %v9546_v50 = vpop.f32.mrb[51].mxu1  ;;  %v9730_v10 = vld [vmem:[#allocation3 + $0x1e0] sm:$0xff] }
 0xa88   :  { %v9782_v1 = vadd.f32 %v12363_v6, %v9718_v28  ;;  %v12365_v45 = vadd.f32 %v15044_v58, %v9546_v50  ;;  %v9733_v28 = vld [vmem:[#allocation3 + $0x1f8] sm:$0xff] }
 0xa89   :  { %v9848_v12 = vmax.f32 %v9784_v60, 0.0  ;;  %v9785_v17 = vadd.f32 %v12364_v7, %v9721_v25  ;;  %v9731_v60 = vld [vmem:[#allocation3 + $0x1e8] sm:$0xff] }
 0xa8a   :  { %v9846_v49 = vmax.f32 %v9782_v1, 0.0  ;;  %v9783_v53 = vadd.f32 %v12365_v45, %v9719_v5 }
 0xa8b   :  { %9912 = vst [vmem:[#allocation9 + $0x190] sm:$0xff] %v9848_v12  ;;  %v9849_v56 = vmax.f32 %v9785_v17, 0.0 }
 0xa8c   :  { %9910 = vst [vmem:[#allocation9 + $0x180] sm:$0xff] %v9846_v49  ;;  %v9847_v19 = vmax.f32 %v9783_v53, 0.0  ;;  %v12240_v15 = vpop.f32.mrb[52].mxu1 }
 0xa8d   :  { %9913 = vst [vmem:[#allocation9 + $0x198] sm:$0xff] %v9849_v56  ;;  %v12366_v39 = vadd.f32 %v12240_v15, %v15044_v58  ;;  %v9559_v9 = vpop.f32.mrb[53].mxu1 }
 0xa8e   :  { %9911 = vst [vmem:[#allocation9 + $0x188] sm:$0xff] %v9847_v19  ;;  %v12367_v34 = vadd.f32 %v15044_v58, %v9559_v9  ;;  %v12241_v46 = vpop.f32.mrb[54].mxu1 }
 0xa8f   :  { %v9788_v32 = vadd.f32 %v12366_v39, %v9724_v0  ;;  %v12368_v20 = vadd.f32 %v12241_v46, %v15044_v58  ;;  %v9562_v59 = vpop.f32.mrb[55].mxu1 }
 0xa90   :  { %v9786_v13 = vadd.f32 %v12367_v34, %v9722_v27  ;;  %v12369_v18 = vadd.f32 %v15044_v58, %v9562_v59 }
 0xa91   :  { %v9852_v11 = vmax.f32 %v9788_v32, 0.0  ;;  %v9789_v21 = vadd.f32 %v12368_v20, %v9725_v47 }
 0xa92   :  { %v9850_v2 = vmax.f32 %v9786_v13, 0.0  ;;  %v9787_v36 = vadd.f32 %v12369_v18, %v9723_v35 }
 0xa93   :  { %9916 = vst [vmem:[#allocation9 + $0x1b0] sm:$0xff] %v9852_v11  ;;  %v9853_v33 = vmax.f32 %v9789_v21, 0.0 }
 0xa94   :  { %9914 = vst [vmem:[#allocation9 + $0x1a0] sm:$0xff] %v9850_v2  ;;  %v9851_v38 = vmax.f32 %v9787_v36, 0.0  ;;  %v12244_v14 = vpop.f32.mrb[56].mxu1 }
 0xa95   :  { %9917 = vst [vmem:[#allocation9 + $0x1b8] sm:$0xff] %v9853_v33  ;;  %v12370_v3 = vadd.f32 %v12244_v14, %v15044_v58  ;;  %v9575_v41 = vpop.f32.mrb[57].mxu1 }
 0xa96   :  { %9915 = vst [vmem:[#allocation9 + $0x1a8] sm:$0xff] %v9851_v38  ;;  %v12371_v16 = vadd.f32 %v15044_v58, %v9575_v41  ;;  %v12245_v4 = vpop.f32.mrb[58].mxu1 }
 0xa97   :  { %v9792_v52 = vadd.f32 %v12370_v3, %v9728_v62  ;;  %v12372_v24 = vadd.f32 %v12245_v4, %v15044_v58  ;;  %v9578_v61 = vpop.f32.mrb[59].mxu1 }
 0xa98   :  { %v9790_v42 = vadd.f32 %v12371_v16, %v9726_v30  ;;  %v12373_v8 = vadd.f32 %v15044_v58, %v9578_v61 }
 0xa99   :  { %v9856_v31 = vmax.f32 %v9792_v52, 0.0  ;;  %v9793_v43 = vadd.f32 %v12372_v24, %v9729_v44 }
 0xa9a   :  { %v9854_v63 = vmax.f32 %v9790_v42, 0.0  ;;  %v9791_v23 = vadd.f32 %v12373_v8, %v9727_v26 }
 0xa9b   :  { %9920 = vst [vmem:[#allocation9 + $0x1d0] sm:$0xff] %v9856_v31  ;;  %v9857_v48 = vmax.f32 %v9793_v43, 0.0 }
 0xa9c   :  { %9918 = vst [vmem:[#allocation9 + $0x1c0] sm:$0xff] %v9854_v63  ;;  %v9855_v51 = vmax.f32 %v9791_v23, 0.0  ;;  %v12248_v54 = vpop.f32.mrb[60].mxu1 }
 0xa9d   :  { %9921 = vst [vmem:[#allocation9 + $0x1d8] sm:$0xff] %v9857_v48  ;;  %v12374_v55 = vadd.f32 %v12248_v54, %v15044_v58  ;;  %v9591_v37 = vpop.f32.mrb[61].mxu1 }
 0xa9e   :  { %9919 = vst [vmem:[#allocation9 + $0x1c8] sm:$0xff] %v9855_v51  ;;  %v12375_v57 = vadd.f32 %v15044_v58, %v9591_v37  ;;  %v12249_v40 = vpop.f32.mrb[62].mxu1 }
 0xa9f   :  { %v9796_v6 = vadd.f32 %v12374_v55, %v9732_v22  ;;  %v12376_v29 = vadd.f32 %v12249_v40, %v15044_v58  ;;  %v9594_v25 = vpop.f32.mrb[63].mxu1 }
 0xaa0   :  { %v9794_v7 = vadd.f32 %v12375_v57, %v9730_v10  ;;  %v12377_v50 = vadd.f32 %v15044_v58, %v9594_v25 }
 0xaa1   :  { %v9860_v5 = vmax.f32 %v9796_v6, 0.0  ;;  %v9797_v1 = vadd.f32 %v12376_v29, %v9733_v28 }
 0xaa2   :  { %v9858_v45 = vmax.f32 %v9794_v7, 0.0  ;;  %v9795_v12 = vadd.f32 %v12377_v50, %v9731_v60 }
 0xaa3   :  { %9924 = vst [vmem:[#allocation9 + $0x1f0] sm:$0xff] %v9860_v5  ;;  %v9861_v17 = vmax.f32 %v9797_v1, 0.0 }
 0xaa4   :  { %9922 = vst [vmem:[#allocation9 + $0x1e0] sm:$0xff] %v9858_v45  ;;  %v9859_v49 = vmax.f32 %v9795_v12, 0.0 }
 0xaa5   :  { %9925 = vst [vmem:[#allocation9 + $0x1f8] sm:$0xff] %v9861_v17 }
 0xaa6   :  { %9923 = vst [vmem:[#allocation9 + $0x1e8] sm:$0xff] %v9859_v49 }
 0xaa7   :  { %13637 = shalt.err (!%p13634_p0)
}
 0xaa8   :  { %s13638_s12 = scalar_lea.hbm %s15130_s5, 8192 }
 0xaa9   :  { %p13639_p1 = scmp.ne.s32.totalorder %s15130_s5, %s13638_s12  ;;  %p13642_p2 = scmp.lt.u32.totalorder %s13638_s12, %s15130_s5 }
 0xaab   :  { %p13644_p3 = pnand %p13642_p2, %p13639_p1 }
 0xaad   :  { %13647 = shalt.err (!%p13644_p3)
}
 0xaae   :  { %9937 = dma.vmem_to_hbm [thread:$0]  %s9932_s8, 8192, %s15130_s5, [#allocation5], %s13658_s1, %s13658_s1, %s13659_s17  }
 0xaaf   :  { %13652 = dma.done.wait [#allocation5], 8192  }
 0xab0   :  { %13653 = vsyncadd [#allocation5], 4294959104 }
 0xab1   :  { %9941 = vsyncpa [#allocation4], 1 }
 0xab2   :  { %9942 = vsyncpa [#allocation7], 1 }
 0xab3   :  { %9943 = vsyncpa [#allocation5], 1 }

</bundles_post_ra>
